<compile_context>
chip_gen: v6e
topology: v6e:2x2x1
jax: 0.10.0
libtpu: 0.0.40
codegen_flags: <defaults>
</compile_context>

<pallas_src>
from math import ceil

import jax
import jax.numpy as jnp
from jax import lax
from jax.experimental import pallas as pl
from jax.experimental.pallas import tpu as pltpu


LAYER_NAMES = ('sage0', 'sage1', 'dp1_embed', 'dp1_assign',
               'sage3', 'sage4', 'dp2_embed', 'dp2_assign',
               'sage6', 'sage7', 'cls1', 'cls2')


def _round_up(v, m):
    return ((v + m - 1) // m) * m


# ---------------------------------------------------------------------------
# Host-side weight packing
# ---------------------------------------------------------------------------
def pack_params(params):
    """Transpose torch (out,in) -> (in,out), fuse each dp embed|assign pair into
    one (in, H+K) matrix, row-stack all unit weights (sublane-aligned offsets)
    into ONE bf16 buffer and all biases into ONE f32 buffer.

    Returns (w_packed, b_packed, cfg) with cfg[name] = (row_off, fin, fout,
    bias_row) as static Python ints.
    """
    def tw(name):
        w, b = params[name]
        return w.T, b

    units = []
    units.append(('sage0',) + tw('sage0'))
    units.append(('sage1',) + tw('sage1'))
    we, be = tw('dp1_embed'); wa, ba = tw('dp1_assign')
    units.append(('dp1', jnp.concatenate([we, wa], axis=1),
                  jnp.concatenate([be, ba], axis=0)))
    units.append(('sage3',) + tw('sage3'))
    units.append(('sage4',) + tw('sage4'))
    we, be = tw('dp2_embed'); wa, ba = tw('dp2_assign')
    units.append(('dp2', jnp.concatenate([we, wa], axis=1),
                  jnp.concatenate([be, ba], axis=0)))
    for nm in ('sage6', 'sage7', 'cls1', 'cls2'):
        units.append((nm,) + tw(nm))

    max_out = max(int(w.shape[1]) for _, w, _ in units)
    cfg, blocks, row = {}, [], 0
    for i, (nm, w, _b) in enumerate(units):
        fin, fout = int(w.shape[0]), int(w.shape[1])
        cfg[nm] = (row, fin, fout, i)
        rows_alloc = _round_up(fin, 8)            # keep every chunk sublane-aligned
        blk = jnp.zeros((rows_alloc, max_out), jnp.float32).at[:fin, :fout].set(w)
        blocks.append(blk)
        row += rows_alloc
    w_packed = jnp.concatenate(blocks, axis=0).astype(jnp.bfloat16)

    b_packed = jnp.zeros((len(units), max_out), jnp.float32)
    for i, (_nm, _w, b) in enumerate(units):
        b_packed = b_packed.at[i, :b.shape[0]].set(b)
    return w_packed, b_packed, cfg


# ---------------------------------------------------------------------------
# One fused kernel for the entire forward pass
# ---------------------------------------------------------------------------
def make_fused_kernel(cfg, H, N1, K2):
    def kernel(x_ref, adj_ref, mask_ref, w_ref, b_ref, out_ref):
        x = x_ref[...]            # (B, N, Fin)  f32
        adj_bf = adj_ref[...]     # (B, N, N)    bf16 (0/1/2 exact)
        mask = mask_ref[...]      # (B, N)       f32
        W = w_ref[...]            # packed bf16 weights
        Bv = b_ref[...]           # packed f32 biases
        bf16 = jnp.bfloat16

        def aggregate(adj_b, h):
            # neighbour aggregation adj @ h: bf16 operands, f32 MXU accumulation
            return lax.dot_general(adj_b, h.astype(bf16),
                                   (((2,), (1,)), ((0,), (0,))),
                                   preferred_element_type=jnp.float32)

        def linear(agg, name):
            off, fin, fout, brow = cfg[name]
            w = W[off:off + fin, :fout]                   # (fin, fout) bf16
            b = Bv[brow:brow + 1, :fout]                  # (1, fout)   f32
            Bn, Nn, _ = agg.shape
            a16 = agg.astype(bf16)
            if Nn % 8 == 0:
                # sublane-aligned: one flattened (B*N,fin)x(fin,fout) MXU matmul
                out = jnp.dot(a16.reshape(Bn * Nn, fin), w,
                              preferred_element_type=jnp.float32).reshape(Bn, Nn, fout)
            else:
                # TODO(synk): tiny pooled node counts (K2 < 8) keep the batched
                # fallback; zero-padding K2 to 8 would change the assign-softmax /
                # BN statistics, so exactness wins over sublane density here.
                out = jnp.einsum('bnf,fh->bnh', a16, w,
                                 preferred_element_type=jnp.float32)
            return out + b

        def post(h, node_mask=None):
            # F.normalize(p=2, dim=-1, eps=1e-12) -> ReLU -> fresh
            # BatchNorm1d(num_nodes), training mode (biased var, eps=1e-5,
            # gamma=1, beta=0) -> optional node-mask multiply.
            ss = jnp.sum(h * h, axis=-1, keepdims=True)
            h = h * lax.rsqrt(jnp.maximum(ss, 1e-24))
            h = jnp.maximum(h, 0.0)
            Bn, _Nn, Fn = h.shape
            inv_cnt = 1.0 / (Bn * Fn)
            # one-pass BN stats: var = E[h^2] - mu^2 (post-ReLU, L2-normalized
            # values -> cancellation negligible; clamp at 0 for safety).
            mu = jnp.sum(h, axis=(0, 2), keepdims=True) * inv_cnt
            ex2 = jnp.sum(h * h, axis=(0, 2), keepdims=True) * inv_cnt
            var = jnp.maximum(ex2 - mu * mu, 0.0)
            h = (h - mu) * lax.rsqrt(var + 1e-5)
            if node_mask is not None:
                h = h * node_mask[:, :, None]
            return h

        def sage(h, adj_b, name, node_mask=None):
            return post(linear(aggregate(adj_b, h), name), node_mask)

        def embed_assign(h, adj_b, name, k_dim):
            # Shared neighbour aggregation + ONE fused (embed|assign) matmul;
            # columns split BEFORE normalize/ReLU/BN so each branch matches the
            # unfused layer exactly.
            agg = aggregate(adj_b, h)
            fused = linear(agg, name)                      # (B, N, H + k_dim)
            z = post(fused[:, :, :H])
            logits = post(fused[:, :, H:H + k_dim])
            return z, logits

        def softmax_last(v):
            m = jnp.max(v, axis=-1, keepdims=True)
            e = jnp.exp(v - m)
            # exact division: assignment rows / class probabilities sum to 1
            return e / jnp.sum(e, axis=-1, keepdims=True)

        def diffpool(z, logits, adj_b):
            s = softmax_last(logits)                       # (B, N, K) f32
            s16 = s.astype(bf16)
            xnext = lax.dot_general(s16, z.astype(bf16),
                                    (((1,), (1,)), ((0,), (0,))),
                                    preferred_element_type=jnp.float32)   # (B,K,H)
            sa = lax.dot_general(s16, adj_b, (((1,), (1,)), ((0,), (0,))),
                                 preferred_element_type=jnp.float32)      # (B,K,N)
            anext = lax.dot_general(sa.astype(bf16), s16,
                                    (((2,), (1,)), ((0,), (0,))),
                                    preferred_element_type=jnp.float32)   # (B,K,K)
            return xnext, anext.astype(bf16)

        def dense2d(v, name):
            off, fin, fout, brow = cfg[name]
            return (jnp.dot(v.astype(bf16), W[off:off + fin, :fout],
                            preferred_element_type=jnp.float32)
                    + Bv[brow:brow + 1, :fout])

        # ---- pool block 1 (mask applied while node dim still matches mask) ----
        h = sage(x, adj_bf, 'sage0', node_mask=mask)
        h = sage(h, adj_bf, 'sage1', node_mask=mask)
        z, logits = embed_assign(h, adj_bf, 'dp1', N1)
        h, adj1_bf = diffpool(z, logits, adj_bf)

        # ---- pool block 2 ----
        h = sage(h, adj1_bf, 'sage3')
        h = sage(h, adj1_bf, 'sage4')
        z, logits = embed_assign(h, adj1_bf, 'dp2', K2)
        h, adj2_bf = diffpool(z, logits, adj1_bf)

        # ---- trailing SAGE layers ----
        h = sage(h, adj2_bf, 'sage6')
        h = sage(h, adj2_bf, 'sage7')

        # x = x * mask: reproduces the original PyTorch broadcast
        # (B, K2, H) * (B, N); only valid when K2 == B and H == N (asserted in
        # the wrapper).
        h = h * mask[None, :, :]
        # Global mean readout over pooled nodes (divides by K2 including zeroed
        # entries -- matches the original module, NOT a masked mean).
        readout = jnp.mean(h, axis=1)                      # (B, H)

        # Classifier: Linear -> ReLU -> Linear -> softmax (exact division).
        # TODO(synk): F.dropout(p=0.5) is identity at inference; training-mode
        # dropout is not implemented.
        c = jnp.maximum(dense2d(readout, 'cls1'), 0.0)
        out_ref[...] = softmax_last(dense2d(c, 'cls2'))

    return kernel


# ---------------------------------------------------------------------------
# Wrapper: host-side weight prep + single pallas_call
# ---------------------------------------------------------------------------
def diffpool_sage_forward(x, adj, mask, params):
    B, N, F_in = x.shape
    H = params['sage7'][0].shape[0]
    N1 = params['dp1_assign'][0].shape[0]
    K2 = params['dp2_assign'][0].shape[0]
    n_classes = params['cls2'][0].shape[0]

    # The original module's trailing `x * mask` broadcast ((B, K2, H) * (B, N))
    # is only valid when K2 == B and H == N; make the invariant explicit.
    assert K2 == B and H == N, f'invalid mask-broadcast config: {(K2, B, H, N)}'

    w_packed, b_packed, cfg = pack_params(params)
    # adjacency entries are small integers (0/1/2): exact in bf16; halves the
    # DMA/VMEM of the largest input and lets every MXU dot run at the bf16 rate.
    adj_bf = adj.astype(jnp.bfloat16)

    kernel = make_fused_kernel(cfg, H, N1, K2)

    # Scoped-VMEM budget sized to the resident working set (inputs + packed
    # weights + a generous bound on concurrent f32 activation temporaries),
    # 4 MiB floor, capped at 64 MiB (v7x physical VMEM).
    resident = (x.size * 4 + adj_bf.size * 2 + mask.size * 4 +
                w_packed.size * 2 + b_packed.size * 4 + B * n_classes * 4)
    act = 4 * B * N * max(F_in, H + N1)
    vmem_limit = int(min(64 * 2 ** 20,
                         max(4 * 2 ** 20, resident + 10 * act + (1 << 20))))

    vmem = pl.BlockSpec(memory_space=pltpu.MemorySpace.VMEM)
    # TODO(synk): grid-less single call runs on one TensorCore; a v7x 2-TC batch
    # grid (and per-graph (1,N,N) adj tiling for large N) requires a cross-core
    # reduce for the training-mode BatchNorm batch statistics.
    return pl.pallas_call(
        kernel,
        out_shape=jax.ShapeDtypeStruct((B, n_classes), jnp.float32),
        in_specs=[vmem] * 5,
        out_specs=vmem,
        compiler_params=pltpu.CompilerParams(vmem_limit_bytes=vmem_limit),
    )(x, adj_bf, mask, w_packed, b_packed)


# ---------------------------------------------------------------------------
# Deterministic parameter init (synthetic; shapes follow the module __init__)
# ---------------------------------------------------------------------------
def init_params(key, f_in, h, n1, n2, n_classes, c_hidden):
    keys = iter(jax.random.split(key, 16))

    def lin(k, out_d, in_d):
        kw, kb = jax.random.split(k)
        w = jax.random.normal(kw, (out_d, in_d), jnp.float32) * (1.0 / (in_d ** 0.5))
        b = jax.random.normal(kb, (out_d,), jnp.float32) * 0.01
        return w, b

    return {
        'sage0': lin(next(keys), h, f_in),
        'sage1': lin(next(keys), h, h),
        'dp1_embed': lin(next(keys), h, h),
        'dp1_assign': lin(next(keys), n1, h),
        'sage3': lin(next(keys), h, h),
        'sage4': lin(next(keys), h, h),
        'dp2_embed': lin(next(keys), h, h),
        'dp2_assign': lin(next(keys), n2, h),
        'sage6': lin(next(keys), h, h),
        'sage7': lin(next(keys), h, h),
        'cls1': lin(next(keys), c_hidden, h),
        'cls2': lin(next(keys), n_classes, c_hidden),
    }


if __name__ == "__main__":
    # small config: dataset_num_node_features=8, n_hidden_channels=32,
    # max_nodes=32, pool_ratio=0.25, 2 pool blocks, 4 classes, clf hidden=16.
    B, N, F_IN, H = 2, 32, 8, 32          # N == H so the final `x * mask` broadcast is valid
    MAX_NODES, POOL_RATIO = 32, 0.25
    N1 = max(ceil(POOL_RATIO * MAX_NODES), 1)   # 8
    N2 = max(ceil(POOL_RATIO * N1), 1)          # 2  (== B, required by the broadcast)
    N_CLASSES, C_HIDDEN = 4, 16

    key = jax.random.PRNGKey(0)
    kx, ka, kp = jax.random.split(key, 3)

    x = jax.random.normal(kx, (B, N, F_IN), jnp.float32)
    adj_raw = jax.random.uniform(ka, (B, N, N), jnp.float32)
    adj = (0.5 * (adj_raw + jnp.swapaxes(adj_raw, -1, -2)) > 0.6).astype(jnp.float32)
    adj = adj + jnp.eye(N, dtype=jnp.float32)[None]
    mask = jnp.ones((B, N), jnp.float32).at[0, 28:].set(0.0).at[1, 24:].set(0.0)

    params = init_params(kp, F_IN, H, N1, N2, N_CLASSES, C_HIDDEN)

    forward = jax.jit(diffpool_sage_forward)
    out = jax.block_until_ready(forward(x, adj, mask, params))

    assert out.shape == (B, N_CLASSES), out.shape
    assert bool(jnp.all(jnp.isfinite(out)))
    # rows sum to 1 after the (exact-division) final softmax
    assert bool(jnp.allclose(jnp.sum(out, axis=-1), 1.0, atol=1e-5))
    print("KERNEL_OK")
</pallas_src>

<mosaic_0001>
module attributes {stable_mosaic.version = 11 : i64} {
  func.func @kernel(%arg0: memref<2x32x8xf32, #tpu.memory_space<vmem>>, %arg1: memref<2x32x32xbf16, #tpu.memory_space<vmem>>, %arg2: memref<2x32xf32, #tpu.memory_space<vmem>>, %arg3: memref<280x40xbf16, #tpu.memory_space<vmem>>, %arg4: memref<10x40xf32, #tpu.memory_space<vmem>>, %arg5: memref<2x4xf32, #tpu.memory_space<vmem>>) attributes {dimension_semantics = [], scalar_prefetch = 0 : i64, scratch_operands = 0 : i64, tpu.core_type = #tpu.core_type<tc>} {
    %c0 = arith.constant 0 : index
    %c0_0 = arith.constant 0 : index
    %c0_1 = arith.constant 0 : index
    %0 = vector.load %arg0[%c0, %c0_0, %c0_1] : memref<2x32x8xf32, #tpu.memory_space<vmem>>, vector<2x32x8xf32>
    %c0_2 = arith.constant 0 : index
    %c0_3 = arith.constant 0 : index
    %c0_4 = arith.constant 0 : index
    %1 = vector.load %arg1[%c0_2, %c0_3, %c0_4] : memref<2x32x32xbf16, #tpu.memory_space<vmem>>, vector<2x32x32xbf16>
    %c0_5 = arith.constant 0 : index
    %c0_6 = arith.constant 0 : index
    %2 = vector.load %arg2[%c0_5, %c0_6] : memref<2x32xf32, #tpu.memory_space<vmem>>, vector<2x32xf32>
    %c0_7 = arith.constant 0 : index
    %c0_8 = arith.constant 0 : index
    %3 = vector.load %arg3[%c0_7, %c0_8] : memref<280x40xbf16, #tpu.memory_space<vmem>>, vector<280x40xbf16>
    %c0_9 = arith.constant 0 : index
    %c0_10 = arith.constant 0 : index
    %4 = vector.load %arg4[%c0_9, %c0_10] : memref<10x40xf32, #tpu.memory_space<vmem>>, vector<10x40xf32>
    %5 = arith.truncf %0 : vector<2x32x8xf32> to vector<2x32x8xbf16>
    %cst = arith.constant dense<0.000000e+00> : vector<2x32x8xf32>
    %6 = tpu.matmul %1, %5, %cst {dimension_numbers = #tpu.dot_dimension_numbers<[2], [1], [1], [2], [0, 0, 0, 1, 1, 2], [0], [0]>} : vector<2x32x32xbf16>, vector<2x32x8xbf16>, vector<2x32x8xf32> -> vector<2x32x8xf32>
    %7 = vector.extract_strided_slice %3 {offsets = [0, 0], sizes = [8, 32], strides = [1, 1]} : vector<280x40xbf16> to vector<8x32xbf16>
    %8 = vector.extract_strided_slice %4 {offsets = [0, 0], sizes = [1, 32], strides = [1, 1]} : vector<10x40xf32> to vector<1x32xf32>
    %9 = arith.truncf %6 : vector<2x32x8xf32> to vector<2x32x8xbf16>
    %10 = vector.shape_cast %9 : vector<2x32x8xbf16> to vector<64x8xbf16>
    %cst_11 = arith.constant dense<0.000000e+00> : vector<64x32xf32>
    %11 = tpu.matmul %10, %7, %cst_11 {dimension_numbers = #tpu.dot_dimension_numbers<[1], [0], [0], [1], [0, 0, 1, 1], [], []>} : vector<64x8xbf16>, vector<8x32xbf16>, vector<64x32xf32> -> vector<64x32xf32>
    %12 = vector.shape_cast %11 : vector<64x32xf32> to vector<2x32x32xf32>
    %13 = vector.shape_cast %8 : vector<1x32xf32> to vector<1x1x32xf32>
    %14 = vector.broadcast %13 : vector<1x1x32xf32> to vector<2x32x32xf32>
    %15 = arith.addf %12, %14 : vector<2x32x32xf32>
    %16 = arith.mulf %15, %15 : vector<2x32x32xf32>
    %cst_12 = arith.constant dense<0.000000e+00> : vector<2x32xf32>
    %17 = vector.multi_reduction <add>, %16, %cst_12 [2] : vector<2x32x32xf32> to vector<2x32xf32>
    %18 = vector.shape_cast %17 : vector<2x32xf32> to vector<2x32x1xf32>
    %cst_13 = arith.constant 1.000000e-24 : f32
    %19 = vector.broadcast %cst_13 : f32 to vector<2x32x1xf32>
    %20 = arith.maximumf %18, %19 : vector<2x32x1xf32>
    %21 = math.rsqrt %20 : vector<2x32x1xf32>
    %22 = vector.broadcast %21 : vector<2x32x1xf32> to vector<2x32x32xf32>
    %23 = arith.mulf %15, %22 : vector<2x32x32xf32>
    %cst_14 = arith.constant 0.000000e+00 : f32
    %24 = vector.broadcast %cst_14 : f32 to vector<2x32x32xf32>
    %25 = arith.maximumf %23, %24 : vector<2x32x32xf32>
    %cst_15 = arith.constant dense<0.000000e+00> : vector<32xf32>
    %26 = vector.multi_reduction <add>, %25, %cst_15 [0, 2] : vector<2x32x32xf32> to vector<32xf32>
    %27 = vector.shape_cast %26 : vector<32xf32> to vector<1x32x1xf32>
    %cst_16 = arith.constant 1.562500e-02 : f32
    %28 = vector.broadcast %cst_16 : f32 to vector<1x32x1xf32>
    %29 = arith.mulf %27, %28 : vector<1x32x1xf32>
    %30 = arith.mulf %25, %25 : vector<2x32x32xf32>
    %cst_17 = arith.constant dense<0.000000e+00> : vector<32xf32>
    %31 = vector.multi_reduction <add>, %30, %cst_17 [0, 2] : vector<2x32x32xf32> to vector<32xf32>
    %32 = vector.shape_cast %31 : vector<32xf32> to vector<1x32x1xf32>
    %cst_18 = arith.constant 1.562500e-02 : f32
    %33 = vector.broadcast %cst_18 : f32 to vector<1x32x1xf32>
    %34 = arith.mulf %32, %33 : vector<1x32x1xf32>
    %35 = arith.mulf %29, %29 : vector<1x32x1xf32>
    %36 = arith.subf %34, %35 : vector<1x32x1xf32>
    %cst_19 = arith.constant 0.000000e+00 : f32
    %37 = vector.broadcast %cst_19 : f32 to vector<1x32x1xf32>
    %38 = arith.maximumf %36, %37 : vector<1x32x1xf32>
    %39 = vector.broadcast %29 : vector<1x32x1xf32> to vector<2x32x32xf32>
    %40 = arith.subf %25, %39 : vector<2x32x32xf32>
    %cst_20 = arith.constant 9.99999974E-6 : f32
    %41 = vector.broadcast %cst_20 : f32 to vector<1x32x1xf32>
    %42 = arith.addf %38, %41 : vector<1x32x1xf32>
    %43 = math.rsqrt %42 : vector<1x32x1xf32>
    %44 = vector.broadcast %43 : vector<1x32x1xf32> to vector<2x32x32xf32>
    %45 = arith.mulf %40, %44 : vector<2x32x32xf32>
    %46 = vector.shape_cast %2 : vector<2x32xf32> to vector<2x32x1xf32>
    %47 = vector.broadcast %46 : vector<2x32x1xf32> to vector<2x32x32xf32>
    %48 = arith.mulf %45, %47 : vector<2x32x32xf32>
    %49 = arith.truncf %48 : vector<2x32x32xf32> to vector<2x32x32xbf16>
    %cst_21 = arith.constant dense<0.000000e+00> : vector<2x32x32xf32>
    %50 = tpu.matmul %1, %49, %cst_21 {dimension_numbers = #tpu.dot_dimension_numbers<[2], [1], [1], [2], [0, 0, 0, 1, 1, 2], [0], [0]>} : vector<2x32x32xbf16>, vector<2x32x32xbf16>, vector<2x32x32xf32> -> vector<2x32x32xf32>
    %51 = vector.extract_strided_slice %3 {offsets = [8, 0], sizes = [32, 32], strides = [1, 1]} : vector<280x40xbf16> to vector<32x32xbf16>
    %52 = vector.extract_strided_slice %4 {offsets = [1, 0], sizes = [1, 32], strides = [1, 1]} : vector<10x40xf32> to vector<1x32xf32>
    %53 = arith.truncf %50 : vector<2x32x32xf32> to vector<2x32x32xbf16>
    %54 = vector.shape_cast %53 : vector<2x32x32xbf16> to vector<64x32xbf16>
    %cst_22 = arith.constant dense<0.000000e+00> : vector<64x32xf32>
    %55 = tpu.matmul %54, %51, %cst_22 {dimension_numbers = #tpu.dot_dimension_numbers<[1], [0], [0], [1], [0, 0, 1, 1], [], []>} : vector<64x32xbf16>, vector<32x32xbf16>, vector<64x32xf32> -> vector<64x32xf32>
    %56 = vector.shape_cast %55 : vector<64x32xf32> to vector<2x32x32xf32>
    %57 = vector.shape_cast %52 : vector<1x32xf32> to vector<1x1x32xf32>
    %58 = vector.broadcast %57 : vector<1x1x32xf32> to vector<2x32x32xf32>
    %59 = arith.addf %56, %58 : vector<2x32x32xf32>
    %60 = arith.mulf %59, %59 : vector<2x32x32xf32>
    %cst_23 = arith.constant dense<0.000000e+00> : vector<2x32xf32>
    %61 = vector.multi_reduction <add>, %60, %cst_23 [2] : vector<2x32x32xf32> to vector<2x32xf32>
    %62 = vector.shape_cast %61 : vector<2x32xf32> to vector<2x32x1xf32>
    %cst_24 = arith.constant 1.000000e-24 : f32
    %63 = vector.broadcast %cst_24 : f32 to vector<2x32x1xf32>
    %64 = arith.maximumf %62, %63 : vector<2x32x1xf32>
    %65 = math.rsqrt %64 : vector<2x32x1xf32>
    %66 = vector.broadcast %65 : vector<2x32x1xf32> to vector<2x32x32xf32>
    %67 = arith.mulf %59, %66 : vector<2x32x32xf32>
    %cst_25 = arith.constant 0.000000e+00 : f32
    %68 = vector.broadcast %cst_25 : f32 to vector<2x32x32xf32>
    %69 = arith.maximumf %67, %68 : vector<2x32x32xf32>
    %cst_26 = arith.constant dense<0.000000e+00> : vector<32xf32>
    %70 = vector.multi_reduction <add>, %69, %cst_26 [0, 2] : vector<2x32x32xf32> to vector<32xf32>
    %71 = vector.shape_cast %70 : vector<32xf32> to vector<1x32x1xf32>
    %cst_27 = arith.constant 1.562500e-02 : f32
    %72 = vector.broadcast %cst_27 : f32 to vector<1x32x1xf32>
    %73 = arith.mulf %71, %72 : vector<1x32x1xf32>
    %74 = arith.mulf %69, %69 : vector<2x32x32xf32>
    %cst_28 = arith.constant dense<0.000000e+00> : vector<32xf32>
    %75 = vector.multi_reduction <add>, %74, %cst_28 [0, 2] : vector<2x32x32xf32> to vector<32xf32>
    %76 = vector.shape_cast %75 : vector<32xf32> to vector<1x32x1xf32>
    %cst_29 = arith.constant 1.562500e-02 : f32
    %77 = vector.broadcast %cst_29 : f32 to vector<1x32x1xf32>
    %78 = arith.mulf %76, %77 : vector<1x32x1xf32>
    %79 = arith.mulf %73, %73 : vector<1x32x1xf32>
    %80 = arith.subf %78, %79 : vector<1x32x1xf32>
    %cst_30 = arith.constant 0.000000e+00 : f32
    %81 = vector.broadcast %cst_30 : f32 to vector<1x32x1xf32>
    %82 = arith.maximumf %80, %81 : vector<1x32x1xf32>
    %83 = vector.broadcast %73 : vector<1x32x1xf32> to vector<2x32x32xf32>
    %84 = arith.subf %69, %83 : vector<2x32x32xf32>
    %cst_31 = arith.constant 9.99999974E-6 : f32
    %85 = vector.broadcast %cst_31 : f32 to vector<1x32x1xf32>
    %86 = arith.addf %82, %85 : vector<1x32x1xf32>
    %87 = math.rsqrt %86 : vector<1x32x1xf32>
    %88 = vector.broadcast %87 : vector<1x32x1xf32> to vector<2x32x32xf32>
    %89 = arith.mulf %84, %88 : vector<2x32x32xf32>
    %90 = vector.shape_cast %2 : vector<2x32xf32> to vector<2x32x1xf32>
    %91 = vector.broadcast %90 : vector<2x32x1xf32> to vector<2x32x32xf32>
    %92 = arith.mulf %89, %91 : vector<2x32x32xf32>
    %93 = arith.truncf %92 : vector<2x32x32xf32> to vector<2x32x32xbf16>
    %cst_32 = arith.constant dense<0.000000e+00> : vector<2x32x32xf32>
    %94 = tpu.matmul %1, %93, %cst_32 {dimension_numbers = #tpu.dot_dimension_numbers<[2], [1], [1], [2], [0, 0, 0, 1, 1, 2], [0], [0]>} : vector<2x32x32xbf16>, vector<2x32x32xbf16>, vector<2x32x32xf32> -> vector<2x32x32xf32>
    %95 = vector.extract_strided_slice %3 {offsets = [40, 0], sizes = [32, 40], strides = [1, 1]} : vector<280x40xbf16> to vector<32x40xbf16>
    %96 = vector.extract_strided_slice %4 {offsets = [2, 0], sizes = [1, 40], strides = [1, 1]} : vector<10x40xf32> to vector<1x40xf32>
    %97 = arith.truncf %94 : vector<2x32x32xf32> to vector<2x32x32xbf16>
    %98 = vector.shape_cast %97 : vector<2x32x32xbf16> to vector<64x32xbf16>
    %cst_33 = arith.constant dense<0.000000e+00> : vector<64x40xf32>
    %99 = tpu.matmul %98, %95, %cst_33 {dimension_numbers = #tpu.dot_dimension_numbers<[1], [0], [0], [1], [0, 0, 1, 1], [], []>} : vector<64x32xbf16>, vector<32x40xbf16>, vector<64x40xf32> -> vector<64x40xf32>
    %100 = vector.shape_cast %99 : vector<64x40xf32> to vector<2x32x40xf32>
    %101 = vector.shape_cast %96 : vector<1x40xf32> to vector<1x1x40xf32>
    %102 = vector.broadcast %101 : vector<1x1x40xf32> to vector<2x32x40xf32>
    %103 = arith.addf %100, %102 : vector<2x32x40xf32>
    %104 = vector.extract_strided_slice %103 {offsets = [0, 0, 0], sizes = [2, 32, 32], strides = [1, 1, 1]} : vector<2x32x40xf32> to vector<2x32x32xf32>
    %105 = arith.mulf %104, %104 : vector<2x32x32xf32>
    %cst_34 = arith.constant dense<0.000000e+00> : vector<2x32xf32>
    %106 = vector.multi_reduction <add>, %105, %cst_34 [2] : vector<2x32x32xf32> to vector<2x32xf32>
    %107 = vector.shape_cast %106 : vector<2x32xf32> to vector<2x32x1xf32>
    %cst_35 = arith.constant 1.000000e-24 : f32
    %108 = vector.broadcast %cst_35 : f32 to vector<2x32x1xf32>
    %109 = arith.maximumf %107, %108 : vector<2x32x1xf32>
    %110 = math.rsqrt %109 : vector<2x32x1xf32>
    %111 = vector.broadcast %110 : vector<2x32x1xf32> to vector<2x32x32xf32>
    %112 = arith.mulf %104, %111 : vector<2x32x32xf32>
    %cst_36 = arith.constant 0.000000e+00 : f32
    %113 = vector.broadcast %cst_36 : f32 to vector<2x32x32xf32>
    %114 = arith.maximumf %112, %113 : vector<2x32x32xf32>
    %cst_37 = arith.constant dense<0.000000e+00> : vector<32xf32>
    %115 = vector.multi_reduction <add>, %114, %cst_37 [0, 2] : vector<2x32x32xf32> to vector<32xf32>
    %116 = vector.shape_cast %115 : vector<32xf32> to vector<1x32x1xf32>
    %cst_38 = arith.constant 1.562500e-02 : f32
    %117 = vector.broadcast %cst_38 : f32 to vector<1x32x1xf32>
    %118 = arith.mulf %116, %117 : vector<1x32x1xf32>
    %119 = arith.mulf %114, %114 : vector<2x32x32xf32>
    %cst_39 = arith.constant dense<0.000000e+00> : vector<32xf32>
    %120 = vector.multi_reduction <add>, %119, %cst_39 [0, 2] : vector<2x32x32xf32> to vector<32xf32>
    %121 = vector.shape_cast %120 : vector<32xf32> to vector<1x32x1xf32>
    %cst_40 = arith.constant 1.562500e-02 : f32
    %122 = vector.broadcast %cst_40 : f32 to vector<1x32x1xf32>
    %123 = arith.mulf %121, %122 : vector<1x32x1xf32>
    %124 = arith.mulf %118, %118 : vector<1x32x1xf32>
    %125 = arith.subf %123, %124 : vector<1x32x1xf32>
    %cst_41 = arith.constant 0.000000e+00 : f32
    %126 = vector.broadcast %cst_41 : f32 to vector<1x32x1xf32>
    %127 = arith.maximumf %125, %126 : vector<1x32x1xf32>
    %128 = vector.broadcast %118 : vector<1x32x1xf32> to vector<2x32x32xf32>
    %129 = arith.subf %114, %128 : vector<2x32x32xf32>
    %cst_42 = arith.constant 9.99999974E-6 : f32
    %130 = vector.broadcast %cst_42 : f32 to vector<1x32x1xf32>
    %131 = arith.addf %127, %130 : vector<1x32x1xf32>
    %132 = math.rsqrt %131 : vector<1x32x1xf32>
    %133 = vector.broadcast %132 : vector<1x32x1xf32> to vector<2x32x32xf32>
    %134 = arith.mulf %129, %133 : vector<2x32x32xf32>
    %135 = vector.extract_strided_slice %103 {offsets = [0, 0, 32], sizes = [2, 32, 8], strides = [1, 1, 1]} : vector<2x32x40xf32> to vector<2x32x8xf32>
    %136 = arith.mulf %135, %135 : vector<2x32x8xf32>
    %cst_43 = arith.constant dense<0.000000e+00> : vector<2x32xf32>
    %137 = vector.multi_reduction <add>, %136, %cst_43 [2] : vector<2x32x8xf32> to vector<2x32xf32>
    %138 = vector.shape_cast %137 : vector<2x32xf32> to vector<2x32x1xf32>
    %cst_44 = arith.constant 1.000000e-24 : f32
    %139 = vector.broadcast %cst_44 : f32 to vector<2x32x1xf32>
    %140 = arith.maximumf %138, %139 : vector<2x32x1xf32>
    %141 = math.rsqrt %140 : vector<2x32x1xf32>
    %142 = vector.broadcast %141 : vector<2x32x1xf32> to vector<2x32x8xf32>
    %143 = arith.mulf %135, %142 : vector<2x32x8xf32>
    %cst_45 = arith.constant 0.000000e+00 : f32
    %144 = vector.broadcast %cst_45 : f32 to vector<2x32x8xf32>
    %145 = arith.maximumf %143, %144 : vector<2x32x8xf32>
    %cst_46 = arith.constant dense<0.000000e+00> : vector<32xf32>
    %146 = vector.multi_reduction <add>, %145, %cst_46 [0, 2] : vector<2x32x8xf32> to vector<32xf32>
    %147 = vector.shape_cast %146 : vector<32xf32> to vector<1x32x1xf32>
    %cst_47 = arith.constant 6.250000e-02 : f32
    %148 = vector.broadcast %cst_47 : f32 to vector<1x32x1xf32>
    %149 = arith.mulf %147, %148 : vector<1x32x1xf32>
    %150 = arith.mulf %145, %145 : vector<2x32x8xf32>
    %cst_48 = arith.constant dense<0.000000e+00> : vector<32xf32>
    %151 = vector.multi_reduction <add>, %150, %cst_48 [0, 2] : vector<2x32x8xf32> to vector<32xf32>
    %152 = vector.shape_cast %151 : vector<32xf32> to vector<1x32x1xf32>
    %cst_49 = arith.constant 6.250000e-02 : f32
    %153 = vector.broadcast %cst_49 : f32 to vector<1x32x1xf32>
    %154 = arith.mulf %152, %153 : vector<1x32x1xf32>
    %155 = arith.mulf %149, %149 : vector<1x32x1xf32>
    %156 = arith.subf %154, %155 : vector<1x32x1xf32>
    %cst_50 = arith.constant 0.000000e+00 : f32
    %157 = vector.broadcast %cst_50 : f32 to vector<1x32x1xf32>
    %158 = arith.maximumf %156, %157 : vector<1x32x1xf32>
    %159 = vector.broadcast %149 : vector<1x32x1xf32> to vector<2x32x8xf32>
    %160 = arith.subf %145, %159 : vector<2x32x8xf32>
    %cst_51 = arith.constant 9.99999974E-6 : f32
    %161 = vector.broadcast %cst_51 : f32 to vector<1x32x1xf32>
    %162 = arith.addf %158, %161 : vector<1x32x1xf32>
    %163 = math.rsqrt %162 : vector<1x32x1xf32>
    %164 = vector.broadcast %163 : vector<1x32x1xf32> to vector<2x32x8xf32>
    %165 = arith.mulf %160, %164 : vector<2x32x8xf32>
    %cst_52 = arith.constant dense<0xFF800000> : vector<2x32xf32>
    %166 = vector.multi_reduction <maximumf>, %165, %cst_52 [2] : vector<2x32x8xf32> to vector<2x32xf32>
    %167 = vector.shape_cast %166 : vector<2x32xf32> to vector<2x32x1xf32>
    %168 = vector.broadcast %167 : vector<2x32x1xf32> to vector<2x32x8xf32>
    %169 = arith.subf %165, %168 : vector<2x32x8xf32>
    %170 = math.exp %169 : vector<2x32x8xf32>
    %cst_53 = arith.constant dense<0.000000e+00> : vector<2x32xf32>
    %171 = vector.multi_reduction <add>, %170, %cst_53 [2] : vector<2x32x8xf32> to vector<2x32xf32>
    %172 = vector.shape_cast %171 : vector<2x32xf32> to vector<2x32x1xf32>
    %173 = vector.broadcast %172 : vector<2x32x1xf32> to vector<2x32x8xf32>
    %174 = arith.divf %170, %173 : vector<2x32x8xf32>
    %175 = arith.truncf %174 : vector<2x32x8xf32> to vector<2x32x8xbf16>
    %176 = arith.truncf %134 : vector<2x32x32xf32> to vector<2x32x32xbf16>
    %cst_54 = arith.constant dense<0.000000e+00> : vector<2x8x32xf32>
    %177 = tpu.matmul %175, %176, %cst_54 {dimension_numbers = #tpu.dot_dimension_numbers<[1], [1], [2], [2], [0, 0, 0, 2, 1, 2], [0], [0]>} : vector<2x32x8xbf16>, vector<2x32x32xbf16>, vector<2x8x32xf32> -> vector<2x8x32xf32>
    %cst_55 = arith.constant dense<0.000000e+00> : vector<2x8x32xf32>
    %178 = tpu.matmul %175, %1, %cst_55 {dimension_numbers = #tpu.dot_dimension_numbers<[1], [1], [2], [2], [0, 0, 0, 2, 1, 2], [0], [0]>} : vector<2x32x8xbf16>, vector<2x32x32xbf16>, vector<2x8x32xf32> -> vector<2x8x32xf32>
    %179 = arith.truncf %178 : vector<2x8x32xf32> to vector<2x8x32xbf16>
    %cst_56 = arith.constant dense<0.000000e+00> : vector<2x8x8xf32>
    %180 = tpu.matmul %179, %175, %cst_56 {dimension_numbers = #tpu.dot_dimension_numbers<[2], [1], [1], [2], [0, 0, 0, 1, 1, 2], [0], [0]>} : vector<2x8x32xbf16>, vector<2x32x8xbf16>, vector<2x8x8xf32> -> vector<2x8x8xf32>
    %181 = arith.truncf %180 : vector<2x8x8xf32> to vector<2x8x8xbf16>
    %182 = arith.truncf %177 : vector<2x8x32xf32> to vector<2x8x32xbf16>
    %cst_57 = arith.constant dense<0.000000e+00> : vector<2x8x32xf32>
    %183 = tpu.matmul %181, %182, %cst_57 {dimension_numbers = #tpu.dot_dimension_numbers<[2], [1], [1], [2], [0, 0, 0, 1, 1, 2], [0], [0]>} : vector<2x8x8xbf16>, vector<2x8x32xbf16>, vector<2x8x32xf32> -> vector<2x8x32xf32>
    %184 = vector.extract_strided_slice %3 {offsets = [72, 0], sizes = [32, 32], strides = [1, 1]} : vector<280x40xbf16> to vector<32x32xbf16>
    %185 = vector.extract_strided_slice %4 {offsets = [3, 0], sizes = [1, 32], strides = [1, 1]} : vector<10x40xf32> to vector<1x32xf32>
    %186 = arith.truncf %183 : vector<2x8x32xf32> to vector<2x8x32xbf16>
    %187 = vector.shape_cast %186 : vector<2x8x32xbf16> to vector<16x32xbf16>
    %cst_58 = arith.constant dense<0.000000e+00> : vector<16x32xf32>
    %188 = tpu.matmul %187, %184, %cst_58 {dimension_numbers = #tpu.dot_dimension_numbers<[1], [0], [0], [1], [0, 0, 1, 1], [], []>} : vector<16x32xbf16>, vector<32x32xbf16>, vector<16x32xf32> -> vector<16x32xf32>
    %189 = vector.shape_cast %188 : vector<16x32xf32> to vector<2x8x32xf32>
    %190 = vector.shape_cast %185 : vector<1x32xf32> to vector<1x1x32xf32>
    %191 = vector.broadcast %190 : vector<1x1x32xf32> to vector<2x8x32xf32>
    %192 = arith.addf %189, %191 : vector<2x8x32xf32>
    %193 = arith.mulf %192, %192 : vector<2x8x32xf32>
    %cst_59 = arith.constant dense<0.000000e+00> : vector<2x8xf32>
    %194 = vector.multi_reduction <add>, %193, %cst_59 [2] : vector<2x8x32xf32> to vector<2x8xf32>
    %195 = vector.shape_cast %194 : vector<2x8xf32> to vector<2x8x1xf32>
    %cst_60 = arith.constant 1.000000e-24 : f32
    %196 = vector.broadcast %cst_60 : f32 to vector<2x8x1xf32>
    %197 = arith.maximumf %195, %196 : vector<2x8x1xf32>
    %198 = math.rsqrt %197 : vector<2x8x1xf32>
    %199 = vector.broadcast %198 : vector<2x8x1xf32> to vector<2x8x32xf32>
    %200 = arith.mulf %192, %199 : vector<2x8x32xf32>
    %cst_61 = arith.constant 0.000000e+00 : f32
    %201 = vector.broadcast %cst_61 : f32 to vector<2x8x32xf32>
    %202 = arith.maximumf %200, %201 : vector<2x8x32xf32>
    %cst_62 = arith.constant dense<0.000000e+00> : vector<8xf32>
    %203 = vector.multi_reduction <add>, %202, %cst_62 [0, 2] : vector<2x8x32xf32> to vector<8xf32>
    %204 = vector.shape_cast %203 : vector<8xf32> to vector<1x8x1xf32>
    %cst_63 = arith.constant 1.562500e-02 : f32
    %205 = vector.broadcast %cst_63 : f32 to vector<1x8x1xf32>
    %206 = arith.mulf %204, %205 : vector<1x8x1xf32>
    %207 = arith.mulf %202, %202 : vector<2x8x32xf32>
    %cst_64 = arith.constant dense<0.000000e+00> : vector<8xf32>
    %208 = vector.multi_reduction <add>, %207, %cst_64 [0, 2] : vector<2x8x32xf32> to vector<8xf32>
    %209 = vector.shape_cast %208 : vector<8xf32> to vector<1x8x1xf32>
    %cst_65 = arith.constant 1.562500e-02 : f32
    %210 = vector.broadcast %cst_65 : f32 to vector<1x8x1xf32>
    %211 = arith.mulf %209, %210 : vector<1x8x1xf32>
    %212 = arith.mulf %206, %206 : vector<1x8x1xf32>
    %213 = arith.subf %211, %212 : vector<1x8x1xf32>
    %cst_66 = arith.constant 0.000000e+00 : f32
    %214 = vector.broadcast %cst_66 : f32 to vector<1x8x1xf32>
    %215 = arith.maximumf %213, %214 : vector<1x8x1xf32>
    %216 = vector.broadcast %206 : vector<1x8x1xf32> to vector<2x8x32xf32>
    %217 = arith.subf %202, %216 : vector<2x8x32xf32>
    %cst_67 = arith.constant 9.99999974E-6 : f32
    %218 = vector.broadcast %cst_67 : f32 to vector<1x8x1xf32>
    %219 = arith.addf %215, %218 : vector<1x8x1xf32>
    %220 = math.rsqrt %219 : vector<1x8x1xf32>
    %221 = vector.broadcast %220 : vector<1x8x1xf32> to vector<2x8x32xf32>
    %222 = arith.mulf %217, %221 : vector<2x8x32xf32>
    %223 = arith.truncf %222 : vector<2x8x32xf32> to vector<2x8x32xbf16>
    %cst_68 = arith.constant dense<0.000000e+00> : vector<2x8x32xf32>
    %224 = tpu.matmul %181, %223, %cst_68 {dimension_numbers = #tpu.dot_dimension_numbers<[2], [1], [1], [2], [0, 0, 0, 1, 1, 2], [0], [0]>} : vector<2x8x8xbf16>, vector<2x8x32xbf16>, vector<2x8x32xf32> -> vector<2x8x32xf32>
    %225 = vector.extract_strided_slice %3 {offsets = [104, 0], sizes = [32, 32], strides = [1, 1]} : vector<280x40xbf16> to vector<32x32xbf16>
    %226 = vector.extract_strided_slice %4 {offsets = [4, 0], sizes = [1, 32], strides = [1, 1]} : vector<10x40xf32> to vector<1x32xf32>
    %227 = arith.truncf %224 : vector<2x8x32xf32> to vector<2x8x32xbf16>
    %228 = vector.shape_cast %227 : vector<2x8x32xbf16> to vector<16x32xbf16>
    %cst_69 = arith.constant dense<0.000000e+00> : vector<16x32xf32>
    %229 = tpu.matmul %228, %225, %cst_69 {dimension_numbers = #tpu.dot_dimension_numbers<[1], [0], [0], [1], [0, 0, 1, 1], [], []>} : vector<16x32xbf16>, vector<32x32xbf16>, vector<16x32xf32> -> vector<16x32xf32>
    %230 = vector.shape_cast %229 : vector<16x32xf32> to vector<2x8x32xf32>
    %231 = vector.shape_cast %226 : vector<1x32xf32> to vector<1x1x32xf32>
    %232 = vector.broadcast %231 : vector<1x1x32xf32> to vector<2x8x32xf32>
    %233 = arith.addf %230, %232 : vector<2x8x32xf32>
    %234 = arith.mulf %233, %233 : vector<2x8x32xf32>
    %cst_70 = arith.constant dense<0.000000e+00> : vector<2x8xf32>
    %235 = vector.multi_reduction <add>, %234, %cst_70 [2] : vector<2x8x32xf32> to vector<2x8xf32>
    %236 = vector.shape_cast %235 : vector<2x8xf32> to vector<2x8x1xf32>
    %cst_71 = arith.constant 1.000000e-24 : f32
    %237 = vector.broadcast %cst_71 : f32 to vector<2x8x1xf32>
    %238 = arith.maximumf %236, %237 : vector<2x8x1xf32>
    %239 = math.rsqrt %238 : vector<2x8x1xf32>
    %240 = vector.broadcast %239 : vector<2x8x1xf32> to vector<2x8x32xf32>
    %241 = arith.mulf %233, %240 : vector<2x8x32xf32>
    %cst_72 = arith.constant 0.000000e+00 : f32
    %242 = vector.broadcast %cst_72 : f32 to vector<2x8x32xf32>
    %243 = arith.maximumf %241, %242 : vector<2x8x32xf32>
    %cst_73 = arith.constant dense<0.000000e+00> : vector<8xf32>
    %244 = vector.multi_reduction <add>, %243, %cst_73 [0, 2] : vector<2x8x32xf32> to vector<8xf32>
    %245 = vector.shape_cast %244 : vector<8xf32> to vector<1x8x1xf32>
    %cst_74 = arith.constant 1.562500e-02 : f32
    %246 = vector.broadcast %cst_74 : f32 to vector<1x8x1xf32>
    %247 = arith.mulf %245, %246 : vector<1x8x1xf32>
    %248 = arith.mulf %243, %243 : vector<2x8x32xf32>
    %cst_75 = arith.constant dense<0.000000e+00> : vector<8xf32>
    %249 = vector.multi_reduction <add>, %248, %cst_75 [0, 2] : vector<2x8x32xf32> to vector<8xf32>
    %250 = vector.shape_cast %249 : vector<8xf32> to vector<1x8x1xf32>
    %cst_76 = arith.constant 1.562500e-02 : f32
    %251 = vector.broadcast %cst_76 : f32 to vector<1x8x1xf32>
    %252 = arith.mulf %250, %251 : vector<1x8x1xf32>
    %253 = arith.mulf %247, %247 : vector<1x8x1xf32>
    %254 = arith.subf %252, %253 : vector<1x8x1xf32>
    %cst_77 = arith.constant 0.000000e+00 : f32
    %255 = vector.broadcast %cst_77 : f32 to vector<1x8x1xf32>
    %256 = arith.maximumf %254, %255 : vector<1x8x1xf32>
    %257 = vector.broadcast %247 : vector<1x8x1xf32> to vector<2x8x32xf32>
    %258 = arith.subf %243, %257 : vector<2x8x32xf32>
    %cst_78 = arith.constant 9.99999974E-6 : f32
    %259 = vector.broadcast %cst_78 : f32 to vector<1x8x1xf32>
    %260 = arith.addf %256, %259 : vector<1x8x1xf32>
    %261 = math.rsqrt %260 : vector<1x8x1xf32>
    %262 = vector.broadcast %261 : vector<1x8x1xf32> to vector<2x8x32xf32>
    %263 = arith.mulf %258, %262 : vector<2x8x32xf32>
    %264 = arith.truncf %263 : vector<2x8x32xf32> to vector<2x8x32xbf16>
    %cst_79 = arith.constant dense<0.000000e+00> : vector<2x8x32xf32>
    %265 = tpu.matmul %181, %264, %cst_79 {dimension_numbers = #tpu.dot_dimension_numbers<[2], [1], [1], [2], [0, 0, 0, 1, 1, 2], [0], [0]>} : vector<2x8x8xbf16>, vector<2x8x32xbf16>, vector<2x8x32xf32> -> vector<2x8x32xf32>
    %266 = vector.extract_strided_slice %3 {offsets = [136, 0], sizes = [32, 34], strides = [1, 1]} : vector<280x40xbf16> to vector<32x34xbf16>
    %267 = vector.extract_strided_slice %4 {offsets = [5, 0], sizes = [1, 34], strides = [1, 1]} : vector<10x40xf32> to vector<1x34xf32>
    %268 = arith.truncf %265 : vector<2x8x32xf32> to vector<2x8x32xbf16>
    %269 = vector.shape_cast %268 : vector<2x8x32xbf16> to vector<16x32xbf16>
    %cst_80 = arith.constant dense<0.000000e+00> : vector<16x34xf32>
    %270 = tpu.matmul %269, %266, %cst_80 {dimension_numbers = #tpu.dot_dimension_numbers<[1], [0], [0], [1], [0, 0, 1, 1], [], []>} : vector<16x32xbf16>, vector<32x34xbf16>, vector<16x34xf32> -> vector<16x34xf32>
    %271 = vector.shape_cast %270 : vector<16x34xf32> to vector<2x8x34xf32>
    %272 = vector.shape_cast %267 : vector<1x34xf32> to vector<1x1x34xf32>
    %273 = vector.broadcast %272 : vector<1x1x34xf32> to vector<2x8x34xf32>
    %274 = arith.addf %271, %273 : vector<2x8x34xf32>
    %275 = vector.extract_strided_slice %274 {offsets = [0, 0, 0], sizes = [2, 8, 32], strides = [1, 1, 1]} : vector<2x8x34xf32> to vector<2x8x32xf32>
    %276 = arith.mulf %275, %275 : vector<2x8x32xf32>
    %cst_81 = arith.constant dense<0.000000e+00> : vector<2x8xf32>
    %277 = vector.multi_reduction <add>, %276, %cst_81 [2] : vector<2x8x32xf32> to vector<2x8xf32>
    %278 = vector.shape_cast %277 : vector<2x8xf32> to vector<2x8x1xf32>
    %cst_82 = arith.constant 1.000000e-24 : f32
    %279 = vector.broadcast %cst_82 : f32 to vector<2x8x1xf32>
    %280 = arith.maximumf %278, %279 : vector<2x8x1xf32>
    %281 = math.rsqrt %280 : vector<2x8x1xf32>
    %282 = vector.broadcast %281 : vector<2x8x1xf32> to vector<2x8x32xf32>
    %283 = arith.mulf %275, %282 : vector<2x8x32xf32>
    %cst_83 = arith.constant 0.000000e+00 : f32
    %284 = vector.broadcast %cst_83 : f32 to vector<2x8x32xf32>
    %285 = arith.maximumf %283, %284 : vector<2x8x32xf32>
    %cst_84 = arith.constant dense<0.000000e+00> : vector<8xf32>
    %286 = vector.multi_reduction <add>, %285, %cst_84 [0, 2] : vector<2x8x32xf32> to vector<8xf32>
    %287 = vector.shape_cast %286 : vector<8xf32> to vector<1x8x1xf32>
    %cst_85 = arith.constant 1.562500e-02 : f32
    %288 = vector.broadcast %cst_85 : f32 to vector<1x8x1xf32>
    %289 = arith.mulf %287, %288 : vector<1x8x1xf32>
    %290 = arith.mulf %285, %285 : vector<2x8x32xf32>
    %cst_86 = arith.constant dense<0.000000e+00> : vector<8xf32>
    %291 = vector.multi_reduction <add>, %290, %cst_86 [0, 2] : vector<2x8x32xf32> to vector<8xf32>
    %292 = vector.shape_cast %291 : vector<8xf32> to vector<1x8x1xf32>
    %cst_87 = arith.constant 1.562500e-02 : f32
    %293 = vector.broadcast %cst_87 : f32 to vector<1x8x1xf32>
    %294 = arith.mulf %292, %293 : vector<1x8x1xf32>
    %295 = arith.mulf %289, %289 : vector<1x8x1xf32>
    %296 = arith.subf %294, %295 : vector<1x8x1xf32>
    %cst_88 = arith.constant 0.000000e+00 : f32
    %297 = vector.broadcast %cst_88 : f32 to vector<1x8x1xf32>
    %298 = arith.maximumf %296, %297 : vector<1x8x1xf32>
    %299 = vector.broadcast %289 : vector<1x8x1xf32> to vector<2x8x32xf32>
    %300 = arith.subf %285, %299 : vector<2x8x32xf32>
    %cst_89 = arith.constant 9.99999974E-6 : f32
    %301 = vector.broadcast %cst_89 : f32 to vector<1x8x1xf32>
    %302 = arith.addf %298, %301 : vector<1x8x1xf32>
    %303 = math.rsqrt %302 : vector<1x8x1xf32>
    %304 = vector.broadcast %303 : vector<1x8x1xf32> to vector<2x8x32xf32>
    %305 = arith.mulf %300, %304 : vector<2x8x32xf32>
    %306 = vector.extract_strided_slice %274 {offsets = [0, 0, 32], sizes = [2, 8, 2], strides = [1, 1, 1]} : vector<2x8x34xf32> to vector<2x8x2xf32>
    %307 = arith.mulf %306, %306 : vector<2x8x2xf32>
    %cst_90 = arith.constant dense<0.000000e+00> : vector<2x8xf32>
    %308 = vector.multi_reduction <add>, %307, %cst_90 [2] : vector<2x8x2xf32> to vector<2x8xf32>
    %309 = vector.shape_cast %308 : vector<2x8xf32> to vector<2x8x1xf32>
    %cst_91 = arith.constant 1.000000e-24 : f32
    %310 = vector.broadcast %cst_91 : f32 to vector<2x8x1xf32>
    %311 = arith.maximumf %309, %310 : vector<2x8x1xf32>
    %312 = math.rsqrt %311 : vector<2x8x1xf32>
    %313 = vector.broadcast %312 : vector<2x8x1xf32> to vector<2x8x2xf32>
    %314 = arith.mulf %306, %313 : vector<2x8x2xf32>
    %cst_92 = arith.constant 0.000000e+00 : f32
    %315 = vector.broadcast %cst_92 : f32 to vector<2x8x2xf32>
    %316 = arith.maximumf %314, %315 : vector<2x8x2xf32>
    %cst_93 = arith.constant dense<0.000000e+00> : vector<8xf32>
    %317 = vector.multi_reduction <add>, %316, %cst_93 [0, 2] : vector<2x8x2xf32> to vector<8xf32>
    %318 = vector.shape_cast %317 : vector<8xf32> to vector<1x8x1xf32>
    %cst_94 = arith.constant 2.500000e-01 : f32
    %319 = vector.broadcast %cst_94 : f32 to vector<1x8x1xf32>
    %320 = arith.mulf %318, %319 : vector<1x8x1xf32>
    %321 = arith.mulf %316, %316 : vector<2x8x2xf32>
    %cst_95 = arith.constant dense<0.000000e+00> : vector<8xf32>
    %322 = vector.multi_reduction <add>, %321, %cst_95 [0, 2] : vector<2x8x2xf32> to vector<8xf32>
    %323 = vector.shape_cast %322 : vector<8xf32> to vector<1x8x1xf32>
    %cst_96 = arith.constant 2.500000e-01 : f32
    %324 = vector.broadcast %cst_96 : f32 to vector<1x8x1xf32>
    %325 = arith.mulf %323, %324 : vector<1x8x1xf32>
    %326 = arith.mulf %320, %320 : vector<1x8x1xf32>
    %327 = arith.subf %325, %326 : vector<1x8x1xf32>
    %cst_97 = arith.constant 0.000000e+00 : f32
    %328 = vector.broadcast %cst_97 : f32 to vector<1x8x1xf32>
    %329 = arith.maximumf %327, %328 : vector<1x8x1xf32>
    %330 = vector.broadcast %320 : vector<1x8x1xf32> to vector<2x8x2xf32>
    %331 = arith.subf %316, %330 : vector<2x8x2xf32>
    %cst_98 = arith.constant 9.99999974E-6 : f32
    %332 = vector.broadcast %cst_98 : f32 to vector<1x8x1xf32>
    %333 = arith.addf %329, %332 : vector<1x8x1xf32>
    %334 = math.rsqrt %333 : vector<1x8x1xf32>
    %335 = vector.broadcast %334 : vector<1x8x1xf32> to vector<2x8x2xf32>
    %336 = arith.mulf %331, %335 : vector<2x8x2xf32>
    %cst_99 = arith.constant dense<0xFF800000> : vector<2x8xf32>
    %337 = vector.multi_reduction <maximumf>, %336, %cst_99 [2] : vector<2x8x2xf32> to vector<2x8xf32>
    %338 = vector.shape_cast %337 : vector<2x8xf32> to vector<2x8x1xf32>
    %339 = vector.broadcast %338 : vector<2x8x1xf32> to vector<2x8x2xf32>
    %340 = arith.subf %336, %339 : vector<2x8x2xf32>
    %341 = math.exp %340 : vector<2x8x2xf32>
    %cst_100 = arith.constant dense<0.000000e+00> : vector<2x8xf32>
    %342 = vector.multi_reduction <add>, %341, %cst_100 [2] : vector<2x8x2xf32> to vector<2x8xf32>
    %343 = vector.shape_cast %342 : vector<2x8xf32> to vector<2x8x1xf32>
    %344 = vector.broadcast %343 : vector<2x8x1xf32> to vector<2x8x2xf32>
    %345 = arith.divf %341, %344 : vector<2x8x2xf32>
    %346 = arith.truncf %345 : vector<2x8x2xf32> to vector<2x8x2xbf16>
    %347 = arith.truncf %305 : vector<2x8x32xf32> to vector<2x8x32xbf16>
    %cst_101 = arith.constant dense<0.000000e+00> : vector<2x2x32xf32>
    %348 = tpu.matmul %346, %347, %cst_101 {dimension_numbers = #tpu.dot_dimension_numbers<[1], [1], [2], [2], [0, 0, 0, 2, 1, 2], [0], [0]>} : vector<2x8x2xbf16>, vector<2x8x32xbf16>, vector<2x2x32xf32> -> vector<2x2x32xf32>
    %cst_102 = arith.constant dense<0.000000e+00> : vector<2x2x8xf32>
    %349 = tpu.matmul %346, %181, %cst_102 {dimension_numbers = #tpu.dot_dimension_numbers<[1], [1], [2], [2], [0, 0, 0, 2, 1, 2], [0], [0]>} : vector<2x8x2xbf16>, vector<2x8x8xbf16>, vector<2x2x8xf32> -> vector<2x2x8xf32>
    %350 = arith.truncf %349 : vector<2x2x8xf32> to vector<2x2x8xbf16>
    %cst_103 = arith.constant dense<0.000000e+00> : vector<2x2x2xf32>
    %351 = tpu.matmul %350, %346, %cst_103 {dimension_numbers = #tpu.dot_dimension_numbers<[2], [1], [1], [2], [0, 0, 0, 1, 1, 2], [0], [0]>} : vector<2x2x8xbf16>, vector<2x8x2xbf16>, vector<2x2x2xf32> -> vector<2x2x2xf32>
    %352 = arith.truncf %351 : vector<2x2x2xf32> to vector<2x2x2xbf16>
    %353 = arith.truncf %348 : vector<2x2x32xf32> to vector<2x2x32xbf16>
    %cst_104 = arith.constant dense<0.000000e+00> : vector<2x2x32xf32>
    %354 = tpu.matmul %352, %353, %cst_104 {dimension_numbers = #tpu.dot_dimension_numbers<[2], [1], [1], [2], [0, 0, 0, 1, 1, 2], [0], [0]>} : vector<2x2x2xbf16>, vector<2x2x32xbf16>, vector<2x2x32xf32> -> vector<2x2x32xf32>
    %355 = vector.extract_strided_slice %3 {offsets = [168, 0], sizes = [32, 32], strides = [1, 1]} : vector<280x40xbf16> to vector<32x32xbf16>
    %356 = vector.extract_strided_slice %4 {offsets = [6, 0], sizes = [1, 32], strides = [1, 1]} : vector<10x40xf32> to vector<1x32xf32>
    %357 = arith.truncf %354 : vector<2x2x32xf32> to vector<2x2x32xbf16>
    "tpu.trace_start"() <{level = 10 : i32, message = "bnf,fh->bnh"}> : () -> ()
    %cst_105 = arith.constant dense<0.000000e+00> : vector<2x2x32xf32>
    %358 = tpu.matmul %357, %355, %cst_105 {dimension_numbers = #tpu.dot_dimension_numbers<[2], [0], [0, 1], [1], [0, 0, 0, 1, 1, 1], [], []>} : vector<2x2x32xbf16>, vector<32x32xbf16>, vector<2x2x32xf32> -> vector<2x2x32xf32>
    "tpu.trace_stop"() : () -> ()
    %359 = vector.shape_cast %356 : vector<1x32xf32> to vector<1x1x32xf32>
    %360 = vector.broadcast %359 : vector<1x1x32xf32> to vector<2x2x32xf32>
    %361 = arith.addf %358, %360 : vector<2x2x32xf32>
    %362 = arith.mulf %361, %361 : vector<2x2x32xf32>
    %cst_106 = arith.constant dense<0.000000e+00> : vector<2x2xf32>
    %363 = vector.multi_reduction <add>, %362, %cst_106 [2] : vector<2x2x32xf32> to vector<2x2xf32>
    %364 = vector.shape_cast %363 : vector<2x2xf32> to vector<2x2x1xf32>
    %cst_107 = arith.constant 1.000000e-24 : f32
    %365 = vector.broadcast %cst_107 : f32 to vector<2x2x1xf32>
    %366 = arith.maximumf %364, %365 : vector<2x2x1xf32>
    %367 = math.rsqrt %366 : vector<2x2x1xf32>
    %368 = vector.broadcast %367 : vector<2x2x1xf32> to vector<2x2x32xf32>
    %369 = arith.mulf %361, %368 : vector<2x2x32xf32>
    %cst_108 = arith.constant 0.000000e+00 : f32
    %370 = vector.broadcast %cst_108 : f32 to vector<2x2x32xf32>
    %371 = arith.maximumf %369, %370 : vector<2x2x32xf32>
    %cst_109 = arith.constant dense<0.000000e+00> : vector<2xf32>
    %372 = vector.multi_reduction <add>, %371, %cst_109 [0, 2] : vector<2x2x32xf32> to vector<2xf32>
    %373 = vector.shape_cast %372 : vector<2xf32> to vector<1x2x1xf32>
    %cst_110 = arith.constant 1.562500e-02 : f32
    %374 = vector.broadcast %cst_110 : f32 to vector<1x2x1xf32>
    %375 = arith.mulf %373, %374 : vector<1x2x1xf32>
    %376 = arith.mulf %371, %371 : vector<2x2x32xf32>
    %cst_111 = arith.constant dense<0.000000e+00> : vector<2xf32>
    %377 = vector.multi_reduction <add>, %376, %cst_111 [0, 2] : vector<2x2x32xf32> to vector<2xf32>
    %378 = vector.shape_cast %377 : vector<2xf32> to vector<1x2x1xf32>
    %cst_112 = arith.constant 1.562500e-02 : f32
    %379 = vector.broadcast %cst_112 : f32 to vector<1x2x1xf32>
    %380 = arith.mulf %378, %379 : vector<1x2x1xf32>
    %381 = arith.mulf %375, %375 : vector<1x2x1xf32>
    %382 = arith.subf %380, %381 : vector<1x2x1xf32>
    %cst_113 = arith.constant 0.000000e+00 : f32
    %383 = vector.broadcast %cst_113 : f32 to vector<1x2x1xf32>
    %384 = arith.maximumf %382, %383 : vector<1x2x1xf32>
    %385 = vector.broadcast %375 : vector<1x2x1xf32> to vector<2x2x32xf32>
    %386 = arith.subf %371, %385 : vector<2x2x32xf32>
    %cst_114 = arith.constant 9.99999974E-6 : f32
    %387 = vector.broadcast %cst_114 : f32 to vector<1x2x1xf32>
    %388 = arith.addf %384, %387 : vector<1x2x1xf32>
    %389 = math.rsqrt %388 : vector<1x2x1xf32>
    %390 = vector.broadcast %389 : vector<1x2x1xf32> to vector<2x2x32xf32>
    %391 = arith.mulf %386, %390 : vector<2x2x32xf32>
    %392 = arith.truncf %391 : vector<2x2x32xf32> to vector<2x2x32xbf16>
    %cst_115 = arith.constant dense<0.000000e+00> : vector<2x2x32xf32>
    %393 = tpu.matmul %352, %392, %cst_115 {dimension_numbers = #tpu.dot_dimension_numbers<[2], [1], [1], [2], [0, 0, 0, 1, 1, 2], [0], [0]>} : vector<2x2x2xbf16>, vector<2x2x32xbf16>, vector<2x2x32xf32> -> vector<2x2x32xf32>
    %394 = vector.extract_strided_slice %3 {offsets = [200, 0], sizes = [32, 32], strides = [1, 1]} : vector<280x40xbf16> to vector<32x32xbf16>
    %395 = vector.extract_strided_slice %4 {offsets = [7, 0], sizes = [1, 32], strides = [1, 1]} : vector<10x40xf32> to vector<1x32xf32>
    %396 = arith.truncf %393 : vector<2x2x32xf32> to vector<2x2x32xbf16>
    "tpu.trace_start"() <{level = 10 : i32, message = "bnf,fh->bnh"}> : () -> ()
    %cst_116 = arith.constant dense<0.000000e+00> : vector<2x2x32xf32>
    %397 = tpu.matmul %396, %394, %cst_116 {dimension_numbers = #tpu.dot_dimension_numbers<[2], [0], [0, 1], [1], [0, 0, 0, 1, 1, 1], [], []>} : vector<2x2x32xbf16>, vector<32x32xbf16>, vector<2x2x32xf32> -> vector<2x2x32xf32>
    "tpu.trace_stop"() : () -> ()
    %398 = vector.shape_cast %395 : vector<1x32xf32> to vector<1x1x32xf32>
    %399 = vector.broadcast %398 : vector<1x1x32xf32> to vector<2x2x32xf32>
    %400 = arith.addf %397, %399 : vector<2x2x32xf32>
    %401 = arith.mulf %400, %400 : vector<2x2x32xf32>
    %cst_117 = arith.constant dense<0.000000e+00> : vector<2x2xf32>
    %402 = vector.multi_reduction <add>, %401, %cst_117 [2] : vector<2x2x32xf32> to vector<2x2xf32>
    %403 = vector.shape_cast %402 : vector<2x2xf32> to vector<2x2x1xf32>
    %cst_118 = arith.constant 1.000000e-24 : f32
    %404 = vector.broadcast %cst_118 : f32 to vector<2x2x1xf32>
    %405 = arith.maximumf %403, %404 : vector<2x2x1xf32>
    %406 = math.rsqrt %405 : vector<2x2x1xf32>
    %407 = vector.broadcast %406 : vector<2x2x1xf32> to vector<2x2x32xf32>
    %408 = arith.mulf %400, %407 : vector<2x2x32xf32>
    %cst_119 = arith.constant 0.000000e+00 : f32
    %409 = vector.broadcast %cst_119 : f32 to vector<2x2x32xf32>
    %410 = arith.maximumf %408, %409 : vector<2x2x32xf32>
    %cst_120 = arith.constant dense<0.000000e+00> : vector<2xf32>
    %411 = vector.multi_reduction <add>, %410, %cst_120 [0, 2] : vector<2x2x32xf32> to vector<2xf32>
    %412 = vector.shape_cast %411 : vector<2xf32> to vector<1x2x1xf32>
    %cst_121 = arith.constant 1.562500e-02 : f32
    %413 = vector.broadcast %cst_121 : f32 to vector<1x2x1xf32>
    %414 = arith.mulf %412, %413 : vector<1x2x1xf32>
    %415 = arith.mulf %410, %410 : vector<2x2x32xf32>
    %cst_122 = arith.constant dense<0.000000e+00> : vector<2xf32>
    %416 = vector.multi_reduction <add>, %415, %cst_122 [0, 2] : vector<2x2x32xf32> to vector<2xf32>
    %417 = vector.shape_cast %416 : vector<2xf32> to vector<1x2x1xf32>
    %cst_123 = arith.constant 1.562500e-02 : f32
    %418 = vector.broadcast %cst_123 : f32 to vector<1x2x1xf32>
    %419 = arith.mulf %417, %418 : vector<1x2x1xf32>
    %420 = arith.mulf %414, %414 : vector<1x2x1xf32>
    %421 = arith.subf %419, %420 : vector<1x2x1xf32>
    %cst_124 = arith.constant 0.000000e+00 : f32
    %422 = vector.broadcast %cst_124 : f32 to vector<1x2x1xf32>
    %423 = arith.maximumf %421, %422 : vector<1x2x1xf32>
    %424 = vector.broadcast %414 : vector<1x2x1xf32> to vector<2x2x32xf32>
    %425 = arith.subf %410, %424 : vector<2x2x32xf32>
    %cst_125 = arith.constant 9.99999974E-6 : f32
    %426 = vector.broadcast %cst_125 : f32 to vector<1x2x1xf32>
    %427 = arith.addf %423, %426 : vector<1x2x1xf32>
    %428 = math.rsqrt %427 : vector<1x2x1xf32>
    %429 = vector.broadcast %428 : vector<1x2x1xf32> to vector<2x2x32xf32>
    %430 = arith.mulf %425, %429 : vector<2x2x32xf32>
    %431 = vector.shape_cast %2 : vector<2x32xf32> to vector<1x2x32xf32>
    %432 = vector.broadcast %431 : vector<1x2x32xf32> to vector<2x2x32xf32>
    %433 = arith.mulf %430, %432 : vector<2x2x32xf32>
    %cst_126 = arith.constant dense<0.000000e+00> : vector<2x32xf32>
    %434 = vector.multi_reduction <add>, %433, %cst_126 [1] : vector<2x2x32xf32> to vector<2x32xf32>
    %cst_127 = arith.constant 2.000000e+00 : f32
    %435 = vector.broadcast %cst_127 : f32 to vector<2x32xf32>
    %436 = arith.divf %434, %435 : vector<2x32xf32>
    %437 = arith.truncf %436 : vector<2x32xf32> to vector<2x32xbf16>
    %438 = vector.extract_strided_slice %3 {offsets = [232, 0], sizes = [32, 16], strides = [1, 1]} : vector<280x40xbf16> to vector<32x16xbf16>
    %cst_128 = arith.constant dense<0.000000e+00> : vector<2x16xf32>
    %439 = tpu.matmul %437, %438, %cst_128 {dimension_numbers = #tpu.dot_dimension_numbers<[1], [0], [0], [1], [0, 0, 1, 1], [], []>} : vector<2x32xbf16>, vector<32x16xbf16>, vector<2x16xf32> -> vector<2x16xf32>
    %440 = vector.extract_strided_slice %4 {offsets = [8, 0], sizes = [1, 16], strides = [1, 1]} : vector<10x40xf32> to vector<1x16xf32>
    %441 = vector.broadcast %440 : vector<1x16xf32> to vector<2x16xf32>
    %442 = arith.addf %439, %441 : vector<2x16xf32>
    %cst_129 = arith.constant 0.000000e+00 : f32
    %443 = vector.broadcast %cst_129 : f32 to vector<2x16xf32>
    %444 = arith.maximumf %442, %443 : vector<2x16xf32>
    %445 = arith.truncf %444 : vector<2x16xf32> to vector<2x16xbf16>
    %446 = vector.extract_strided_slice %3 {offsets = [264, 0], sizes = [16, 4], strides = [1, 1]} : vector<280x40xbf16> to vector<16x4xbf16>
    %cst_130 = arith.constant dense<0.000000e+00> : vector<2x4xf32>
    %447 = tpu.matmul %445, %446, %cst_130 {dimension_numbers = #tpu.dot_dimension_numbers<[1], [0], [0], [1], [0, 0, 1, 1], [], []>} : vector<2x16xbf16>, vector<16x4xbf16>, vector<2x4xf32> -> vector<2x4xf32>
    %448 = vector.extract_strided_slice %4 {offsets = [9, 0], sizes = [1, 4], strides = [1, 1]} : vector<10x40xf32> to vector<1x4xf32>
    %449 = vector.broadcast %448 : vector<1x4xf32> to vector<2x4xf32>
    %450 = arith.addf %447, %449 : vector<2x4xf32>
    %cst_131 = arith.constant dense<0xFF800000> : vector<2xf32>
    %451 = vector.multi_reduction <maximumf>, %450, %cst_131 [1] : vector<2x4xf32> to vector<2xf32>
    %452 = vector.shape_cast %451 : vector<2xf32> to vector<2x1xf32>
    %453 = vector.broadcast %452 : vector<2x1xf32> to vector<2x4xf32>
    %454 = arith.subf %450, %453 : vector<2x4xf32>
    %455 = math.exp %454 : vector<2x4xf32>
    %cst_132 = arith.constant dense<0.000000e+00> : vector<2xf32>
    %456 = vector.multi_reduction <add>, %455, %cst_132 [1] : vector<2x4xf32> to vector<2xf32>
    %457 = vector.shape_cast %456 : vector<2xf32> to vector<2x1xf32>
    %458 = vector.broadcast %457 : vector<2x1xf32> to vector<2x4xf32>
    %459 = arith.divf %455, %458 : vector<2x4xf32>
    %c0_133 = arith.constant 0 : index
    %c0_134 = arith.constant 0 : index
    %460 = vector.load %arg5[%c0_133, %c0_134] : memref<2x4xf32, #tpu.memory_space<vmem>>, vector<2x4xf32>
    tpu.vector_store %arg5[%c0_133, %c0_134], %459 {strides = array<i32>} : memref<2x4xf32, #tpu.memory_space<vmem>>, vector<2x4xf32>,
    return
  }
}

</mosaic_0001>

<bundles_post_ra>
// kernel: diffpool_sage_forward.1
= control target key start
LH: loop header
LB: loop body
LE: loop exit
PB: predicated region body
PF: predicated region fallthrough
CT: control target
= control target key end

     0   :  { %vm90_vm0 = vcmask 261120   ;;  %s5285_s0 = inlined_call_operand.vmem [shape: f32[2,32,8], index: 0, kind: input, shape index: {}]   ;;  %s5286_s1 = inlined_call_operand.vmem [shape: bf16[2,32,32], index: 1, kind: input, shape index: {}]   ;;  %s5287_s2 = inlined_call_operand.vmem [shape: f32[2,32], index: 2, kind: input, shape index: {}]   ;;  %s5288_s3 = inlined_call_operand.vmem [shape: bf16[280,40], index: 3, kind: input, shape index: {}]   ;;  %s5289_s4 = inlined_call_operand.vmem [shape: f32[10,40], index: 4, kind: input, shape index: {}]   ;;  %s5290_s5 = inlined_call_operand.hbm [shape: f32[2,4], index: 5, kind: output, shape index: {}]  }
   0x1   :  { %v24_v0 = vld [vmem:[%s5285_s0 + $0x10] sm:$0xff]  ;;  %v25_v1 = vld [vmem:[%s5285_s0 + $0x18] sm:$0xff]  ;;  %v22_v2 = vld [vmem:[%s5285_s0] sm:$0xff] }
   0x2   :  { %v77_v3 = vpack.c.bf16 %v25_v1, %v24_v0  ;;  %v23_v4 = vld [vmem:[%s5285_s0 + $0x8] sm:$0xff]  ;;  %v28_v5 = vld [vmem:[%s5285_s0 + $0x30] sm:$0xff]  ;;  %v29_v6 = vld [vmem:[%s5285_s0 + $0x38] sm:$0xff] }
   0x3   :  { %v76_v7 = vpack.c.bf16 %v23_v4, %v22_v2  ;;  %v79_v8 = vpack.c.bf16 %v29_v6, %v28_v5  ;;  %v4324_v9 = vld [vmem:[%s5286_s1] sm:$0xff]   ;;  %v27_v11 = vld [vmem:[%s5285_s0 + $0x28] sm:$0xff]  ;;  %v4340_v14 = vld [vmem:[%s5286_s1 + $0x10] sm:$0xff]  }
   0x4   :  { %3752 = vmatprep.subr.bf16.mxu0 %v77_v3  ;;  %v26_v10 = vld [vmem:[%s5285_s0 + $0x20] sm:$0xff]  ;;  %v4335_v12 = vld [vmem:[%s5286_s1 + $0x8] sm:$0xff]   ;;  %3756 = vmatprep.mubr.msk.bf16.mxu0 %vm90_vm0, %v4324_v9  ;;  %v4347_v15 = vld [vmem:[%s5286_s1 + $0x18] sm:$0xff]  }
   0x5   :  { %3753 = vmatpush3.bf16.msra.mxu0 %v77_v3  ;;  %3760 = vmatprep.subr.bf16.mxu1 %v79_v8  ;;  %v78_v13 = vpack.c.bf16 %v27_v11, %v26_v10 }
   0x6   :  { %3754 = vmatprep.subr.bf16.mxu0 %v76_v7  ;;  %3761 = vmatpush3.bf16.msra.mxu1 %v79_v8 }
   0x7   :  { %3762 = vmatprep.subr.bf16.mxu1 %v78_v13  ;;  %3764 = vmatprep.mubr.msk.bf16.mxu1 %vm90_vm0, %v4340_v14 }
   0x9   :  { %3755 = vmatpush3.bf16.msra.mxu0 %v76_v7 }
   0xa   :  { %3763 = vmatpush3.bf16.msra.mxu1 %v78_v13 }
   0xc   :  { %3757 = vmatmul.mubr.msk.bf16.vlgmr.msra.gmra.mxu0 %vm90_vm0, %v4335_v12 }
   0xd   :  { %3765 = vmatmul.mubr.msk.bf16.vlgmr.msra.gmra.mxu1 %vm90_vm0, %v4347_v15 }
   0xe   :  { %3782 = vmatprep.mubr.msk.bf16.mxu1 %vm90_vm0, %v4324_v9 }
   0xf   :  { %10 = vsyncpa [#allocation3], 0  ;;  %v39_v16 = vld [vmem:[%s5288_s3] sm:$0xf]  ;;  %vm228_vm1 = vcmask 1043456   ;;  %vm215_vm2 = vcmask 64512   ;;  %v297_v30 = vlaneseq }
  0x10   :  { %4032 = vmatprep.subr.msk.bf16.mxu0 %vm228_vm1, %v39_v16  ;;  %v230_v17 = vsel %vm228_vm1, %v39_v16, 0  ;;  %v4374_v33 = vld [vmem:[%s5289_s4] sm:$0xff]  ;;  %s4267_s11 = smov 96   ;;  %vm1489_vm3 = vcmask 326912   ;;  %vm4269_vm4 = vmmov 0   ;;  %vm2528_vm5 = vcmask 15360  }
  0x11   :  { %3769 = vmatpush3.bf16.msra.mxu0 %v230_v17  ;;  %v4366_v31 = vshrl.u32 %v297_v30, 7  ;;  %vm2582_vm6 = vcmask 277760   ;;  %vm2934_vm7 = vcmask 1040384   ;;  %vm3125_vm8 = vcmask 254976  }
  0x12   :  { %vm3418_vm9 = vcmask 1041409   ;;  %vm3488_vm10 = vcmask 130048   ;;  %vm3532_vm11 = vcmask 25600  }
  0x13   :  { %v4369_v32 = vsub.s32 0, %v4366_v31 }
  0x15   :  { %v300_v34 = vrot.slane %v4374_v33, %v4369_v32 }
  0xcc   :  { %v3758_v18 = vpop.f32.mrf.mxu0 }
  0xcd   :  { %v3766_v19 = vpop.f32.mrf.mxu1 }
  0xce   :  { %v131_v20 = vpop.f32.mrf.mxu0 }
  0xcf   :  { %v196_v21 = vpop.f32.mrf.mxu1 }
  0xd0   :  { %v3759_v22 = vpop.f32.mrf.mxu0 }
  0xd1   :  { %v3767_v23 = vpop.f32.mrf.mxu1  ;;  %v212_v27 = vpack.c.bf16 %v3759_v22, %v3758_v18 }
  0xd2   :  { %v134_v24 = vpop.f32.mrf.mxu0  ;;  %v214_v29 = vpack.c.bf16 %v3767_v23, %v3766_v19 }
  0xd3   :  { %v211_v25 = vpack.c.bf16 %v134_v24, %v131_v20  ;;  %v199_v26 = vpop.f32.mrf.mxu1 }
  0xd4   :  { %v213_v28 = vpack.c.bf16 %v199_v26, %v196_v21 }
  0xd5   :  { %3770 = vmatprep.mubr.msk.bf16.mxu0 %vm215_vm2, %v211_v25 }
  0xd6   :  { %3771 = vmatmul.mubr.msk.bf16.vlgmr.msra.gmra.mxu0 %vm215_vm2, %v212_v27 }
  0xd7   :  { %3774 = vmatprep.mubr.msk.bf16.mxu0 %vm215_vm2, %v213_v28 }
  0xde   :  { %3775 = vmatmul.mubr.msk.bf16.gmra.mxu0 %vm215_vm2, %v214_v29 }
 0x196   :  { %v3772_v35 = vpop.f32.mrf.mxu0 }
 0x197   :  { %v303_v36 = vadd.f32 %v3772_v35, %v300_v34 }
 0x198   :  { %v266_v37 = vpop.f32.mrf.mxu0 }
 0x199   :  { %v4378_v38 = vadd.f32 %v300_v34, %v266_v37  ;;  %v311_v39 = vmul.f32 %v303_v36, %v303_v36 }
 0x19a   :  { %v3773_v40 = vpop.f32.mrf.mxu0 }
 0x19b   :  { %v304_v41 = vadd.f32 %v3773_v40, %v300_v34  ;;  %v323_v42 = vsel %vm90_vm0, %v311_v39, 0.0  ;;  %v309_v43 = vmul.f32 %v4378_v38, %v4378_v38 }
 0x19c   :  { %324 = vadd.xlane.f32.xlu0 %v323_v42  ;;  %v269_v44 = vpop.f32.mrf.mxu0 }
 0x19d   :  { %v4383_v45 = vadd.f32 %v300_v34, %v269_v44  ;;  %v317_v48 = vsel %vm90_vm0, %v309_v43, 0.0  ;;  %v312_v50 = vmul.f32 %v304_v41, %v304_v41 }
 0x19e   :  { %v3776_v46 = vpop.f32.mrf.mxu0 }
 0x19f   :  { %v307_v47 = vadd.f32 %v3776_v46, %v300_v34  ;;  %v310_v49 = vmul.f32 %v4383_v45, %v4383_v45  ;;  %v326_v57 = vsel %vm90_vm0, %v312_v50, 0.0 }
 0x1a0   :  { %318 = vadd.xlane.f32.xlu0 %v317_v48  ;;  %v282_v51 = vpop.f32.mrf.mxu0 }
 0x1a1   :  { %v305_v52 = vadd.f32 %v300_v34, %v282_v51  ;;  %v320_v53 = vsel %vm90_vm0, %v310_v49, 0.0  ;;  %v315_v54 = vmul.f32 %v307_v47, %v307_v47 }
 0x1a2   :  { %321 = vadd.xlane.f32.xlu1 %v320_v53  ;;  %v3777_v55 = vpop.f32.mrf.mxu0 }
 0x1a3   :  { %v308_v56 = vadd.f32 %v3777_v55, %v300_v34  ;;  %v313_v58 = vmul.f32 %v305_v52, %v305_v52  ;;  %v335_v61 = vsel %vm90_vm0, %v315_v54, 0.0 }
 0x1a4   :  { %327 = vadd.xlane.f32.xlu0 %v326_v57  ;;  %v285_v59 = vpop.f32.mrf.mxu0 }
 0x1a5   :  { %v4390_v60 = vadd.f32 %v300_v34, %v285_v59  ;;  %v316_v62 = vmul.f32 %v308_v56, %v308_v56  ;;  %v329_v63 = vsel %vm90_vm0, %v313_v58, 0.0 }
 0x1a6   :  { %336 = vadd.xlane.f32.xlu1 %v335_v61 }
 0x1a7   :  { %v338_v0 = vsel %vm90_vm0, %v316_v62, 0.0  ;;  %v314_v1 = vmul.f32 %v4390_v60, %v4390_v60  ;;  %v38_v62 = vld [vmem:[%s5287_s2] sm:$0x3] }
 0x1a8   :  { %330 = vadd.xlane.f32.xlu0 %v329_v63  ;;  %v468_v63 = vrot.slane %v38_v62, %v4369_v32 }
 0x1a9   :  { %v332_v2 = vsel %vm90_vm0, %v314_v1, 0.0  ;;  %v4442_v1 = vsub.s32 1, %v4366_v31 }
 0x1aa   :  { %339 = vadd.xlane.f32.xlu1 %v338_v0 }
 0x1ae   :  { %333 = vadd.xlane.f32.xlu1 %v332_v2 }
 0x225   :  { %v325_v3 = vpop.xlane.xlu0 %324 }
 0x226   :  { %v343_v4 = vmax.f32 %v325_v3, 1e-24 }
 0x228   :  { %4061 = vrsqrt.f32 %v343_v4  ;;  %v487_v4 = vrot.slane %v38_v62, %v4442_v1 }
 0x229   :  { %v319_v5 = vpop.xlane.xlu0 %318 }
 0x22a   :  { %v341_v10 = vmax.f32 %v319_v5, 1e-24 }
 0x22b   :  { %v4398_v6 = vpop.xlane.xlu1 %321 }
 0x22c   :  { %v342_v3 = vmax.f32 %v4398_v6, 1e-24 }
 0x22d   :  { %v328_v7 = vpop.xlane.xlu0 %327 }
 0x22e   :  { %v344_v8 = vmax.f32 %v328_v7, 1e-24 }
 0x22f   :  { %v337_v11 = vpop.xlane.xlu1 %336 }
 0x230   :  { %4063 = vrsqrt.f32 %v344_v8  ;;  %v347_v13 = vmax.f32 %v337_v11, 1e-24 }
 0x231   :  { %v331_v16 = vpop.xlane.xlu0 %330 }
 0x232   :  { %4065 = vrsqrt.f32 %v347_v13  ;;  %v345_v17 = vmax.f32 %v331_v16, 1e-24 }
 0x233   :  { %4067 = vrsqrt.f32 %v341_v10  ;;  %v340_v18 = vpop.xlane.xlu1 %339 }
 0x234   :  { %4069 = vrsqrt.f32 %v345_v17  ;;  %v348_v19 = vmax.f32 %v340_v18, 1e-24 }
 0x235   :  { %v4062_v20 = vpop.eup %4061 }
 0x236   :  { %4071 = vrsqrt.f32 %v348_v19  ;;  %v359_v21 = vmul.f32 %v4062_v20, %v303_v36 }
 0x237   :  { %v334_v0 = vpop.xlane.xlu1 %333 }
 0x238   :  { %v4400_v24 = vmax.f32 %v359_v21, 0.0  ;;  %v346_v2 = vmax.f32 %v334_v0, 1e-24 }
 0x23a   :  { %v383_v35 = vsel %vm90_vm0, %v4400_v24, 0.0  ;;  %v399_v37 = vmul.f32 %v4400_v24, %v4400_v24  ;;  %4073 = vrsqrt.f32 %v346_v2 }
 0x23b   :  { %4075 = vrsqrt.f32 %v342_v3 }
 0x23c   :  { %v415_v48 = vsel %vm90_vm0, %v399_v37, 0.0 }
 0x23d   :  { %v4064_v22 = vpop.eup %4063 }
 0x23e   :  { %v360_v27 = vmul.f32 %v4064_v22, %v304_v41 }
 0x23f   :  { %v4066_v23 = vpop.eup %4065 }
 0x240   :  { %v4068_v25 = vpop.eup %4067  ;;  %v363_v26 = vmul.f32 %v4066_v23, %v307_v47  ;;  %v4413_v42 = vmax.f32 %v360_v27, 0.0  ;;  %v4044_v27 = vld [vmem:[%s5288_s3 + $0xc] sm:$0xff]  }
 0x241   :  { %v4070_v28 = vpop.eup %4069  ;;  %v357_v36 = vmul.f32 %v4068_v25, %v4378_v38  ;;  %3794 = vmatprep.subr.bf16.mxu0 %v4044_v27 }
 0x242   :  { %v4402_v29 = vmax.f32 %v363_v26, 0.0  ;;  %v361_v30 = vmul.f32 %v4070_v28, %v305_v52  ;;  %v388_v38 = vsel %vm90_vm0, %v4413_v42, 0.0  ;;  %v400_v11 = vmul.f32 %v4413_v42, %v4413_v42  ;;  %3795 = vmatpush3.bf16.msra.mxu0 %v4044_v27 }
 0x243   :  { %v4072_v34 = vpop.eup %4071  ;;  %v4425_v50 = vmax.f32 %v357_v36, 0.0 }
 0x244   :  { %v384_v39 = vsel %vm90_vm0, %v4402_v29, 0.0  ;;  %v403_v40 = vmul.f32 %v4402_v29, %v4402_v29  ;;  %v364_v41 = vmul.f32 %v4072_v34, %v308_v56  ;;  %v4418_v47 = vmax.f32 %v361_v30, 0.0 }
 0x245   :  { %v385_v43 = vadd.f32 %v384_v39, %v383_v35  ;;  %v373_v55 = vsel %vm90_vm0, %v4425_v50, 0.0  ;;  %v397_v56 = vmul.f32 %v4425_v50, %v4425_v50  ;;  %v420_v17 = vsel %vm90_vm0, %v400_v11, 0.0 }
 0x246   :  { %v416_v44 = vsel %vm90_vm0, %v403_v40, 0.0  ;;  %v4416_v46 = vmax.f32 %v364_v41, 0.0  ;;  %v374_v53 = vsel %vm90_vm0, %v4418_v47, 0.0  ;;  %v401_v54 = vmul.f32 %v4418_v47, %v4418_v47 }
 0x247   :  { %386 = vadd.xlane.f32.xlu0 %v385_v43  ;;  %v417_v51 = vadd.f32 %v416_v44, %v415_v48  ;;  %v375_v57 = vadd.f32 %v374_v53, %v373_v55  ;;  %v405_v59 = vsel %vm90_vm0, %v397_v56, 0.0  ;;  %v4074_v5 = vpop.eup %4073 }
 0x248   :  { %v389_v49 = vsel %vm90_vm0, %v4416_v46, 0.0  ;;  %v406_v58 = vsel %vm90_vm0, %v401_v54, 0.0  ;;  %v4076_v7 = vpop.eup %4075  ;;  %v404_v8 = vmul.f32 %v4416_v46, %v4416_v46  ;;  %v362_v10 = vmul.f32 %v4074_v5, %v4390_v60 }
 0x249   :  { %v390_v52 = vadd.f32 %v389_v49, %v388_v38  ;;  %v407_v61 = vadd.f32 %v406_v58, %v405_v59  ;;  %v358_v13 = vmul.f32 %v4076_v7, %v4383_v45 }
 0x24a   :  { %v421_v6 = vsel %vm90_vm0, %v404_v8, 0.0  ;;  %v4453_v16 = vmax.f32 %v362_v10, 0.0 }
 0x24b   :  { %418 = vadd.xlane.f32.xlu0 %v417_v51  ;;  %391 = vadd.xlane.f32.xlu1 %v390_v52  ;;  %v4456_v18 = vmax.f32 %v358_v13, 0.0  ;;  %v422_v19 = vadd.f32 %v421_v6, %v420_v17 }
 0x24c   :  { %v379_v20 = vsel %vm90_vm0, %v4453_v16, 0.0  ;;  %v402_v60 = vmul.f32 %v4453_v16, %v4453_v16 }
 0x24d   :  { %v378_v21 = vsel %vm90_vm0, %v4456_v18, 0.0  ;;  %v398_v45 = vmul.f32 %v4456_v18, %v4456_v18 }
 0x24e   :  { %v380_v22 = vadd.f32 %v379_v20, %v378_v21  ;;  %v411_v23 = vsel %vm90_vm0, %v402_v60, 0.0 }
 0x24f   :  { %376 = vadd.xlane.f32.xlu0 %v375_v57  ;;  %v410_v25 = vsel %vm90_vm0, %v398_v45, 0.0 }
 0x250   :  { %v412_v26 = vadd.f32 %v411_v23, %v410_v25 }
 0x253   :  { %408 = vadd.xlane.f32.xlu0 %v407_v61 }
 0x25c   :  { %482 = vbcast.lane.b32.xlu1 %v468_v63, 280 }
 0x260   :  { %470 = vbcast.lane.b32.xlu1 %v468_v63, 256 }
 0x269   :  { %478 = vbcast.lane.b32.xlu0 %v468_v63, 272 }
 0x26d   :  { %497 = vbcast.lane.b32.xlu0 %v487_v4, 272 }
 0x271   :  { %489 = vbcast.lane.b32.xlu0 %v487_v4, 256 }
 0x284   :  { %423 = vadd.xlane.f32.xlu1 %v422_v19 }
 0x288   :  { %381 = vadd.xlane.f32.xlu1 %v380_v22 }
 0x28c   :  { %413 = vadd.xlane.f32.xlu1 %v412_v26 }
 0x29d   :  { %474 = vbcast.lane.b32.xlu1 %v468_v63, 264 }
 0x2a1   :  { %501 = vbcast.lane.b32.xlu1 %v487_v4, 280 }
 0x2a5   :  { %493 = vbcast.lane.b32.xlu1 %v487_v4, 264 }
 0x2d0   :  { %v387_v28 = vpop.xlane.xlu0 %386 }
 0x2d1   :  { %v395_v35 = vmul.f32 0.015625, %v387_v28 }
 0x2d3   :  { %v431_v40 = vmul.f32 %v395_v35, %v395_v35  ;;  %v443_v13 = vsub.f32 %v4400_v24, %v395_v35  ;;  %v447_v24 = vsub.f32 %v4402_v29, %v395_v35 }
 0x2d4   :  { %v419_v30 = vpop.xlane.xlu0 %418  ;;  %v392_v34 = vpop.xlane.xlu1 %391 }
 0x2d5   :  { %v427_v36 = vmul.f32 0.015625, %v419_v30  ;;  %v396_v49 = vmul.f32 0.015625, %v392_v34 }
 0x2d7   :  { %v435_v41 = vsub.f32 %v427_v36, %v431_v40  ;;  %v432_v56 = vmul.f32 %v396_v49, %v396_v49  ;;  %v444_v6 = vsub.f32 %v4413_v42, %v396_v49  ;;  %v448_v25 = vsub.f32 %v4416_v46, %v396_v49 }
 0x2d8   :  { %v377_v37 = vpop.xlane.xlu0 %376  ;;  %v4471_v39 = vpop.permute.xlu1 %482 }
 0x2d9   :  { %v393_v44 = vmul.f32 0.015625, %v377_v37  ;;  %v439_v38 = vmax.f32 %v435_v41, 0.0 }
 0x2db   :  { %v429_v52 = vmul.f32 %v393_v44, %v393_v44  ;;  %v451_v54 = vadd.f32 1e-05, %v439_v38  ;;  %v441_v26 = vsub.f32 %v4425_v50, %v393_v44  ;;  %v445_v46 = vsub.f32 %v4418_v47, %v393_v44 }
 0x2dc   :  { %v409_v43 = vpop.xlane.xlu0 %408  ;;  %v4473_v48 = vpop.permute.xlu1 %470 }
 0x2dd   :  { %v425_v51 = vmul.f32 0.015625, %v409_v43  ;;  %4077 = vrsqrt.f32 %v451_v54 }
 0x2df   :  { %v433_v55 = vsub.f32 %v425_v51, %v429_v52 }
 0x2e0   :  { %v4477_v60 = vpop.permute.xlu0 %478 }
 0x2e1   :  { %v437_v61 = vmax.f32 %v433_v55, 0.0  ;;  %v4045_v55 = vld [vmem:[%s5288_s3 + $0x4] sm:$0xff]  }
 0x2e2   :  { %3796 = vmatprep.subr.bf16.mxu0 %v4045_v55 }
 0x2e3   :  { %v449_v3 = vadd.f32 1e-05, %v437_v61  ;;  %3797 = vmatpush3.bf16.msra.mxu0 %v4045_v55 }
 0x2e4   :  { %v4491_v43 = vpop.permute.xlu0 %497 }
 0x2ea   :  { %v4078_v11 = vpop.eup %4077 }
 0x2eb   :  { %v459_v17 = vmul.f32 %v4078_v11, %v443_v13  ;;  %v463_v36 = vmul.f32 %v4078_v11, %v447_v24 }
 0x2ed   :  { %v505_v45 = vmul.f32 %v4477_v60, %v459_v17  ;;  %v509_v49 = vmul.f32 %v4491_v43, %v463_v36 }
 0x30d   :  { %v424_v53 = vpop.xlane.xlu1 %423 }
 0x30e   :  { %v428_v57 = vmul.f32 0.015625, %v424_v53  ;;  %v4499_v53 = vpop.permute.xlu0 %489 }
 0x310   :  { %v436_v58 = vsub.f32 %v428_v57, %v432_v56 }
 0x311   :  { %v382_v59 = vpop.xlane.xlu1 %381 }
 0x312   :  { %v440_v62 = vmax.f32 %v436_v58, 0.0  ;;  %v394_v63 = vmul.f32 0.015625, %v382_v59 }
 0x314   :  { %v452_v0 = vadd.f32 1e-05, %v440_v62  ;;  %v430_v4 = vmul.f32 %v394_v63, %v394_v63  ;;  %v442_v28 = vsub.f32 %v4456_v18, %v394_v63  ;;  %v446_v40 = vsub.f32 %v4453_v16, %v394_v63 }
 0x315   :  { %v414_v2 = vpop.xlane.xlu1 %413 }
 0x316   :  { %4079 = vrsqrt.f32 %v452_v0  ;;  %v426_v5 = vmul.f32 0.015625, %v414_v2  ;;  %v709_v2 = vrot.slane %v4374_v33, %v4442_v1 }
 0x317   :  { %4081 = vrsqrt.f32 %v449_v3 }
 0x318   :  { %v434_v7 = vsub.f32 %v426_v5, %v430_v4 }
 0x319   :  { %v4479_v21 = vpop.permute.xlu1 %474 }
 0x31a   :  { %v438_v8 = vmax.f32 %v434_v7, 0.0 }
 0x31c   :  { %v450_v10 = vadd.f32 1e-05, %v438_v8 }
 0x31d   :  { %v4487_v37 = vpop.permute.xlu1 %501 }
 0x31e   :  { %4083 = vrsqrt.f32 %v450_v10 }
 0x321   :  { %v4496_v38 = vpop.permute.xlu1 %493 }
 0x323   :  { %v4080_v19 = vpop.eup %4079 }
 0x324   :  { %v460_v20 = vmul.f32 %v4080_v19, %v444_v6  ;;  %v4082_v23 = vpop.eup %4081  ;;  %v464_v30 = vmul.f32 %v4080_v19, %v448_v25 }
 0x325   :  { %v457_v42 = vmul.f32 %v4082_v23, %v441_v26  ;;  %v461_v51 = vmul.f32 %v4082_v23, %v445_v46 }
 0x326   :  { %v506_v22 = vmul.f32 %v4471_v39, %v460_v20  ;;  %v510_v18 = vmul.f32 %v4487_v37, %v464_v30 }
 0x327   :  { %v503_v50 = vmul.f32 %v4473_v48, %v457_v42  ;;  %v507_v44 = vmul.f32 %v4499_v53, %v461_v51 }
 0x328   :  { %v512_v27 = vpack.c.bf16 %v506_v22, %v505_v45  ;;  %v514_v47 = vpack.c.bf16 %v510_v18, %v509_v49 }
 0x32a   :  { %3778 = vmatprep.subr.bf16.mxu1 %v512_v27 }
 0x32b   :  { %v4084_v34 = vpop.eup %4083  ;;  %3779 = vmatpush3.bf16.msra.mxu1 %v512_v27 }
 0x32c   :  { %v458_v41 = vmul.f32 %v4084_v34, %v442_v28  ;;  %v462_v35 = vmul.f32 %v4084_v34, %v446_v40 }
 0x32e   :  { %v504_v29 = vmul.f32 %v4479_v21, %v458_v41  ;;  %v508_v16 = vmul.f32 %v4496_v38, %v462_v35 }
 0x330   :  { %v511_v52 = vpack.c.bf16 %v504_v29, %v503_v50  ;;  %v513_v54 = vpack.c.bf16 %v508_v16, %v507_v44 }
 0x332   :  { %3780 = vmatprep.subr.bf16.mxu1 %v511_v52 }
 0x333   :  { %3781 = vmatpush3.bf16.msra.mxu1 %v511_v52 }
 0x334   :  { %3786 = vmatprep.subr.bf16.mxu1 %v514_v47 }
 0x336   :  { %3783 = vmatmul.mubr.msk.bf16.vlgmr.msra.gmra.mxu1 %vm90_vm0, %v4335_v12 }
 0x337   :  { %3787 = vmatpush3.bf16.msra.mxu1 %v514_v47  ;;  %3790 = vmatprep.mubr.msk.bf16.mxu1 %vm90_vm0, %v4340_v14 }
 0x338   :  { %3788 = vmatprep.subr.bf16.mxu1 %v513_v54 }
 0x33b   :  { %3789 = vmatpush3.bf16.msra.mxu1 %v513_v54 }
 0x33e   :  { %3791 = vmatmul.mubr.msk.bf16.vlgmr.msra.gmra.mxu1 %vm90_vm0, %v4347_v15 }
 0x33f   :  { %3810 = vmatprep.mubr.msk.bf16.mxu1 %vm90_vm0, %v4324_v9 }
 0x3f6   :  { %v3784_v12 = vpop.f32.mrf.mxu1 }
 0x3f8   :  { %v549_v56 = vpop.f32.mrf.mxu1 }
 0x3fa   :  { %v3785_v57 = vpop.f32.mrf.mxu1 }
 0x3fb   :  { %v614_v14 = vpack.c.bf16 %v3785_v57, %v3784_v12 }
 0x3fc   :  { %v552_v58 = vpop.f32.mrf.mxu1 }
 0x3fd   :  { %v613_v59 = vpack.c.bf16 %v552_v58, %v549_v56 }
 0x3fe   :  { %v3792_v61 = vpop.f32.mrf.mxu1 }
 0x3ff   :  { %3798 = vmatprep.mubr.msk.bf16.mxu0 %vm90_vm0, %v613_v59 }
 0x400   :  { %v598_v62 = vpop.f32.mrf.mxu1  ;;  %3799 = vmatmul.mubr.msk.bf16.vlgmr.msra.gmra.mxu0 %vm90_vm0, %v614_v14 }
 0x402   :  { %v3793_v15 = vpop.f32.mrf.mxu1 }
 0x403   :  { %v616_v0 = vpack.c.bf16 %v3793_v15, %v3792_v61 }
 0x404   :  { %v601_v9 = vpop.f32.mrf.mxu1 }
 0x405   :  { %v615_v63 = vpack.c.bf16 %v601_v9, %v598_v62 }
 0x407   :  { %3802 = vmatprep.mubr.msk.bf16.mxu0 %vm90_vm0, %v615_v63 }
 0x408   :  { %3803 = vmatmul.mubr.msk.bf16.gmra.mxu0 %vm90_vm0, %v616_v0 }
 0x4c0   :  { %v3800_v3 = vpop.f32.mrf.mxu0 }
 0x4c1   :  { %v4520_v4 = vadd.f32 %v3800_v3, %v709_v2 }
 0x4c2   :  { %v675_v5 = vpop.f32.mrf.mxu0 }
 0x4c3   :  { %v4522_v7 = vadd.f32 %v709_v2, %v675_v5  ;;  %v720_v8 = vmul.f32 %v4520_v4, %v4520_v4 }
 0x4c4   :  { %v3801_v10 = vpop.f32.mrf.mxu0 }
 0x4c5   :  { %v4526_v11 = vadd.f32 %v3801_v10, %v709_v2  ;;  %v732_v13 = vsel %vm90_vm0, %v720_v8, 0.0  ;;  %v718_v6 = vmul.f32 %v4522_v7, %v4522_v7 }
 0x4c6   :  { %733 = vadd.xlane.f32.xlu0 %v732_v13  ;;  %v678_v17 = vpop.f32.mrf.mxu0 }
 0x4c7   :  { %v4531_v19 = vadd.f32 %v709_v2, %v678_v17  ;;  %v721_v20 = vmul.f32 %v4526_v11, %v4526_v11  ;;  %v726_v23 = vsel %vm90_vm0, %v718_v6, 0.0 }
 0x4c8   :  { %v3804_v45 = vpop.f32.mrf.mxu0 }
 0x4c9   :  { %v716_v22 = vadd.f32 %v3804_v45, %v709_v2  ;;  %v735_v25 = vsel %vm90_vm0, %v721_v20, 0.0  ;;  %v719_v26 = vmul.f32 %v4531_v19, %v4531_v19 }
 0x4ca   :  { %727 = vadd.xlane.f32.xlu0 %v726_v23  ;;  %736 = vadd.xlane.f32.xlu1 %v735_v25  ;;  %v691_v27 = vpop.f32.mrf.mxu0 }
 0x4cb   :  { %v724_v24 = vmul.f32 %v716_v22, %v716_v22  ;;  %v4539_v28 = vadd.f32 %v709_v2, %v691_v27  ;;  %v729_v34 = vsel %vm90_vm0, %v719_v26, 0.0 }
 0x4cc   :  { %v3805_v42 = vpop.f32.mrf.mxu0 }
 0x4cd   :  { %v717_v30 = vadd.f32 %v3805_v42, %v709_v2  ;;  %v744_v36 = vsel %vm90_vm0, %v724_v24, 0.0  ;;  %v722_v18 = vmul.f32 %v4539_v28, %v4539_v28 }
 0x4ce   :  { %730 = vadd.xlane.f32.xlu1 %v729_v34  ;;  %745 = vadd.xlane.f32.xlu0 %v744_v36  ;;  %v694_v40 = vpop.f32.mrf.mxu0 }
 0x4cf   :  { %v715_v41 = vadd.f32 %v709_v2, %v694_v40  ;;  %v725_v46 = vmul.f32 %v717_v30, %v717_v30  ;;  %v738_v49 = vsel %vm90_vm0, %v722_v18, 0.0 }
 0x4d1   :  { %v747_v50 = vsel %vm90_vm0, %v725_v46, 0.0  ;;  %v723_v29 = vmul.f32 %v715_v41, %v715_v41 }
 0x4d2   :  { %748 = vadd.xlane.f32.xlu0 %v747_v50 }
 0x4d3   :  { %v741_v35 = vsel %vm90_vm0, %v723_v29, 0.0 }
 0x4d4   :  { %742 = vadd.xlane.f32.xlu1 %v741_v35 }
 0x4d6   :  { %739 = vadd.xlane.f32.xlu0 %v738_v49 }
 0x54f   :  { %v734_v51 = vpop.xlane.xlu0 %733 }
 0x550   :  { %v752_v52 = vmax.f32 %v734_v51, 1e-24 }
 0x552   :  { %4085 = vrsqrt.f32 %v752_v52 }
 0x553   :  { %v728_v16 = vpop.xlane.xlu0 %727  ;;  %v737_v47 = vpop.xlane.xlu1 %736 }
 0x554   :  { %v753_v44 = vmax.f32 %v737_v47, 1e-24  ;;  %v750_v54 = vmax.f32 %v728_v16, 1e-24 }
 0x556   :  { %4087 = vrsqrt.f32 %v753_v44 }
 0x557   :  { %v746_v55 = vpop.xlane.xlu0 %745  ;;  %v731_v56 = vpop.xlane.xlu1 %730 }
 0x558   :  { %v756_v12 = vmax.f32 %v746_v55, 1e-24  ;;  %v751_v57 = vmax.f32 %v731_v56, 1e-24 }
 0x55a   :  { %4089 = vrsqrt.f32 %v756_v12 }
 0x55b   :  { %4091 = vrsqrt.f32 %v750_v54  ;;  %v749_v58 = vpop.xlane.xlu0 %748 }
 0x55c   :  { %v757_v59 = vmax.f32 %v749_v58, 1e-24 }
 0x55d   :  { %v743_v14 = vpop.xlane.xlu1 %742 }
 0x55e   :  { %4093 = vrsqrt.f32 %v757_v59  ;;  %v755_v61 = vmax.f32 %v743_v14, 1e-24 }
 0x55f   :  { %4095 = vrsqrt.f32 %v751_v57  ;;  %v740_v62 = vpop.xlane.xlu0 %739  ;;  %v4086_v15 = vpop.eup %4085 }
 0x560   :  { %4097 = vrsqrt.f32 %v755_v61  ;;  %v754_v9 = vmax.f32 %v740_v62, 1e-24  ;;  %v768_v63 = vmul.f32 %v4086_v15, %v4520_v4 }
 0x562   :  { %4099 = vrsqrt.f32 %v754_v9  ;;  %v4549_v3 = vmax.f32 %v768_v63, 0.0 }
 0x563   :  { %v4088_v0 = vpop.eup %4087 }
 0x564   :  { %v769_v5 = vmul.f32 %v4088_v0, %v4526_v11  ;;  %v808_v17 = vmul.f32 %v4549_v3, %v4549_v3  ;;  %v792_v4 = vsel %vm90_vm0, %v4549_v3, 0.0 }
 0x566   :  { %v4556_v20 = vmax.f32 %v769_v5, 0.0  ;;  %v4046_v5 = vld [vmem:[%s5288_s3 + $0x1c] sm:$0xff]  }
 0x567   :  { %v4090_v2 = vpop.eup %4089  ;;  %3822 = vmatprep.subr.bf16.mxu0 %v4046_v5 }
 0x568   :  { %v4092_v8 = vpop.eup %4091  ;;  %v772_v10 = vmul.f32 %v4090_v2, %v716_v22  ;;  %v797_v40 = vsel %vm90_vm0, %v4556_v20, 0.0  ;;  %v809_v50 = vmul.f32 %v4556_v20, %v4556_v20  ;;  %3823 = vmatpush3.bf16.msra.mxu0 %v4046_v5 }
 0x569   :  { %v766_v45 = vmul.f32 %v4092_v8, %v4522_v7  ;;  %v824_v7 = vsel %vm90_vm0, %v808_v17, 0.0 }
 0x56a   :  { %v4552_v13 = vmax.f32 %v772_v10, 0.0 }
 0x56b   :  { %v4094_v6 = vpop.eup %4093  ;;  %v4571_v46 = vmax.f32 %v766_v45, 0.0 }
 0x56c   :  { %v4096_v23 = vpop.eup %4095  ;;  %v793_v25 = vsel %vm90_vm0, %v4552_v13, 0.0  ;;  %v812_v11 = vmul.f32 %v4552_v13, %v4552_v13  ;;  %v773_v22 = vmul.f32 %v4094_v6, %v717_v30 }
 0x56d   :  { %v4098_v26 = vpop.eup %4097  ;;  %v794_v27 = vadd.f32 %v793_v25, %v792_v4  ;;  %v767_v18 = vmul.f32 %v4096_v23, %v4531_v19  ;;  %v782_v47 = vsel %vm90_vm0, %v4571_v46, 0.0  ;;  %v829_v19 = vsel %vm90_vm0, %v809_v50, 0.0 }
 0x56e   :  { %v825_v24 = vsel %vm90_vm0, %v812_v11, 0.0  ;;  %v4566_v42 = vmax.f32 %v773_v22, 0.0  ;;  %v771_v34 = vmul.f32 %v4098_v26, %v715_v41 }
 0x56f   :  { %v4100_v36 = vpop.eup %4099  ;;  %795 = vadd.xlane.f32.xlu0 %v794_v27  ;;  %v826_v35 = vadd.f32 %v825_v24, %v824_v7  ;;  %v4595_v55 = vmax.f32 %v767_v18, 0.0 }
 0x570   :  { %v798_v30 = vsel %vm90_vm0, %v4566_v42, 0.0  ;;  %v770_v29 = vmul.f32 %v4100_v36, %v4539_v28  ;;  %v813_v41 = vmul.f32 %v4566_v42, %v4566_v42  ;;  %v4584_v16 = vmax.f32 %v771_v34, 0.0 }
 0x571   :  { %v799_v49 = vadd.f32 %v798_v30, %v797_v40  ;;  %v806_v28 = vmul.f32 %v4571_v46, %v4571_v46  ;;  %v787_v61 = vsel %vm90_vm0, %v4595_v55, 0.0  ;;  %v807_v62 = vmul.f32 %v4595_v55, %v4595_v55 }
 0x572   :  { %v4581_v51 = vmax.f32 %v770_v29, 0.0  ;;  %v830_v52 = vsel %vm90_vm0, %v813_v41, 0.0  ;;  %v788_v58 = vsel %vm90_vm0, %v4584_v16, 0.0  ;;  %v811_v59 = vmul.f32 %v4584_v16, %v4584_v16 }
 0x573   :  { %827 = vadd.xlane.f32.xlu0 %v826_v35  ;;  %800 = vadd.xlane.f32.xlu1 %v799_v49  ;;  %v831_v56 = vadd.f32 %v830_v52, %v829_v19  ;;  %v814_v14 = vsel %vm90_vm0, %v806_v28, 0.0  ;;  %v789_v9 = vadd.f32 %v788_v58, %v787_v61  ;;  %v819_v0 = vsel %vm90_vm0, %v807_v62, 0.0 }
 0x574   :  { %v783_v44 = vsel %vm90_vm0, %v4581_v51, 0.0  ;;  %v810_v54 = vmul.f32 %v4581_v51, %v4581_v51  ;;  %v820_v63 = vsel %vm90_vm0, %v811_v59, 0.0 }
 0x575   :  { %v784_v12 = vadd.f32 %v783_v44, %v782_v47  ;;  %v821_v2 = vadd.f32 %v820_v63, %v819_v0 }
 0x576   :  { %v815_v57 = vsel %vm90_vm0, %v810_v54, 0.0 }
 0x577   :  { %785 = vadd.xlane.f32.xlu0 %v784_v12  ;;  %832 = vadd.xlane.f32.xlu1 %v831_v56  ;;  %v816_v15 = vadd.f32 %v815_v57, %v814_v14 }
 0x57b   :  { %817 = vadd.xlane.f32.xlu0 %v816_v15  ;;  %790 = vadd.xlane.f32.xlu1 %v789_v9 }
 0x57f   :  { %822 = vadd.xlane.f32.xlu1 %v821_v2 }
 0x5f8   :  { %v796_v8 = vpop.xlane.xlu0 %795 }
 0x5f9   :  { %v804_v10 = vmul.f32 0.015625, %v796_v8 }
 0x5fb   :  { %v840_v45 = vmul.f32 %v804_v10, %v804_v10  ;;  %v852_v58 = vsub.f32 %v4549_v3, %v804_v10  ;;  %v856_v8 = vsub.f32 %v4552_v13, %v804_v10 }
 0x5fc   :  { %v828_v6 = vpop.xlane.xlu0 %827  ;;  %v801_v17 = vpop.xlane.xlu1 %800 }
 0x5fd   :  { %v836_v23 = vmul.f32 0.015625, %v828_v6  ;;  %v805_v4 = vmul.f32 0.015625, %v801_v17 }
 0x5ff   :  { %v844_v25 = vsub.f32 %v836_v23, %v840_v45  ;;  %v841_v24 = vmul.f32 %v805_v4, %v805_v4  ;;  %v853_v59 = vsub.f32 %v4556_v20, %v805_v4  ;;  %v857_v0 = vsub.f32 %v4566_v42, %v805_v4 }
 0x600   :  { %v786_v11 = vpop.xlane.xlu0 %785  ;;  %v833_v22 = vpop.xlane.xlu1 %832 }
 0x601   :  { %v848_v26 = vmax.f32 %v844_v25, 0.0  ;;  %v802_v27 = vmul.f32 0.015625, %v786_v11  ;;  %v837_v34 = vmul.f32 0.015625, %v833_v22 }
 0x603   :  { %v860_v36 = vadd.f32 1e-05, %v848_v26  ;;  %v845_v7 = vsub.f32 %v837_v34, %v841_v24  ;;  %v838_v40 = vmul.f32 %v802_v27, %v802_v27  ;;  %v850_v2 = vsub.f32 %v4571_v46, %v802_v27 }
 0x604   :  { %v818_v50 = vpop.xlane.xlu0 %817  ;;  %v791_v30 = vpop.xlane.xlu1 %790 }
 0x605   :  { %4101 = vrsqrt.f32 %v860_v36  ;;  %v849_v29 = vmax.f32 %v845_v7, 0.0  ;;  %v834_v41 = vmul.f32 0.015625, %v818_v50  ;;  %v803_v18 = vmul.f32 0.015625, %v791_v30 }
 0x607   :  { %v861_v35 = vadd.f32 1e-05, %v849_v29  ;;  %v842_v49 = vsub.f32 %v834_v41, %v838_v40  ;;  %v839_v28 = vmul.f32 %v803_v18, %v803_v18  ;;  %v851_v6 = vsub.f32 %v4595_v55, %v803_v18 }
 0x608   :  { %v823_v52 = vpop.xlane.xlu1 %822  ;;  %v855_v45 = vsub.f32 %v4584_v16, %v803_v18  ;;  %v1079_v41 = vsub.s32 2, %v4366_v31 }
 0x609   :  { %4103 = vrsqrt.f32 %v861_v35  ;;  %v846_v47 = vmax.f32 %v842_v49, 0.0  ;;  %v835_v44 = vmul.f32 0.015625, %v823_v52 }
 0x60a   :  { %v1080_v18 = vrot.slane %v4374_v33, %v1079_v41 }
 0x60b   :  { %v858_v19 = vadd.f32 1e-05, %v846_v47  ;;  %v843_v54 = vsub.f32 %v835_v44, %v839_v28 }
 0x60d   :  { %4105 = vrsqrt.f32 %v858_v19  ;;  %v847_v12 = vmax.f32 %v843_v54, 0.0 }
 0x60f   :  { %v859_v56 = vadd.f32 1e-05, %v847_v12 }
 0x611   :  { %4107 = vrsqrt.f32 %v859_v56 }
 0x612   :  { %v4102_v57 = vpop.eup %4101 }
 0x613   :  { %v868_v14 = vmul.f32 %v4102_v57, %v852_v58  ;;  %v872_v23 = vmul.f32 %v4102_v57, %v856_v8 }
 0x615   :  { %v876_v15 = vmul.f32 %v868_v14, %v4477_v60  ;;  %v880_v55 = vmul.f32 %v872_v23, %v4491_v43  ;;  %v4239_v43 = vld [vmem:[%s5286_s1 + $0x18] sm:$0xff]  }
 0x616   :  { %v4104_v61 = vpop.eup %4103 }
 0x617   :  { %v869_v62 = vmul.f32 %v4104_v61, %v853_v59  ;;  %v873_v20 = vmul.f32 %v4104_v61, %v857_v0 }
 0x619   :  { %v877_v9 = vmul.f32 %v869_v62, %v4471_v39  ;;  %v854_v39 = vsub.f32 %v4581_v51, %v802_v27  ;;  %v881_v4 = vmul.f32 %v873_v20, %v4487_v37  ;;  %v4238_v37 = vld [vmem:[%s5286_s1 + $0x10] sm:$0xff]  }
 0x61a   :  { %v4106_v63 = vpop.eup %4105 }
 0x61b   :  { %v883_v5 = vpack.c.bf16 %v877_v9, %v876_v15  ;;  %v866_v3 = vmul.f32 %v4106_v63, %v850_v2  ;;  %v870_v25 = vmul.f32 %v4106_v63, %v854_v39  ;;  %v885_v11 = vpack.c.bf16 %v881_v4, %v880_v55 }
 0x61d   :  { %3806 = vmatprep.subr.bf16.mxu1 %v883_v5  ;;  %v874_v42 = vmul.f32 %v866_v3, %v4473_v48  ;;  %v878_v16 = vmul.f32 %v870_v25, %v4499_v53  ;;  %v4631_v48 = vld [vmem:[%s5286_s1 + $0x8] sm:$0xff]  }
 0x61e   :  { %v4108_v17 = vpop.eup %4107  ;;  %3807 = vmatpush3.bf16.msra.mxu1 %v883_v5 }
 0x61f   :  { %v867_v60 = vmul.f32 %v4108_v17, %v851_v6  ;;  %v871_v13 = vmul.f32 %v4108_v17, %v855_v45 }
 0x621   :  { %v875_v46 = vmul.f32 %v867_v60, %v4479_v21  ;;  %v879_v22 = vmul.f32 %v871_v13, %v4496_v38  ;;  %v4047_v38 = vld [vmem:[%s5288_s3 + $0x14] sm:$0xff]  }
 0x622   :  { %3824 = vmatprep.subr.bf16.mxu0 %v4047_v38 }
 0x623   :  { %v882_v10 = vpack.c.bf16 %v875_v46, %v874_v42  ;;  %v884_v21 = vpack.c.bf16 %v879_v22, %v878_v16  ;;  %3825 = vmatpush3.bf16.msra.mxu0 %v4047_v38 }
 0x625   :  { %3808 = vmatprep.subr.bf16.mxu1 %v882_v10 }
 0x626   :  { %3809 = vmatpush3.bf16.msra.mxu1 %v882_v10 }
 0x627   :  { %3814 = vmatprep.subr.bf16.mxu1 %v885_v11 }
 0x629   :  { %3811 = vmatmul.mubr.msk.bf16.vlgmr.msra.gmra.mxu1 %vm90_vm0, %v4631_v48 }
 0x62a   :  { %3815 = vmatpush3.bf16.msra.mxu1 %v885_v11  ;;  %3818 = vmatprep.mubr.msk.bf16.mxu1 %vm90_vm0, %v4238_v37 }
 0x62b   :  { %3816 = vmatprep.subr.bf16.mxu1 %v884_v21 }
 0x62e   :  { %3817 = vmatpush3.bf16.msra.mxu1 %v884_v21 }
 0x631   :  { %3819 = vmatmul.mubr.msk.bf16.vlgmr.msra.gmra.mxu1 %vm90_vm0, %v4239_v43 }
 0x6e9   :  { %v3812_v53 = vpop.f32.mrf.mxu1 }
 0x6eb   :  { %v920_v51 = vpop.f32.mrf.mxu1 }
 0x6ed   :  { %v3813_v26 = vpop.f32.mrf.mxu1 }
 0x6ee   :  { %v985_v34 = vpack.c.bf16 %v3813_v26, %v3812_v53 }
 0x6ef   :  { %v923_v27 = vpop.f32.mrf.mxu1 }
 0x6f0   :  { %v984_v24 = vpack.c.bf16 %v923_v27, %v920_v51 }
 0x6f1   :  { %v3820_v36 = vpop.f32.mrf.mxu1 }
 0x6f2   :  { %3826 = vmatprep.mubr.msk.bf16.mxu0 %vm90_vm0, %v984_v24 }
 0x6f3   :  { %v969_v7 = vpop.f32.mrf.mxu1  ;;  %3827 = vmatmul.mubr.msk.bf16.vlgmr.msra.gmra.mxu0 %vm90_vm0, %v985_v34 }
 0x6f5   :  { %v3821_v40 = vpop.f32.mrf.mxu1 }
 0x6f6   :  { %v987_v29 = vpack.c.bf16 %v3821_v40, %v3820_v36 }
 0x6f7   :  { %v972_v50 = vpop.f32.mrf.mxu1 }
 0x6f8   :  { %v986_v30 = vpack.c.bf16 %v972_v50, %v969_v7 }
 0x6fa   :  { %3830 = vmatprep.mubr.msk.bf16.mxu0 %vm90_vm0, %v986_v30 }
 0x6fb   :  { %3831 = vmatmul.mubr.msk.bf16.gmra.mxu0 %vm90_vm0, %v987_v29 }
 0x7b3   :  { %v3828_v35 = vpop.f32.mrf.mxu0 }
 0x7b4   :  { %v4652_v49 = vadd.f32 %v3828_v35, %v1080_v18 }
 0x7b5   :  { %v1046_v52 = vpop.f32.mrf.mxu0 }
 0x7b6   :  { %v4654_v47 = vadd.f32 %v1080_v18, %v1046_v52  ;;  %v4658_v28 = vmul.f32 %v4652_v49, %v4652_v49 }
 0x7b7   :  { %v3829_v44 = vpop.f32.mrf.mxu0 }
 0x7b8   :  { %v4660_v19 = vadd.f32 %v3829_v44, %v1080_v18  ;;  %1257 = vrot.lane.b32.xlu0 %v4658_v28, %s4267_s11  ;;  %v4668_v33 = vmul.f32 %v4654_v47, %v4654_v47 }
 0x7b9   :  { %v1049_v54 = vpop.f32.mrf.mxu0 }
 0x7ba   :  { %v4664_v12 = vadd.f32 %v1080_v18, %v1049_v54  ;;  %v4672_v56 = vmul.f32 %v4660_v19, %v4660_v19 }
 0x7bb   :  { %v3832_v57 = vpop.f32.mrf.mxu0 }
 0x7bc   :  { %v4674_v58 = vadd.f32 %v3832_v57, %v1080_v18  ;;  %1253 = vrot.lane.b32.xlu0 %v4668_v33, %s4267_s11  ;;  %1259 = vrot.lane.b32.xlu1 %v4672_v56, %s4267_s11  ;;  %v4684_v61 = vmul.f32 %v4664_v12, %v4664_v12 }
 0x7bd   :  { %v1062_v59 = vpop.f32.mrf.mxu0 }
 0x7be   :  { %v4680_v14 = vadd.f32 %v1080_v18, %v1062_v59  ;;  %v4688_v62 = vmul.f32 %v4674_v58, %v4674_v58 }
 0x7bf   :  { %v3833_v15 = vpop.f32.mrf.mxu0 }
 0x7c0   :  { %1255 = vrot.lane.b32.xlu1 %v4684_v61, %s4267_s11  ;;  %1265 = vrot.lane.b32.xlu0 %v4688_v62, %s4267_s11  ;;  %v4698_v0 = vmul.f32 %v4680_v14, %v4680_v14  ;;  %v4702_v2 = vadd.f32 %v3833_v15, %v1080_v18 }
 0x7c1   :  { %v1065_v9 = vpop.f32.mrf.mxu0 }
 0x7c2   :  { %v4694_v63 = vadd.f32 %v1080_v18, %v1065_v9  ;;  %v4712_v8 = vmul.f32 %v4702_v2, %v4702_v2 }
 0x7c4   :  { %1261 = vrot.lane.b32.xlu1 %v4698_v0, %s4267_s11  ;;  %v4706_v5 = vmul.f32 %v4694_v63, %v4694_v63 }
 0x7c8   :  { %1263 = vrot.lane.b32.xlu1 %v4706_v5, %s4267_s11 }
 0x7cc   :  { %1267 = vrot.lane.b32.xlu1 %v4712_v8, %s4267_s11 }
 0x82a   :  { %v1258_v6 = vpop.permute.xlu0 %1257 }
 0x82b   :  { %v1283_v3 = vsel %vm215_vm2, %v1258_v6, 0.0 }
 0x82c   :  { %1284 = vadd.xlane.f32.xlu0 %v1283_v3 }
 0x82e   :  { %v1254_v20 = vpop.permute.xlu0 %1253  ;;  %v1260_v17 = vpop.permute.xlu1 %1259 }
 0x82f   :  { %v1277_v45 = vsel %vm215_vm2, %v1254_v20, 0.0  ;;  %v1286_v60 = vsel %vm215_vm2, %v1260_v17, 0.0 }
 0x830   :  { %1278 = vadd.xlane.f32.xlu0 %v1277_v45  ;;  %1287 = vadd.xlane.f32.xlu1 %v1286_v60 }
 0x832   :  { %v1256_v23 = vpop.permute.xlu1 %1255  ;;  %v1266_v10 = vpop.permute.xlu0 %1265 }
 0x833   :  { %v1280_v39 = vsel %vm215_vm2, %v1256_v23, 0.0  ;;  %v1295_v25 = vsel %vm215_vm2, %v1266_v10, 0.0 }
 0x834   :  { %1281 = vadd.xlane.f32.xlu1 %v1280_v39 }
 0x836   :  { %v1262_v42 = vpop.permute.xlu1 %1261 }
 0x837   :  { %v1289_v46 = vsel %vm215_vm2, %v1262_v42, 0.0 }
 0x838   :  { %1290 = vadd.xlane.f32.xlu0 %v1289_v46 }
 0x83a   :  { %v1264_v4 = vpop.permute.xlu1 %1263 }
 0x83b   :  { %v1292_v13 = vsel %vm215_vm2, %v1264_v4, 0.0 }
 0x83c   :  { %1293 = vadd.xlane.f32.xlu0 %v1292_v13 }
 0x83e   :  { %v1268_v55 = vpop.permute.xlu1 %1267 }
 0x83f   :  { %v1298_v11 = vsel %vm215_vm2, %v1268_v55, 0.0 }
 0x840   :  { %1296 = vadd.xlane.f32.xlu0 %v1295_v25  ;;  %1299 = vadd.xlane.f32.xlu1 %v1298_v11 }
 0x8b5   :  { %v1285_v22 = vpop.xlane.xlu0 %1284 }
 0x8b6   :  { %v1303_v16 = vmax.f32 %v1285_v22, 1e-24 }
 0x8b8   :  { %4109 = vrsqrt.f32 %v1303_v16 }
 0x8b9   :  { %v1279_v21 = vpop.xlane.xlu0 %1278  ;;  %v1288_v37 = vpop.xlane.xlu1 %1287 }
 0x8ba   :  { %v1301_v43 = vmax.f32 %v1279_v21, 1e-24  ;;  %v1304_v38 = vmax.f32 %v1288_v37, 1e-24 }
 0x8bc   :  { %4111 = vrsqrt.f32 %v1301_v43 }
 0x8bd   :  { %4113 = vrsqrt.f32 %v1304_v38  ;;  %v1282_v53 = vpop.xlane.xlu1 %1281 }
 0x8be   :  { %v1302_v51 = vmax.f32 %v1282_v53, 1e-24 }
 0x8c0   :  { %4115 = vrsqrt.f32 %v1302_v51 }
 0x8c1   :  { %v1291_v26 = vpop.xlane.xlu0 %1290 }
 0x8c2   :  { %v1305_v27 = vmax.f32 %v1291_v26, 1e-24 }
 0x8c4   :  { %4117 = vrsqrt.f32 %v1305_v27 }
 0x8c5   :  { %v4110_v24 = vpop.eup %4109  ;;  %v1294_v34 = vpop.xlane.xlu0 %1293 }
 0x8c6   :  { %v1319_v36 = vmul.f32 %v4110_v24, %v4652_v49  ;;  %v1306_v57 = vmax.f32 %v1294_v34, 1e-24 }
 0x8c8   :  { %v4725_v7 = vmax.f32 %v1319_v36, 0.0 }
 0x8c9   :  { %v4112_v40 = vpop.eup %4111  ;;  %v1297_v50 = vpop.xlane.xlu0 %1296 }
 0x8ca   :  { %v1300_v30 = vpop.xlane.xlu1 %1299  ;;  %v4114_v29 = vpop.eup %4113  ;;  %v1307_v41 = vmax.f32 %v1297_v50, 1e-24  ;;  %1345 = vrot.lane.b32.xlu0 %v4725_v7, %s4267_s11  ;;  %v1317_v35 = vmul.f32 %v4112_v40, %v4654_v47  ;;  %v1391_v9 = vmul.f32 %v4725_v7, %v4725_v7 }
 0x8cb   :  { %v1308_v18 = vmax.f32 %v1300_v30, 1e-24  ;;  %v1320_v52 = vmul.f32 %v4114_v29, %v4660_v19 }
 0x8cc   :  { %4119 = vrsqrt.f32 %v1307_v41  ;;  %v4731_v44 = vmax.f32 %v1317_v35, 0.0 }
 0x8cd   :  { %v4116_v54 = vpop.eup %4115  ;;  %4121 = vrsqrt.f32 %v1308_v18  ;;  %v4733_v59 = vmax.f32 %v1320_v52, 0.0 }
 0x8ce   :  { %1341 = vrot.lane.b32.xlu0 %v4731_v44, %s4267_s11  ;;  %v1318_v15 = vmul.f32 %v4116_v54, %v4664_v12  ;;  %4123 = vrsqrt.f32 %v1306_v57  ;;  %v1389_v3 = vmul.f32 %v4731_v44, %v4731_v44 }
 0x8cf   :  { %1347 = vrot.lane.b32.xlu1 %v4733_v59, %s4267_s11  ;;  %v1392_v17 = vmul.f32 %v4733_v59, %v4733_v59 }
 0x8d0   :  { %v4742_v6 = vmax.f32 %v1318_v15, 0.0 }
 0x8d1   :  { %v4118_v20 = vpop.eup %4117 }
 0x8d2   :  { %1409 = vrot.lane.b32.xlu0 %v1391_v9, %s4267_s11  ;;  %v1321_v45 = vmul.f32 %v4118_v20, %v4680_v14  ;;  %v1390_v23 = vmul.f32 %v4742_v6, %v4742_v6 }
 0x8d3   :  { %1343 = vrot.lane.b32.xlu1 %v4742_v6, %s4267_s11 }
 0x8d4   :  { %v4760_v4 = vmax.f32 %v1321_v45, 0.0 }
 0x8d6   :  { %1405 = vrot.lane.b32.xlu0 %v1389_v3, %s4267_s11  ;;  %v1393_v55 = vmul.f32 %v4760_v4, %v4760_v4 }
 0x8d7   :  { %1411 = vrot.lane.b32.xlu1 %v1392_v17, %s4267_s11 }
 0x8d9   :  { %v4120_v60 = vpop.eup %4119 }
 0x8da   :  { %v4122_v39 = vpop.eup %4121  ;;  %v1323_v42 = vmul.f32 %v4120_v60, %v4674_v58 }
 0x8db   :  { %1407 = vrot.lane.b32.xlu1 %v1390_v23, %s4267_s11  ;;  %v1324_v13 = vmul.f32 %v4122_v39, %v4702_v2  ;;  %v4124_v10 = vpop.eup %4123 }
 0x8dc   :  { %v4758_v46 = vmax.f32 %v1323_v42, 0.0  ;;  %v1322_v11 = vmul.f32 %v4124_v10, %v4694_v63 }
 0x8dd   :  { %v4769_v25 = vmax.f32 %v1324_v13, 0.0 }
 0x8de   :  { %1353 = vrot.lane.b32.xlu0 %v4758_v46, %s4267_s11  ;;  %v1395_v22 = vmul.f32 %v4758_v46, %v4758_v46  ;;  %v4777_v16 = vmax.f32 %v1322_v11, 0.0 }
 0x8df   :  { %1349 = vrot.lane.b32.xlu1 %v4760_v4, %s4267_s11  ;;  %v1396_v37 = vmul.f32 %v4769_v25, %v4769_v25 }
 0x8e0   :  { %v1394_v21 = vmul.f32 %v4777_v16, %v4777_v16 }
 0x8e2   :  { %1413 = vrot.lane.b32.xlu0 %v1393_v55, %s4267_s11 }
 0x8e3   :  { %1355 = vrot.lane.b32.xlu1 %v4769_v25, %s4267_s11 }
 0x8e6   :  { %1417 = vrot.lane.b32.xlu0 %v1395_v22, %s4267_s11 }
 0x8e7   :  { %1351 = vrot.lane.b32.xlu1 %v4777_v16, %s4267_s11 }
 0x8eb   :  { %1415 = vrot.lane.b32.xlu1 %v1394_v21, %s4267_s11 }
 0x8ef   :  { %1419 = vrot.lane.b32.xlu1 %v1396_v37, %s4267_s11 }
 0x93c   :  { %v1346_v43 = vpop.permute.xlu0 %1345 }
 0x93d   :  { %v1375_v40 = vsel %vm215_vm2, %v1346_v43, 0.0 }
 0x940   :  { %v1342_v38 = vpop.permute.xlu0 %1341 }
 0x941   :  { %v1348_v53 = vpop.permute.xlu1 %1347  ;;  %v1365_v18 = vsel %vm215_vm2, %v1342_v38, 0.0 }
 0x942   :  { %v1380_v15 = vsel %vm215_vm2, %v1348_v53, 0.0 }
 0x944   :  { %v1410_v26 = vpop.permute.xlu0 %1409 }
 0x945   :  { %v1344_v51 = vpop.permute.xlu1 %1343  ;;  %v1439_v21 = vsel %vm215_vm2, %v1410_v26, 0.0 }
 0x946   :  { %v1370_v3 = vsel %vm215_vm2, %v1344_v51, 0.0 }
 0x948   :  { %v1406_v24 = vpop.permute.xlu0 %1405 }
 0x949   :  { %v1412_v27 = vpop.permute.xlu1 %1411  ;;  %v1429_v39 = vsel %vm215_vm2, %v1406_v24, 0.0 }
 0x94a   :  { %v1444_v43 = vsel %vm215_vm2, %v1412_v27, 0.0 }
 0x94d   :  { %v1408_v34 = vpop.permute.xlu1 %1407 }
 0x94e   :  { %v1434_v13 = vsel %vm215_vm2, %v1408_v34, 0.0 }
 0x950   :  { %v1354_v36 = vpop.permute.xlu0 %1353 }
 0x951   :  { %v1376_v50 = vsel %vm215_vm2, %v1354_v36, 0.0  ;;  %v1350_v30 = vpop.permute.xlu1 %1349 }
 0x952   :  { %v1377_v29 = vadd.f32 %v1376_v50, %v1375_v40  ;;  %v1366_v41 = vsel %vm215_vm2, %v1350_v30, 0.0 }
 0x953   :  { %v1367_v54 = vadd.f32 %v1366_v41, %v1365_v18 }
 0x954   :  { %1378 = vadd.xlane.f32.xlu0 %v1377_v29  ;;  %v1414_v52 = vpop.permute.xlu0 %1413 }
 0x955   :  { %v1356_v35 = vpop.permute.xlu1 %1355  ;;  %v1430_v45 = vsel %vm215_vm2, %v1414_v52, 0.0 }
 0x956   :  { %v1381_v57 = vsel %vm215_vm2, %v1356_v35, 0.0  ;;  %v1431_v55 = vadd.f32 %v1430_v45, %v1429_v39 }
 0x957   :  { %v1382_v17 = vadd.f32 %v1381_v57, %v1380_v15 }
 0x958   :  { %1368 = vadd.xlane.f32.xlu0 %v1367_v54  ;;  %v1418_v23 = vpop.permute.xlu0 %1417 }
 0x959   :  { %v1352_v9 = vpop.permute.xlu1 %1351  ;;  %v1440_v11 = vsel %vm215_vm2, %v1418_v23, 0.0 }
 0x95a   :  { %v1371_v20 = vsel %vm215_vm2, %v1352_v9, 0.0  ;;  %v1441_v53 = vadd.f32 %v1440_v11, %v1439_v21 }
 0x95b   :  { %v1372_v60 = vadd.f32 %v1371_v20, %v1370_v3 }
 0x95c   :  { %1383 = vadd.xlane.f32.xlu0 %v1382_v17 }
 0x95d   :  { %1373 = vadd.xlane.f32.xlu1 %v1372_v60  ;;  %v1416_v42 = vpop.permute.xlu1 %1415 }
 0x95e   :  { %v1435_v10 = vsel %vm215_vm2, %v1416_v42, 0.0 }
 0x95f   :  { %v1436_v22 = vadd.f32 %v1435_v10, %v1434_v13 }
 0x960   :  { %1432 = vadd.xlane.f32.xlu0 %v1431_v55 }
 0x961   :  { %1437 = vadd.xlane.f32.xlu1 %v1436_v22  ;;  %v1420_v37 = vpop.permute.xlu1 %1419 }
 0x962   :  { %v1445_v38 = vsel %vm215_vm2, %v1420_v37, 0.0 }
 0x963   :  { %v1446_v51 = vadd.f32 %v1445_v38, %v1444_v43 }
 0x964   :  { %1442 = vadd.xlane.f32.xlu0 %v1441_v53 }
 0x965   :  { %1447 = vadd.xlane.f32.xlu1 %v1446_v51 }
 0x9dd   :  { %v1379_v24 = vpop.xlane.xlu0 %1378 }
 0x9de   :  { %v1387_v41 = vmul.f32 0.0625, %v1379_v24 }
 0x9e0   :  { %v1455_v20 = vmul.f32 %v1387_v41, %v1387_v41 }
 0x9e1   :  { %v1369_v34 = vpop.xlane.xlu0 %1368 }
 0x9e2   :  { %v1385_v40 = vmul.f32 0.0625, %v1369_v34 }
 0x9e4   :  { %v1453_v18 = vmul.f32 %v1385_v40, %v1385_v40  ;;  %v1465_v43 = vsub.f32 %v4731_v44, %v1385_v40 }
 0x9e5   :  { %v1384_v36 = vpop.xlane.xlu0 %1383 }
 0x9e6   :  { %v1374_v50 = vpop.xlane.xlu1 %1373  ;;  %v1388_v52 = vmul.f32 0.0625, %v1384_v36 }
 0x9e7   :  { %v1386_v30 = vmul.f32 0.0625, %v1374_v50  ;;  %v1467_v50 = vsub.f32 %v4725_v7, %v1387_v41 }
 0x9e8   :  { %v1456_v23 = vmul.f32 %v1388_v52, %v1388_v52 }
 0x9e9   :  { %v1433_v29 = vpop.xlane.xlu0 %1432  ;;  %v1454_v54 = vmul.f32 %v1386_v30, %v1386_v30  ;;  %v1466_v53 = vsub.f32 %v4742_v6, %v1386_v30  ;;  %v1470_v6 = vsub.f32 %v4777_v16, %v1386_v30 }
 0x9ea   :  { %v1449_v26 = vmul.f32 0.0625, %v1433_v29  ;;  %v1438_v35 = vpop.xlane.xlu1 %1437 }
 0x9eb   :  { %v1450_v27 = vmul.f32 0.0625, %v1438_v35 }
 0x9ec   :  { %v1457_v57 = vsub.f32 %v1449_v26, %v1453_v18  ;;  %v1468_v26 = vsub.f32 %v4733_v59, %v1388_v52  ;;  %v1472_v59 = vsub.f32 %v4769_v25, %v1388_v52 }
 0x9ed   :  { %v1458_v15 = vsub.f32 %v1450_v27, %v1454_v54  ;;  %v1443_v9 = vpop.xlane.xlu0 %1442  ;;  %v1469_v54 = vsub.f32 %v4760_v4, %v1385_v40 }
 0x9ee   :  { %v1461_v3 = vmax.f32 %v1457_v57, 0.0  ;;  %v1451_v17 = vmul.f32 0.0625, %v1443_v9  ;;  %v1448_v45 = vpop.xlane.xlu1 %1447 }
 0x9ef   :  { %v1462_v60 = vmax.f32 %v1458_v15, 0.0  ;;  %v1452_v39 = vmul.f32 0.0625, %v1448_v45 }
 0x9f0   :  { %v1473_v42 = vadd.f32 1e-05, %v1461_v3  ;;  %v1459_v13 = vsub.f32 %v1451_v17, %v1455_v20  ;;  %v1471_v3 = vsub.f32 %v4758_v46, %v1387_v41 }
 0x9f1   :  { %v1474_v10 = vadd.f32 1e-05, %v1462_v60  ;;  %v1460_v55 = vsub.f32 %v1452_v39, %v1456_v23 }
 0x9f2   :  { %4125 = vrsqrt.f32 %v1473_v42  ;;  %v1463_v11 = vmax.f32 %v1459_v13, 0.0 }
 0x9f3   :  { %4127 = vrsqrt.f32 %v1474_v10  ;;  %v1464_v22 = vmax.f32 %v1460_v55, 0.0 }
 0x9f4   :  { %v1475_v21 = vadd.f32 1e-05, %v1463_v11 }
 0x9f5   :  { %v1476_v37 = vadd.f32 1e-05, %v1464_v22 }
 0x9f6   :  { %4129 = vrsqrt.f32 %v1475_v21 }
 0x9f7   :  { %4131 = vrsqrt.f32 %v1476_v37 }
 0x9ff   :  { %v4126_v38 = vpop.eup %4125 }
 0xa00   :  { %v4128_v51 = vpop.eup %4127  ;;  %v1481_v24 = vmul.f32 %v4126_v38, %v1465_v43  ;;  %v1485_v15 = vmul.f32 %v4126_v38, %v1469_v54 }
 0xa01   :  { %v1482_v34 = vmul.f32 %v4128_v51, %v1466_v53  ;;  %v1486_v9 = vmul.f32 %v4128_v51, %v1470_v6 }
 0xa02   :  { %v1490_v36 = vsel %vm1489_vm3, %v1481_v24, -inf  ;;  %v1502_v20 = vsel %vm1489_vm3, %v1485_v15, -inf }
 0xa03   :  { %v4130_v29 = vpop.eup %4129  ;;  %1491 = vmax.xlane.f32.xlu0 %v1490_v36  ;;  %v1493_v18 = vsel %vm1489_vm3, %v1482_v34, -inf  ;;  %v1505_v4 = vsel %vm1489_vm3, %v1486_v9, -inf }
 0xa04   :  { %v4132_v35 = vpop.eup %4131  ;;  %1494 = vmax.xlane.f32.xlu1 %v1493_v18  ;;  %v1483_v44 = vmul.f32 %v4130_v29, %v1467_v50  ;;  %v1487_v17 = vmul.f32 %v4130_v29, %v1471_v3  ;;  %v1106_v3 = vsel %vm90_vm0, %v4672_v56, 0.0 }
 0xa05   :  { %v1484_v27 = vmul.f32 %v4132_v35, %v1468_v26  ;;  %v1488_v40 = vmul.f32 %v4132_v35, %v1472_v59 }
 0xa06   :  { %v1496_v57 = vsel %vm1489_vm3, %v1483_v44, -inf  ;;  %v1508_v16 = vsel %vm1489_vm3, %v1487_v17, -inf }
 0xa07   :  { %1497 = vmax.xlane.f32.xlu0 %v1496_v57  ;;  %v1499_v7 = vsel %vm1489_vm3, %v1484_v27, -inf  ;;  %v1511_v30 = vsel %vm1489_vm3, %v1488_v40, -inf  ;;  %v1103_v57 = vsel %vm90_vm0, %v4658_v28, 0.0  ;;  %v1109_v28 = vsel %vm90_vm0, %v4698_v0, 0.0 }
 0xa08   :  { %1500 = vmax.xlane.f32.xlu1 %v1499_v7  ;;  %v1118_v7 = vsel %vm90_vm0, %v4712_v8, 0.0  ;;  %v1112_v8 = vsel %vm90_vm0, %v4706_v5, 0.0 }
 0xa0b   :  { %1503 = vmax.xlane.f32.xlu0 %v1502_v20 }
 0xa0c   :  { %1506 = vmax.xlane.f32.xlu1 %v1505_v4 }
 0xa0f   :  { %1509 = vmax.xlane.f32.xlu0 %v1508_v16 }
 0xa10   :  { %1512 = vmax.xlane.f32.xlu1 %v1511_v30 }
 0xa8c   :  { %v1492_v45 = vpop.xlane.xlu0 %1491 }
 0xa8d   :  { %v1514_v60 = vsub.f32 %v1481_v24, %v1492_v45  ;;  %v1495_v23 = vpop.xlane.xlu1 %1494 }
 0xa8e   :  { %v1515_v41 = vsub.f32 %v1482_v34, %v1495_v23 }
 0xa8f   :  { %v1522_v46 = vmul.f32 1.442695, %v1514_v60 }
 0xa90   :  { %v1498_v25 = vpop.xlane.xlu0 %1497  ;;  %v1524_v13 = vmul.f32 1.442695, %v1515_v41 }
 0xa91   :  { %4133 = vpow2.f32 %v1522_v46  ;;  %v1516_v52 = vsub.f32 %v1483_v44, %v1498_v25  ;;  %v1501_v39 = vpop.xlane.xlu1 %1500 }
 0xa92   :  { %v1517_v10 = vsub.f32 %v1484_v27, %v1501_v39 }
 0xa93   :  { %v1526_v42 = vmul.f32 1.442695, %v1516_v52 }
 0xa94   :  { %v1504_v55 = vpop.xlane.xlu0 %1503  ;;  %v1528_v37 = vmul.f32 1.442695, %v1517_v10 }
 0xa95   :  { %4135 = vpow2.f32 %v1526_v42  ;;  %v1518_v11 = vsub.f32 %v1485_v15, %v1504_v55  ;;  %v1507_v22 = vpop.xlane.xlu1 %1506  ;;  %v1115_v15 = vsel %vm90_vm0, %v4688_v62, 0.0  ;;  %v1100_v62 = vsel %vm90_vm0, %v4684_v61, 0.0 }
 0xa96   :  { %4137 = vpow2.f32 %v1524_v13  ;;  %v1519_v38 = vsub.f32 %v1486_v9, %v1507_v22  ;;  %v1097_v9 = vsel %vm90_vm0, %v4668_v33, 0.0 }
 0xa97   :  { %v1530_v21 = vmul.f32 1.442695, %v1518_v11 }
 0xa98   :  { %v1510_v43 = vpop.xlane.xlu0 %1509  ;;  %v1532_v34 = vmul.f32 1.442695, %v1519_v38 }
 0xa99   :  { %4139 = vpow2.f32 %v1530_v21  ;;  %v1520_v53 = vsub.f32 %v1487_v17, %v1510_v43  ;;  %v1513_v51 = vpop.xlane.xlu1 %1512 }
 0xa9a   :  { %4141 = vpow2.f32 %v1528_v37  ;;  %v1521_v36 = vsub.f32 %v1488_v40, %v1513_v51 }
 0xa9b   :  { %v1534_v24 = vmul.f32 1.442695, %v1520_v53 }
 0xa9c   :  { %v1536_v29 = vmul.f32 1.442695, %v1521_v36 }
 0xa9d   :  { %4143 = vpow2.f32 %v1534_v24 }
 0xa9e   :  { %v4820_v50 = vpop.eup %4133  ;;  %4145 = vpow2.f32 %v1532_v34 }
 0xa9f   :  { %1546 = vrot.lane.b32.xlu0 %v4820_v50, %s4267_s11  ;;  %4147 = vpow2.f32 %v1536_v29 }
 0xaa2   :  { %v4824_v18 = vpop.eup %4135 }
 0xaa3   :  { %1550 = vrot.lane.b32.xlu1 %v4824_v18, %s4267_s11  ;;  %v4828_v26 = vpop.eup %4137 }
 0xaa6   :  { %v4830_v35 = vpop.eup %4139 }
 0xaa7   :  { %1554 = vrot.lane.b32.xlu0 %v4830_v35, %s4267_s11  ;;  %1548 = vrot.lane.b32.xlu1 %v4828_v26, %s4267_s11  ;;  %v4836_v44 = vpop.eup %4141 }
 0xaaa   :  { %v4838_v54 = vpop.eup %4143 }
 0xaab   :  { %1558 = vrot.lane.b32.xlu0 %v4838_v54, %s4267_s11  ;;  %1552 = vrot.lane.b32.xlu1 %v4836_v44, %s4267_s11  ;;  %v4844_v27 = vpop.eup %4145 }
 0xaac   :  { %v4848_v6 = vpop.eup %4147 }
 0xaaf   :  { %1556 = vrot.lane.b32.xlu1 %v4844_v27, %s4267_s11 }
 0xab3   :  { %1560 = vrot.lane.b32.xlu1 %v4848_v6, %s4267_s11 }
 0xaca   :  { %1104 = vadd.xlane.f32.xlu0 %v1103_v57 }
 0xace   :  { %1116 = vadd.xlane.f32.xlu0 %v1115_v15 }
 0xad2   :  { %1119 = vadd.xlane.f32.xlu0 %v1118_v7 }
 0xad6   :  { %1098 = vadd.xlane.f32.xlu0 %v1097_v9 }
 0xad7   :  { %1107 = vadd.xlane.f32.xlu1 %v1106_v3 }
 0xada   :  { %1110 = vadd.xlane.f32.xlu0 %v1109_v28 }
 0xadb   :  { %1101 = vadd.xlane.f32.xlu1 %v1100_v62 }
 0xadf   :  { %1113 = vadd.xlane.f32.xlu1 %v1112_v8 }
 0xb11   :  { %v1547_v59 = vpop.permute.xlu0 %1546 }
 0xb12   :  { %v1570_v33 = vsel %vm215_vm2, %v1547_v59, 0.0 }
 0xb13   :  { %1571 = vadd.xlane.f32.xlu0 %v1570_v33 }
 0xb15   :  { %v1551_v20 = vpop.permute.xlu1 %1550 }
 0xb16   :  { %v1576_v56 = vsel %vm215_vm2, %v1551_v20, 0.0 }
 0xb17   :  { %1577 = vadd.xlane.f32.xlu0 %v1576_v56 }
 0xb19   :  { %v1555_v17 = vpop.permute.xlu0 %1554  ;;  %v1549_v4 = vpop.permute.xlu1 %1548 }
 0xb1a   :  { %v1582_v0 = vsel %vm215_vm2, %v1555_v17, 0.0  ;;  %v1573_v40 = vsel %vm215_vm2, %v1549_v4, 0.0 }
 0xb1b   :  { %1583 = vadd.xlane.f32.xlu0 %v1582_v0  ;;  %1574 = vadd.xlane.f32.xlu1 %v1573_v40 }
 0xb1d   :  { %v1559_v61 = vpop.permute.xlu0 %1558  ;;  %v1553_v16 = vpop.permute.xlu1 %1552 }
 0xb1e   :  { %v1588_v5 = vsel %vm215_vm2, %v1559_v61, 0.0  ;;  %v1579_v30 = vsel %vm215_vm2, %v1553_v16, 0.0 }
 0xb1f   :  { %1589 = vadd.xlane.f32.xlu0 %v1588_v5  ;;  %1580 = vadd.xlane.f32.xlu1 %v1579_v30 }
 0xb21   :  { %v1557_v45 = vpop.permute.xlu1 %1556 }
 0xb22   :  { %v1585_v60 = vsel %vm215_vm2, %v1557_v45, 0.0 }
 0xb23   :  { %1586 = vadd.xlane.f32.xlu1 %v1585_v60 }
 0xb25   :  { %v1561_v23 = vpop.permute.xlu1 %1560 }
 0xb26   :  { %v1591_v46 = vsel %vm215_vm2, %v1561_v23, 0.0 }
 0xb27   :  { %1592 = vadd.xlane.f32.xlu1 %v1591_v46 }
 0xb53   :  { %v1105_v41 = vpop.xlane.xlu0 %1104 }
 0xb54   :  { %v1123_v25 = vmax.f32 %v1105_v41, 1e-24 }
 0xb56   :  { %4149 = vrsqrt.f32 %v1123_v25 }
 0xb57   :  { %v1117_v52 = vpop.xlane.xlu0 %1116 }
 0xb58   :  { %v1127_v39 = vmax.f32 %v1117_v52, 1e-24 }
 0xb5a   :  { %4151 = vrsqrt.f32 %v1127_v39 }
 0xb5b   :  { %v1120_v42 = vpop.xlane.xlu0 %1119 }
 0xb5c   :  { %v1128_v13 = vmax.f32 %v1120_v42, 1e-24 }
 0xb5e   :  { %4153 = vrsqrt.f32 %v1128_v13 }
 0xb5f   :  { %v1099_v10 = vpop.xlane.xlu0 %1098 }
 0xb60   :  { %v1121_v55 = vmax.f32 %v1099_v10, 1e-24  ;;  %v1108_v11 = vpop.xlane.xlu1 %1107 }
 0xb61   :  { %v1124_v22 = vmax.f32 %v1108_v11, 1e-24 }
 0xb62   :  { %4155 = vrsqrt.f32 %v1121_v55 }
 0xb63   :  { %v4150_v21 = vpop.eup %4149  ;;  %4157 = vrsqrt.f32 %v1124_v22  ;;  %v1111_v37 = vpop.xlane.xlu0 %1110 }
 0xb64   :  { %v1125_v43 = vmax.f32 %v1111_v37, 1e-24  ;;  %v1102_v38 = vpop.xlane.xlu1 %1101  ;;  %v1139_v53 = vmul.f32 %v4150_v21, %v4652_v49 }
 0xb65   :  { %v1122_v51 = vmax.f32 %v1102_v38, 1e-24 }
 0xb66   :  { %4159 = vrsqrt.f32 %v1125_v43  ;;  %v4877_v34 = vmax.f32 %v1139_v53, 0.0 }
 0xb67   :  { %v4152_v24 = vpop.eup %4151  ;;  %4161 = vrsqrt.f32 %v1122_v51 }
 0xb68   :  { %v1114_v36 = vpop.xlane.xlu1 %1113  ;;  %v1143_v29 = vmul.f32 %v4152_v24, %v4674_v58  ;;  %v1163_v9 = vsel %vm90_vm0, %v4877_v34, 0.0  ;;  %v1179_v3 = vmul.f32 %v4877_v34, %v4877_v34 }
 0xb69   :  { %v1126_v57 = vmax.f32 %v1114_v36, 1e-24 }
 0xb6a   :  { %v4880_v15 = vmax.f32 %v1143_v29, 0.0  ;;  %v1195_v20 = vsel %vm90_vm0, %v1179_v3, 0.0 }
 0xb6b   :  { %v4154_v7 = vpop.eup %4153  ;;  %4163 = vrsqrt.f32 %v1126_v57 }
 0xb6c   :  { %v1164_v49 = vsel %vm90_vm0, %v4880_v15, 0.0  ;;  %v1183_v28 = vmul.f32 %v4880_v15, %v4880_v15  ;;  %v1144_v62 = vmul.f32 %v4154_v7, %v4702_v2  ;;  %v4268_v7 = vmov 0.0  }
 0xb6d   :  { %v1165_v58 = vadd.f32 %v1164_v49, %v1163_v9  ;;  %3834 = vmatprep.subr.bf16.mxu1 %v4268_v7  ;;  %3850 = vmatprep.subr.bf16.mxu0 %v4268_v7  ;;  %v4240_v49 = vld [vmem:[%s5286_s1] sm:$0xff]  }
 0xb6e   :  { %v1196_v8 = vsel %vm90_vm0, %v1183_v28, 0.0  ;;  %v4893_v56 = vmax.f32 %v1144_v62, 0.0  ;;  %3851 = vmatpush3.bf16.msra.mxu0 %v4631_v48  ;;  %3838 = vmatprep.mubr.msk.bf16.mxu1 %vm4269_vm4, %v4268_v7 }
 0xb6f   :  { %v4156_v59 = vpop.eup %4155  ;;  %1166 = vadd.xlane.f32.xlu0 %v1165_v58  ;;  %v1197_v4 = vadd.f32 %v1196_v8, %v1195_v20  ;;  %3852 = vmatprep.subr.bf16.mxu0 %v4268_v7 }
 0xb70   :  { %v4158_v33 = vpop.eup %4157  ;;  %v1137_v17 = vmul.f32 %v4156_v59, %v4654_v47  ;;  %v1169_v5 = vsel %vm90_vm0, %v4893_v56, 0.0  ;;  %3854 = vmatprep.mubr.msk.bf16.mxu0 %vm4269_vm4, %v4268_v7 }
 0xb71   :  { %v1140_v0 = vmul.f32 %v4158_v33, %v4660_v19  ;;  %v1184_v19 = vmul.f32 %v4893_v56, %v4893_v56 }
 0xb72   :  { %v4899_v2 = vmax.f32 %v1137_v17, 0.0  ;;  %3853 = vmatpush3.bf16.msra.mxu0 %v4240_v49 }
 0xb73   :  { %v4160_v40 = vpop.eup %4159  ;;  %1198 = vadd.xlane.f32.xlu0 %v1197_v4  ;;  %v4897_v61 = vmax.f32 %v1140_v0, 0.0  ;;  %v1201_v10 = vsel %vm90_vm0, %v1184_v19, 0.0  ;;  %3866 = vmatprep.subr.bf16.mxu0 %v4268_v7 }
 0xb74   :  { %v4162_v16 = vpop.eup %4161  ;;  %v1141_v30 = vmul.f32 %v4160_v40, %v4680_v14  ;;  %v1153_v41 = vsel %vm90_vm0, %v4899_v2, 0.0  ;;  %v1177_v39 = vmul.f32 %v4899_v2, %v4899_v2 }
 0xb75   :  { %v1168_v45 = vsel %vm90_vm0, %v4897_v61, 0.0  ;;  %v1180_v47 = vmul.f32 %v4897_v61, %v4897_v61  ;;  %v1138_v60 = vmul.f32 %v4162_v16, %v4664_v12 }
 0xb76   :  { %v1170_v23 = vadd.f32 %v1169_v5, %v1168_v45  ;;  %v4911_v46 = vmax.f32 %v1141_v30, 0.0  ;;  %v1185_v37 = vsel %vm90_vm0, %v1177_v39, 0.0 }
 0xb77   :  { %v1200_v25 = vsel %vm90_vm0, %v1180_v47, 0.0  ;;  %v4922_v12 = vmax.f32 %v1138_v60, 0.0 }
 0xb78   :  { %v4164_v14 = vpop.eup %4163  ;;  %1171 = vadd.xlane.f32.xlu1 %v1170_v23  ;;  %v1154_v52 = vsel %vm90_vm0, %v4911_v46, 0.0  ;;  %v1181_v42 = vmul.f32 %v4911_v46, %v4911_v46  ;;  %v1202_v11 = vadd.f32 %v1201_v10, %v1200_v25 }
 0xb79   :  { %v1155_v13 = vadd.f32 %v1154_v52, %v1153_v41  ;;  %v1142_v55 = vmul.f32 %v4164_v14, %v4694_v63  ;;  %v1158_v43 = vsel %vm90_vm0, %v4922_v12, 0.0  ;;  %v1178_v51 = vmul.f32 %v4922_v12, %v4922_v12 }
 0xb7a   :  { %v1186_v22 = vsel %vm90_vm0, %v1181_v42, 0.0 }
 0xb7b   :  { %1156 = vadd.xlane.f32.xlu0 %v1155_v13  ;;  %v4927_v21 = vmax.f32 %v1142_v55, 0.0  ;;  %v1187_v38 = vadd.f32 %v1186_v22, %v1185_v37  ;;  %v1190_v29 = vsel %vm90_vm0, %v1178_v51, 0.0 }
 0xb7c   :  { %1203 = vadd.xlane.f32.xlu1 %v1202_v11 }
 0xb7d   :  { %v1159_v53 = vsel %vm90_vm0, %v4927_v21, 0.0  ;;  %v1182_v63 = vmul.f32 %v4927_v21, %v4927_v21 }
 0xb7e   :  { %v1160_v24 = vadd.f32 %v1159_v53, %v1158_v43 }
 0xb7f   :  { %1188 = vadd.xlane.f32.xlu0 %v1187_v38  ;;  %v1191_v36 = vsel %vm90_vm0, %v1182_v63, 0.0 }
 0xb80   :  { %1161 = vadd.xlane.f32.xlu1 %v1160_v24  ;;  %v1192_v57 = vadd.f32 %v1191_v36, %v1190_v29 }
 0xb84   :  { %1193 = vadd.xlane.f32.xlu1 %v1192_v57 }
 0xb9c   :  { %v1572_v9 = vpop.xlane.xlu0 %1571 }
 0xb9d   :  { %4165 = vrcp.f32 %v1572_v9 }
 0xba0   :  { %v1578_v3 = vpop.xlane.xlu0 %1577 }
 0xba4   :  { %v1575_v28 = vpop.xlane.xlu1 %1574  ;;  %v1584_v62 = vpop.xlane.xlu0 %1583 }
 0xba5   :  { %4167 = vrcp.f32 %v1575_v28 }
 0xba6   :  { %4169 = vrcp.f32 %v1578_v3 }
 0xba8   :  { %v1581_v58 = vpop.xlane.xlu1 %1580  ;;  %v1590_v48 = vpop.xlane.xlu0 %1589 }
 0xba9   :  { %4171 = vrcp.f32 %v1581_v58 }
 0xbaa   :  { %4173 = vrcp.f32 %v1584_v62  ;;  %v4166_v33 = vpop.eup %4165 }
 0xbab   :  { %v1595_v17 = vmul.f32 %v4166_v33, %v4820_v50 }
 0xbac   :  { %v1587_v8 = vpop.xlane.xlu1 %1586 }
 0xbad   :  { %4175 = vrcp.f32 %v1587_v8 }
 0xbae   :  { %4177 = vrcp.f32 %v1590_v48 }
 0xbb0   :  { %v1593_v59 = vpop.xlane.xlu1 %1592 }
 0xbb1   :  { %4179 = vrcp.f32 %v1593_v59 }
 0xbb2   :  { %v4168_v20 = vpop.eup %4167 }
 0xbb3   :  { %v1597_v4 = vmul.f32 %v4168_v20, %v4828_v26  ;;  %v4170_v0 = vpop.eup %4169 }
 0xbb4   :  { %v1599_v30 = vmul.f32 %v4170_v0, %v4824_v18 }
 0xbb5   :  { %v1610_v40 = vpack.c.bf16 %v1597_v4, %v1595_v17 }
 0xbb6   :  { %v4172_v16 = vpop.eup %4171 }
 0xbb7   :  { %v4174_v5 = vpop.eup %4173  ;;  %1620 = vrot.lane.b32.xlu0 %v1610_v40, %s4267_s11  ;;  %v1601_v45 = vmul.f32 %v4172_v16, %v4836_v44 }
 0xbb8   :  { %v1603_v26 = vmul.f32 %v4174_v5, %v4830_v35 }
 0xbb9   :  { %v1611_v47 = vpack.c.bf16 %v1601_v45, %v1599_v30 }
 0xbba   :  { %v4176_v50 = vpop.eup %4175 }
 0xbbb   :  { %v1605_v19 = vmul.f32 %v4176_v50, %v4844_v27  ;;  %v4178_v60 = vpop.eup %4177  ;;  %1622 = vrot.lane.b32.xlu1 %v1611_v47, %s4267_s11 }
 0xbbc   :  { %v1607_v44 = vmul.f32 %v4178_v60, %v4838_v54 }
 0xbbd   :  { %v1612_v23 = vpack.c.bf16 %v1605_v19, %v1603_v26 }
 0xbbe   :  { %v4180_v18 = vpop.eup %4179 }
 0xbbf   :  { %v1609_v41 = vmul.f32 %v4180_v18, %v4848_v6  ;;  %1687 = vrot.lane.b32.xlu1 %v1612_v23, %s4267_s11 }
 0xbc1   :  { %v1613_v25 = vpack.c.bf16 %v1609_v41, %v1607_v44 }
 0xbc3   :  { %1689 = vrot.lane.b32.xlu1 %v1613_v25, %s4267_s11 }
 0xbf8   :  { %v1167_v14 = vpop.xlane.xlu0 %1166 }
 0xbf9   :  { %v1175_v52 = vmul.f32 0.015625, %v1167_v14 }
 0xbfb   :  { %v1211_v35 = vmul.f32 %v1175_v52, %v1175_v52  ;;  %v1227_v8 = vsub.f32 %v4880_v15, %v1175_v52  ;;  %v1223_v4 = vsub.f32 %v4877_v34, %v1175_v52 }
 0xbfc   :  { %v1199_v39 = vpop.xlane.xlu0 %1198 }
 0xbfd   :  { %v1207_v42 = vmul.f32 0.015625, %v1199_v39  ;;  %v4241_v39 = vld [vmem:[%s5286_s1 + $0x18] sm:$0xff]  }
 0xbff   :  { %v1215_v27 = vsub.f32 %v1207_v42, %v1211_v35  ;;  %v4242_v35 = vld [vmem:[%s5286_s1 + $0x10] sm:$0xff]  }
 0xc01   :  { %v1219_v13 = vmax.f32 %v1215_v27, 0.0  ;;  %v1172_v10 = vpop.xlane.xlu1 %1171 }
 0xc02   :  { %v1176_v55 = vmul.f32 0.015625, %v1172_v10 }
 0xc03   :  { %v1231_v11 = vadd.f32 1e-05, %v1219_v13 }
 0xc04   :  { %v1157_v22 = vpop.xlane.xlu0 %1156  ;;  %v1212_v6 = vmul.f32 %v1176_v55, %v1176_v55  ;;  %v1224_v0 = vsub.f32 %v4897_v61, %v1176_v55  ;;  %v1228_v40 = vsub.f32 %v4893_v56, %v1176_v55 }
 0xc05   :  { %4181 = vrsqrt.f32 %v1231_v11  ;;  %v1173_v54 = vmul.f32 0.015625, %v1157_v22  ;;  %v1204_v37 = vpop.xlane.xlu1 %1203 }
 0xc06   :  { %v1208_v43 = vmul.f32 0.015625, %v1204_v37 }
 0xc07   :  { %v1209_v51 = vmul.f32 %v1173_v54, %v1173_v54  ;;  %v1225_v50 = vsub.f32 %v4911_v46, %v1173_v54  ;;  %v1221_v60 = vsub.f32 %v4899_v2, %v1173_v54 }
 0xc08   :  { %v1216_v38 = vsub.f32 %v1208_v43, %v1212_v6  ;;  %v1189_v53 = vpop.xlane.xlu0 %1188 }
 0xc09   :  { %v1205_v63 = vmul.f32 0.015625, %v1189_v53  ;;  %v1162_v24 = vpop.xlane.xlu1 %1161 }
 0xc0a   :  { %v1220_v36 = vmax.f32 %v1216_v38, 0.0  ;;  %v1174_v29 = vmul.f32 0.015625, %v1162_v24 }
 0xc0b   :  { %v1213_v57 = vsub.f32 %v1205_v63, %v1209_v51 }
 0xc0c   :  { %v1232_v9 = vadd.f32 1e-05, %v1220_v36  ;;  %v1210_v28 = vmul.f32 %v1174_v29, %v1174_v29  ;;  %v1222_v34 = vsub.f32 %v4922_v12, %v1174_v29  ;;  %v1226_v61 = vsub.f32 %v4927_v21, %v1174_v29 }
 0xc0d   :  { %v1217_v49 = vmax.f32 %v1213_v57, 0.0  ;;  %v1194_v3 = vpop.xlane.xlu1 %1193 }
 0xc0e   :  { %4183 = vrsqrt.f32 %v1232_v9  ;;  %v1206_v62 = vmul.f32 0.015625, %v1194_v3 }
 0xc0f   :  { %v1229_v58 = vadd.f32 1e-05, %v1217_v49 }
 0xc10   :  { %v1214_v48 = vsub.f32 %v1206_v62, %v1210_v28 }
 0xc11   :  { %4185 = vrsqrt.f32 %v1229_v58 }
 0xc12   :  { %v4182_v59 = vpop.eup %4181  ;;  %v1218_v33 = vmax.f32 %v1214_v48, 0.0 }
 0xc13   :  { %v1243_v20 = vmul.f32 %v4182_v59, %v1227_v8  ;;  %v1239_v5 = vmul.f32 %v4182_v59, %v1223_v4 }
 0xc14   :  { %v1230_v17 = vadd.f32 1e-05, %v1218_v33 }
 0xc16   :  { %4187 = vrsqrt.f32 %v1230_v17 }
 0xc1b   :  { %v4184_v16 = vpop.eup %4183 }
 0xc1c   :  { %v1240_v30 = vmul.f32 %v4184_v16, %v1224_v0  ;;  %v1244_v45 = vmul.f32 %v4184_v16, %v1228_v40  ;;  %v4048_v0 = vld [vmem:[%s5288_s3 + $0x2c] sm:$0xff]   ;;  %v4049_v40 = vld [vmem:[%s5288_s3 + $0x24] sm:$0xff]  }
 0xc1e   :  { %v4186_v47 = vpop.eup %4185  ;;  %v1615_v15 = vpack.c.bf16 %v1240_v30, %v1239_v5  ;;  %v1617_v26 = vpack.c.bf16 %v1244_v45, %v1243_v20 }
 0xc1f   :  { %v1241_v19 = vmul.f32 %v4186_v47, %v1225_v50  ;;  %v1237_v23 = vmul.f32 %v4186_v47, %v1221_v60  ;;  %v2085_v60 = vsub.s32 3, %v4366_v31 }
 0xc20   :  { %3835 = vmatpush3.bf16.msra.mxu1 %v1615_v15 }
 0xc21   :  { %3836 = vmatprep.subr.bf16.mxu1 %v4268_v7 }
 0xc23   :  { %v4188_v56 = vpop.eup %4187 }
 0xc24   :  { %v1238_v18 = vmul.f32 %v4188_v56, %v1222_v34  ;;  %v1242_v44 = vmul.f32 %v4188_v56, %v1226_v61  ;;  %v5037_v34 = vld [vmem:[%s5289_s4] sm:$0xff] }
 0xc25   :  { %v2086_v61 = vrot.slane %v5037_v34, %v2085_v60 }
 0xc26   :  { %v1614_v41 = vpack.c.bf16 %v1238_v18, %v1237_v23  ;;  %v1616_v25 = vpack.c.bf16 %v1242_v44, %v1241_v19 }
 0xc28   :  { %3837 = vmatpush3.bf16.msra.mxu1 %v1614_v41 }
 0xc29   :  { %3842 = vmatprep.subr.bf16.mxu1 %v4268_v7  ;;  %v1621_v46 = vpop.permute.xlu0 %1620 }
 0xc2a   :  { %1626 = vxpose.xlu0.c.b16.start [1/2] (short) (narrow) %v1621_v46, 16 }
 0xc2d   :  { %v1623_v14 = vpop.permute.xlu1 %1622 }
 0xc2e   :  { %1627 = vxpose.xlu0.c.b16.end [2/2] (short) (narrow) %v1623_v14, 16 }
 0xc31   :  { %v1688_v52 = vpop.permute.xlu1 %1687 }
 0xc32   :  { %1693 = vxpose.xlu1.c.b16.start [1/2] (short) (narrow) %v1688_v52, 16 }
 0xc35   :  { %v1690_v2 = vpop.permute.xlu1 %1689 }
 0xc36   :  { %1694 = vxpose.xlu1.c.b16.end [2/2] (short) (narrow) %v1690_v2, 16 }
 0xc8c   :  { %v1634_v12 = vpop.trf.xlu0 }
 0xc8d   :  { %3839 = vmatmul.mubr.msk.bf16.vlgmr.msra.gmra.mxu1 %vm90_vm0, %v1634_v12  ;;  %3855 = vmatmul.mubr.msk.bf16.vlgmr.msra.gmra.mxu0 %vm90_vm0, %v1634_v12 }
 0xc8e   :  { %3843 = vmatpush3.bf16.msra.mxu1 %v1617_v26  ;;  %3867 = vmatpush3.bf16.msra.mxu0 %v1623_v14 }
 0xc8f   :  { %3844 = vmatprep.subr.bf16.mxu1 %v4268_v7  ;;  %3868 = vmatprep.subr.bf16.mxu0 %v4268_v7 }
 0xc90   :  { %3846 = vmatprep.mubr.msk.bf16.mxu1 %vm4269_vm4, %v4268_v7  ;;  %3870 = vmatprep.mubr.msk.bf16.mxu0 %vm4269_vm4, %v4268_v7 }
 0xc92   :  { %3845 = vmatpush3.bf16.msra.mxu1 %v1616_v25  ;;  %3869 = vmatpush3.bf16.msra.mxu0 %v1621_v46 }
 0xc93   :  { %3858 = vmatprep.subr.bf16.mxu1 %v4268_v7  ;;  %3882 = vmatprep.subr.bf16.mxu0 %v4268_v7 }
 0xc94   :  { %v1701_v21 = vpop.trf.xlu1 }
 0xc95   :  { %3847 = vmatmul.mubr.msk.bf16.vlgmr.msra.gmra.mxu1 %vm90_vm0, %v1701_v21 }
 0xc96   :  { %3859 = vmatpush3.bf16.msra.mxu1 %v4241_v39  ;;  %3862 = vmatprep.mubr.msk.bf16.mxu1 %vm4269_vm4, %v4268_v7 }
 0xc97   :  { %3860 = vmatprep.subr.bf16.mxu1 %v4268_v7 }
 0xc9a   :  { %3861 = vmatpush3.bf16.msra.mxu1 %v4242_v35 }
 0xc9b   :  { %3874 = vmatprep.subr.bf16.mxu1 %v4268_v7 }
 0xc9d   :  { %3863 = vmatmul.mubr.msk.bf16.vlgmr.msra.gmra.mxu1 %vm90_vm0, %v1701_v21 }
 0xc9e   :  { %3875 = vmatpush3.bf16.msra.mxu1 %v1690_v2  ;;  %3878 = vmatprep.mubr.msk.bf16.mxu1 %vm4269_vm4, %v4268_v7 }
 0xc9f   :  { %3876 = vmatprep.subr.bf16.mxu1 %v4268_v7 }
 0xca2   :  { %3877 = vmatpush3.bf16.msra.mxu1 %v1688_v52 }
 0xca3   :  { %3888 = vmatprep.subr.bf16.mxu1 %v4268_v7 }
 0xd4d   :  { %v1679_v42 = vpop.f32.mrf.mxu1  ;;  %v1788_v27 = vpop.f32.mrf.mxu0 }
 0xd4e   :  { %v1926_v13 = vpack.c.bf16 %v1679_v42, %v1679_v42  ;;  %v1836_v10 = vpack.c.bf16 %v1788_v27, %v1788_v27 }
 0xd4f   :  { %v3840_v55 = vpop.f32.mrf.mxu1  ;;  %v3856_v11 = vpop.f32.mrf.mxu0 }
 0xd50   :  { %v1932_v22 = vsel %vm228_vm1, %v1926_v13, 0  ;;  %3871 = vmatmul.mubr.msk.bf16.vlgmr.msra.gmra.mxu0 %vm90_vm0, %v1836_v10 }
 0xd51   :  { %v1682_v54 = vpop.f32.mrf.mxu1  ;;  %v1791_v37 = vpop.f32.mrf.mxu0  ;;  %3883 = vmatpush3.bf16.msra.mxu0 %v1932_v22  ;;  %3884 = vmatprep.mubr.msk.bf16.mxu0 %vm4269_vm4, %v4268_v7 }
 0xd52   :  { %3894 = vmatprep.subr.bf16.mxu0 %v4268_v7 }
 0xd53   :  { %v3841_v6 = vpop.f32.mrf.mxu1  ;;  %v3857_v43 = vpop.f32.mrf.mxu0 }
 0xd55   :  { %v1746_v38 = vpop.f32.mrf.mxu1 }
 0xd56   :  { %v1927_v24 = vpack.c.bf16 %v1746_v38, %v1746_v38 }
 0xd57   :  { %v3848_v53 = vpop.f32.mrf.mxu1 }
 0xd58   :  { %v1978_v9 = vsel %vm228_vm1, %v1927_v24, 0 }
 0xd59   :  { %v1749_v51 = vpop.f32.mrf.mxu1 }
 0xd5b   :  { %v3849_v63 = vpop.f32.mrf.mxu1 }
 0xd5d   :  { %v1830_v36 = vpop.f32.mrf.mxu1 }
 0xd5e   :  { %v1837_v29 = vpack.c.bf16 %v1830_v36, %v1830_v36 }
 0xd5f   :  { %v3864_v57 = vpop.f32.mrf.mxu1 }
 0xd60   :  { %3879 = vmatmul.mubr.msk.bf16.vlgmr.msra.gmra.mxu1 %vm90_vm0, %v1837_v29 }
 0xd61   :  { %3889 = vmatpush3.bf16.msra.mxu1 %v1978_v9  ;;  %v1833_v49 = vpop.f32.mrf.mxu1  ;;  %3890 = vmatprep.mubr.msk.bf16.mxu1 %vm4269_vm4, %v4268_v7 }
 0xd62   :  { %3902 = vmatprep.subr.bf16.mxu1 %v4268_v7 }
 0xd63   :  { %v3865_v3 = vpop.f32.mrf.mxu1 }
 0xe10   :  { %v1875_v28 = vpop.f32.mrf.mxu0 }
 0xe11   :  { %v5010_v62 = vpack.c.bf16 %v1875_v28, %v1875_v28 }
 0xe12   :  { %v3872_v58 = vpop.f32.mrf.mxu0 }
 0xe13   :  { %3885 = vmatmul.mubr.msk.bf16.vlgmr.msra.gmra.mxu0 %vm215_vm2, %v5010_v62 }
 0xe14   :  { %v1878_v48 = vpop.f32.mrf.mxu0  ;;  %3898 = vmatprep.mubr.msk.bf16.mxu0 %vm4269_vm4, %v4268_v7  ;;  %3895 = vmatpush3.bf16.msra.mxu0 %v4048_v0 }
 0xe15   :  { %3896 = vmatprep.subr.bf16.mxu0 %v4268_v7 }
 0xe16   :  { %v3873_v8 = vpop.f32.mrf.mxu0 }
 0xe18   :  { %3897 = vmatpush3.bf16.msra.mxu0 %v4049_v40  ;;  %v4050_v40 = vld [vmem:[%s5288_s3 + $0x3c] sm:$0xff]  }
 0xe19   :  { %3908 = vmatprep.subr.bf16.mxu0 %v4268_v7 }
 0xe20   :  { %v1918_v59 = vpop.f32.mrf.mxu1 }
 0xe21   :  { %v5016_v33 = vpack.c.bf16 %v1918_v59, %v1918_v59 }
 0xe22   :  { %v3880_v20 = vpop.f32.mrf.mxu1 }
 0xe23   :  { %3891 = vmatmul.mubr.msk.bf16.vlgmr.msra.gmra.mxu1 %vm215_vm2, %v5016_v33 }
 0xe24   :  { %v1921_v17 = vpop.f32.mrf.mxu1  ;;  %3904 = vmatprep.mubr.msk.bf16.mxu1 %vm4269_vm4, %v4268_v7 }
 0xe26   :  { %v3881_v4 = vpop.f32.mrf.mxu1 }
 0xed3   :  { %v1968_v16 = vpop.f32.mrf.mxu0 }
 0xed5   :  { %v3886_v5 = vpop.f32.mrf.mxu0 }
 0xed7   :  { %v1971_v30 = vpop.f32.mrf.mxu0 }
 0xed9   :  { %v3887_v45 = vpop.f32.mrf.mxu0 }
 0xee3   :  { %v2014_v50 = vpop.f32.mrf.mxu1 }
 0xee4   :  { %v3638_v47 = vpack.c.bf16 %v2014_v50, %v1968_v16  ;;  %v4051_v16 = vld [vmem:[%s5288_s3 + $0x34] sm:$0xff]  }
 0xee5   :  { %v3892_v15 = vpop.f32.mrf.mxu1 }
 0xee6   :  { %3899 = vmatmul.mubr.msk.bf16.vlgmr.msra.gmra.mxu0 %vm90_vm0, %v3638_v47 }
 0xee7   :  { %v2017_v26 = vpop.f32.mrf.mxu1  ;;  %3910 = vmatprep.mubr.msk.bf16.mxu0 %vm4269_vm4, %v4268_v7 }
 0xee9   :  { %v3893_v19 = vpop.f32.mrf.mxu1 }
 0xfa6   :  { %v2076_v56 = vpop.f32.mrf.mxu0 }
 0xfa7   :  { %v2087_v23 = vadd.f32 %v2086_v61, %v2076_v56 }
 0xfa8   :  { %v3900_v18 = vpop.f32.mrf.mxu0 }
 0xfa9   :  { %v2089_v44 = vmul.f32 %v2087_v23, %v2087_v23 }
 0xfaa   :  { %v2079_v41 = vpop.f32.mrf.mxu0 }
 0xfab   :  { %v2088_v25 = vadd.f32 %v2086_v61, %v2079_v41  ;;  %v2091_v46 = vsel %vm90_vm0, %v2089_v44, 0.0  ;;  %v2281_v61 = vsub.s32 4, %v4366_v31 }
 0xfac   :  { %2092 = vadd.xlane.f32.xlu0 %v2091_v46  ;;  %v3901_v14 = vpop.f32.mrf.mxu0 }
 0xfad   :  { %v2090_v52 = vmul.f32 %v2088_v25, %v2088_v25  ;;  %v2282_v56 = vrot.slane %v5037_v34, %v2281_v61 }
 0xfaf   :  { %v2094_v2 = vsel %vm90_vm0, %v2090_v52, 0.0 }
 0xfb0   :  { %2095 = vadd.xlane.f32.xlu1 %v2094_v2 }
0x1035   :  { %v2093_v12 = vpop.xlane.xlu0 %2092 }
0x1036   :  { %v2097_v21 = vmax.f32 %v2093_v12, 1e-24 }
0x1038   :  { %4189 = vrsqrt.f32 %v2097_v21 }
0x1039   :  { %v2096_v39 = vpop.xlane.xlu1 %2095 }
0x103a   :  { %v2098_v35 = vmax.f32 %v2096_v39, 1e-24 }
0x103c   :  { %4191 = vrsqrt.f32 %v2098_v35 }
0x1045   :  { %v4190_v42 = vpop.eup %4189 }
0x1046   :  { %v2101_v27 = vmul.f32 %v4190_v42, %v2087_v23 }
0x1048   :  { %v2103_v55 = vmax.f32 %v2101_v27, 0.0 }
0x1049   :  { %v4192_v13 = vpop.eup %4191 }
0x104a   :  { %v2102_v10 = vmul.f32 %v4192_v13, %v2088_v25  ;;  %v2105_v22 = vsel %vm90_vm0, %v2103_v55, 0.0  ;;  %v2111_v37 = vmul.f32 %v2103_v55, %v2103_v55 }
0x104c   :  { %v2104_v11 = vmax.f32 %v2102_v10, 0.0  ;;  %v2113_v53 = vsel %vm90_vm0, %v2111_v37, 0.0 }
0x104e   :  { %v2106_v54 = vsel %vm90_vm0, %v2104_v11, 0.0  ;;  %v2112_v6 = vmul.f32 %v2104_v11, %v2104_v11 }
0x104f   :  { %v2107_v43 = vadd.f32 %v2106_v54, %v2105_v22 }
0x1050   :  { %v2114_v38 = vsel %vm90_vm0, %v2112_v6, 0.0 }
0x1051   :  { %2108 = vadd.xlane.f32.xlu0 %v2107_v43  ;;  %v2115_v51 = vadd.f32 %v2114_v38, %v2113_v53 }
0x1055   :  { %2116 = vadd.xlane.f32.xlu0 %v2115_v51 }
0x10da   :  { %v2109_v63 = vpop.xlane.xlu0 %2108 }
0x10db   :  { %v2110_v24 = vmul.f32 0.015625, %v2109_v63 }
0x10dd   :  { %v2119_v29 = vmul.f32 %v2110_v24, %v2110_v24  ;;  %v2122_v28 = vsub.f32 %v2103_v55, %v2110_v24  ;;  %v2123_v58 = vsub.f32 %v2104_v11, %v2110_v24 }
0x10de   :  { %v2117_v36 = vpop.xlane.xlu0 %2116 }
0x10df   :  { %v2118_v57 = vmul.f32 0.015625, %v2117_v36 }
0x10e1   :  { %v2120_v9 = vsub.f32 %v2118_v57, %v2119_v29 }
0x10e3   :  { %v2121_v49 = vmax.f32 %v2120_v9, 0.0 }
0x10e5   :  { %v2124_v3 = vadd.f32 1e-05, %v2121_v49 }
0x10e7   :  { %4193 = vrsqrt.f32 %v2124_v3 }
0x10f4   :  { %v4194_v48 = vpop.eup %4193 }
0x10f5   :  { %v2126_v8 = vmul.f32 %v4194_v48, %v2122_v28  ;;  %v2127_v59 = vmul.f32 %v4194_v48, %v2123_v58 }
0x10f7   :  { %v2128_v20 = vpack.c.bf16 %v2126_v8, %v2126_v8  ;;  %v2129_v17 = vpack.c.bf16 %v2127_v59, %v2127_v59 }
0x10f9   :  { %v2131_v4 = vsel %vm228_vm1, %v2128_v20, 0  ;;  %v2174_v0 = vsel %vm228_vm1, %v2129_v17, 0 }
0x10fa   :  { %3903 = vmatpush3.bf16.msra.mxu1 %v2131_v4  ;;  %3909 = vmatpush3.bf16.msra.mxu0 %v2174_v0 }
0x10fb   :  { %3914 = vmatprep.subr.bf16.mxu1 %v4268_v7  ;;  %3922 = vmatprep.subr.bf16.mxu0 %v4268_v7 }
0x10fd   :  { %3905 = vmatmul.mubr.msk.bf16.vlgmr.msra.gmra.mxu1 %vm215_vm2, %v5010_v62  ;;  %3911 = vmatmul.mubr.msk.bf16.vlgmr.msra.gmra.mxu0 %vm215_vm2, %v5016_v33 }
0x10fe   :  { %3915 = vmatpush3.bf16.msra.mxu1 %v4050_v40  ;;  %3918 = vmatprep.mubr.msk.bf16.mxu1 %vm4269_vm4, %v4268_v7 }
0x10ff   :  { %3916 = vmatprep.subr.bf16.mxu1 %v4268_v7  ;;  %3924 = vmatprep.mubr.msk.bf16.mxu0 %vm4269_vm4, %v4268_v7 }
0x1102   :  { %3917 = vmatpush3.bf16.msra.mxu1 %v4051_v16  ;;  %v4052_v16 = vld [vmem:[%s5288_s3 + $0x4c] sm:$0xff]  }
0x1103   :  { %3928 = vmatprep.subr.bf16.mxu1 %v4268_v7 }
0x11bd   :  { %v2167_v5 = vpop.f32.mrf.mxu1  ;;  %v2210_v30 = vpop.f32.mrf.mxu0 }
0x11be   :  { %v3639_v45 = vpack.c.bf16 %v2210_v30, %v2167_v5  ;;  %v4053_v5 = vld [vmem:[%s5288_s3 + $0x44] sm:$0xff]  }
0x11bf   :  { %v3906_v50 = vpop.f32.mrf.mxu1  ;;  %v3912_v47 = vpop.f32.mrf.mxu0 }
0x11c0   :  { %3919 = vmatmul.mubr.msk.bf16.vlgmr.msra.gmra.mxu1 %vm90_vm0, %v3639_v45 }
0x11c1   :  { %v2170_v15 = vpop.f32.mrf.mxu1  ;;  %v2213_v26 = vpop.f32.mrf.mxu0  ;;  %3930 = vmatprep.mubr.msk.bf16.mxu1 %vm4269_vm4, %v4268_v7 }
0x11c3   :  { %v3907_v19 = vpop.f32.mrf.mxu1  ;;  %v3913_v60 = vpop.f32.mrf.mxu0 }
0x1280   :  { %v2272_v23 = vpop.f32.mrf.mxu1 }
0x1281   :  { %v2283_v18 = vadd.f32 %v2282_v56, %v2272_v23 }
0x1282   :  { %v3920_v44 = vpop.f32.mrf.mxu1 }
0x1283   :  { %v2285_v41 = vmul.f32 %v2283_v18, %v2283_v18 }
0x1284   :  { %v2275_v25 = vpop.f32.mrf.mxu1 }
0x1285   :  { %v2284_v46 = vadd.f32 %v2282_v56, %v2275_v25  ;;  %v2287_v14 = vsel %vm90_vm0, %v2285_v41, 0.0  ;;  %v2477_v56 = vsub.s32 5, %v4366_v31 }
0x1286   :  { %2288 = vadd.xlane.f32.xlu0 %v2287_v14  ;;  %v3921_v52 = vpop.f32.mrf.mxu1 }
0x1287   :  { %v2286_v2 = vmul.f32 %v2284_v46, %v2284_v46  ;;  %v2478_v23 = vrot.slane %v5037_v34, %v2477_v56 }
0x1289   :  { %v2290_v12 = vsel %vm90_vm0, %v2286_v2, 0.0 }
0x128a   :  { %2291 = vadd.xlane.f32.xlu1 %v2290_v12 }
0x130f   :  { %v2289_v21 = vpop.xlane.xlu0 %2288 }
0x1310   :  { %v2293_v39 = vmax.f32 %v2289_v21, 1e-24 }
0x1312   :  { %4195 = vrsqrt.f32 %v2293_v39 }
0x1313   :  { %v2292_v35 = vpop.xlane.xlu1 %2291 }
0x1314   :  { %v2294_v42 = vmax.f32 %v2292_v35, 1e-24 }
0x1316   :  { %4197 = vrsqrt.f32 %v2294_v42 }
0x131f   :  { %v4196_v27 = vpop.eup %4195 }
0x1320   :  { %v2297_v13 = vmul.f32 %v4196_v27, %v2283_v18 }
0x1322   :  { %v2299_v10 = vmax.f32 %v2297_v13, 0.0 }
0x1323   :  { %v4198_v55 = vpop.eup %4197 }
0x1324   :  { %v2298_v11 = vmul.f32 %v4198_v55, %v2284_v46  ;;  %v2307_v54 = vmul.f32 %v2299_v10, %v2299_v10  ;;  %v2301_v37 = vsel %vm90_vm0, %v2299_v10, 0.0 }
0x1326   :  { %v2300_v22 = vmax.f32 %v2298_v11, 0.0  ;;  %v2309_v53 = vsel %vm90_vm0, %v2307_v54, 0.0 }
0x1328   :  { %v2302_v6 = vsel %vm90_vm0, %v2300_v22, 0.0  ;;  %v2308_v43 = vmul.f32 %v2300_v22, %v2300_v22 }
0x1329   :  { %v2303_v38 = vadd.f32 %v2302_v6, %v2301_v37 }
0x132a   :  { %v2310_v51 = vsel %vm90_vm0, %v2308_v43, 0.0 }
0x132b   :  { %2304 = vadd.xlane.f32.xlu0 %v2303_v38  ;;  %v2311_v63 = vadd.f32 %v2310_v51, %v2309_v53 }
0x132d   :  { %2312 = vadd.xlane.f32.xlu1 %v2311_v63 }
0x13b4   :  { %v2305_v24 = vpop.xlane.xlu0 %2304 }
0x13b5   :  { %v2306_v36 = vmul.f32 0.015625, %v2305_v24 }
0x13b6   :  { %v2313_v29 = vpop.xlane.xlu1 %2312 }
0x13b7   :  { %v2314_v57 = vmul.f32 0.015625, %v2313_v29  ;;  %v2315_v9 = vmul.f32 %v2306_v36, %v2306_v36  ;;  %v2318_v58 = vsub.f32 %v2299_v10, %v2306_v36  ;;  %v2319_v48 = vsub.f32 %v2300_v22, %v2306_v36 }
0x13b9   :  { %v2316_v49 = vsub.f32 %v2314_v57, %v2315_v9 }
0x13bb   :  { %v2317_v3 = vmax.f32 %v2316_v49, 0.0 }
0x13bd   :  { %v2320_v28 = vadd.f32 1e-05, %v2317_v3 }
0x13bf   :  { %4199 = vrsqrt.f32 %v2320_v28 }
0x13cc   :  { %v4200_v8 = vpop.eup %4199 }
0x13cd   :  { %v2322_v59 = vmul.f32 %v4200_v8, %v2318_v58  ;;  %v2323_v20 = vmul.f32 %v4200_v8, %v2319_v48 }
0x13cf   :  { %v2324_v17 = vpack.c.bf16 %v2322_v59, %v2322_v59  ;;  %v2325_v4 = vpack.c.bf16 %v2323_v20, %v2323_v20 }
0x13d1   :  { %v2327_v0 = vsel %vm228_vm1, %v2324_v17, 0  ;;  %v2370_v40 = vsel %vm228_vm1, %v2325_v4, 0 }
0x13d2   :  { %3923 = vmatpush3.bf16.msra.mxu0 %v2327_v0  ;;  %3929 = vmatpush3.bf16.msra.mxu1 %v2370_v40 }
0x13d3   :  { %3934 = vmatprep.subr.bf16.mxu0 %v4268_v7  ;;  %3942 = vmatprep.subr.bf16.mxu1 %v4268_v7 }
0x13d5   :  { %3925 = vmatmul.mubr.msk.bf16.vlgmr.msra.gmra.mxu0 %vm215_vm2, %v5010_v62  ;;  %3931 = vmatmul.mubr.msk.bf16.vlgmr.msra.gmra.mxu1 %vm215_vm2, %v5016_v33 }
0x13d6   :  { %3935 = vmatpush3.bf16.msra.mxu0 %v4052_v16  ;;  %3938 = vmatprep.mubr.msk.bf16.mxu0 %vm4269_vm4, %v4268_v7 }
0x13d7   :  { %3936 = vmatprep.subr.bf16.mxu0 %v4268_v7  ;;  %3944 = vmatprep.mubr.msk.bf16.mxu1 %vm4269_vm4, %v4268_v7 }
0x13da   :  { %3937 = vmatpush3.bf16.msra.mxu0 %v4053_v5 }
0x13db   :  { %3948 = vmatprep.subr.bf16.mxu0 %v4268_v7 }
0x1495   :  { %v2363_v30 = vpop.f32.mrf.mxu0  ;;  %v2406_v45 = vpop.f32.mrf.mxu1 }
0x1496   :  { %v3640_v50 = vpack.c.bf16 %v2406_v45, %v2363_v30 }
0x1497   :  { %v3926_v47 = vpop.f32.mrf.mxu0  ;;  %v3932_v15 = vpop.f32.mrf.mxu1 }
0x1498   :  { %3939 = vmatmul.mubr.msk.bf16.vlgmr.msra.gmra.mxu0 %vm90_vm0, %v3640_v50 }
0x1499   :  { %v2366_v26 = vpop.f32.mrf.mxu0  ;;  %v2409_v19 = vpop.f32.mrf.mxu1  ;;  %3950 = vmatprep.mubr.msk.bf16.mxu0 %vm4269_vm4, %v4268_v7 }
0x149b   :  { %v3927_v60 = vpop.f32.mrf.mxu0  ;;  %v3933_v61 = vpop.f32.mrf.mxu1 }
0x1558   :  { %v2468_v18 = vpop.f32.mrf.mxu0 }
0x1559   :  { %v5102_v44 = vadd.f32 %v2478_v23, %v2468_v18 }
0x155a   :  { %v3940_v41 = vpop.f32.mrf.mxu0 }
0x155b   :  { %v5106_v25 = vmul.f32 %v5102_v44, %v5102_v44 }
0x155c   :  { %v2471_v46 = vpop.f32.mrf.mxu0 }
0x155d   :  { %v5108_v14 = vadd.f32 %v2478_v23, %v2471_v46  ;;  %2522 = vrot.lane.b32.xlu0 %v5106_v25, %s4267_s11  ;;  %v2483_v41 = vsel %vm90_vm0, %v5106_v25, 0.0 }
0x155e   :  { %v3941_v52 = vpop.f32.mrf.mxu0 }
0x155f   :  { %v5114_v2 = vmul.f32 %v5108_v14, %v5108_v14 }
0x1561   :  { %2524 = vrot.lane.b32.xlu1 %v5114_v2, %s4267_s11  ;;  %v2486_v18 = vsel %vm90_vm0, %v5114_v2, 0.0 }
0x15cf   :  { %v2523_v12 = vpop.permute.xlu0 %2522 }
0x15d0   :  { %v2529_v21 = vsel %vm2528_vm5, %v2523_v12, 0.0 }
0x15d1   :  { %2530 = vadd.xlane.f32.xlu1 %v2529_v21 }
0x15d3   :  { %v2525_v39 = vpop.permute.xlu1 %2524 }
0x15d4   :  { %v2532_v35 = vsel %vm2528_vm5, %v2525_v39, 0.0 }
0x15d5   :  { %2533 = vadd.xlane.f32.xlu0 %v2532_v35 }
0x165a   :  { %v2531_v42 = vpop.xlane.xlu1 %2530 }
0x165b   :  { %v2535_v27 = vmax.f32 %v2531_v42, 1e-24 }
0x165d   :  { %4201 = vrsqrt.f32 %v2535_v27 }
0x165e   :  { %v2534_v13 = vpop.xlane.xlu0 %2533 }
0x165f   :  { %v2536_v10 = vmax.f32 %v2534_v13, 1e-24 }
0x1661   :  { %4203 = vrsqrt.f32 %v2536_v10 }
0x166a   :  { %v4202_v55 = vpop.eup %4201 }
0x166b   :  { %v2539_v11 = vmul.f32 %v4202_v55, %v5102_v44 }
0x166d   :  { %v2541_v22 = vmax.f32 %v2539_v11, 0.0 }
0x166e   :  { %v4204_v54 = vpop.eup %4203 }
0x166f   :  { %2545 = vrot.lane.b32.xlu0 %v2541_v22, %s4267_s11  ;;  %v2557_v37 = vmul.f32 %v2541_v22, %v2541_v22  ;;  %v2540_v6 = vmul.f32 %v4204_v54, %v5108_v14 }
0x1671   :  { %2561 = vrot.lane.b32.xlu1 %v2557_v37, %s4267_s11  ;;  %v2542_v43 = vmax.f32 %v2540_v6, 0.0 }
0x1673   :  { %v2558_v38 = vmul.f32 %v2542_v43, %v2542_v43 }
0x1675   :  { %2547 = vrot.lane.b32.xlu1 %v2542_v43, %s4267_s11 }
0x1679   :  { %2563 = vrot.lane.b32.xlu1 %v2558_v38, %s4267_s11 }
0x16e1   :  { %v2546_v51 = vpop.permute.xlu0 %2545 }
0x16e2   :  { %v2551_v24 = vsel %vm2528_vm5, %v2546_v51, 0.0 }
0x16e3   :  { %v2562_v53 = vpop.permute.xlu1 %2561 }
0x16e4   :  { %v2567_v9 = vsel %vm2528_vm5, %v2562_v53, 0.0 }
0x16e7   :  { %v2548_v63 = vpop.permute.xlu1 %2547 }
0x16e8   :  { %v2552_v36 = vsel %vm2528_vm5, %v2548_v63, 0.0 }
0x16e9   :  { %v2553_v29 = vadd.f32 %v2552_v36, %v2551_v24 }
0x16eb   :  { %2554 = vadd.xlane.f32.xlu0 %v2553_v29  ;;  %v2564_v57 = vpop.permute.xlu1 %2563 }
0x16ec   :  { %v2568_v49 = vsel %vm2528_vm5, %v2564_v57, 0.0 }
0x16ed   :  { %v2569_v3 = vadd.f32 %v2568_v49, %v2567_v9 }
0x16ef   :  { %2570 = vadd.xlane.f32.xlu1 %v2569_v3 }
0x1774   :  { %v2555_v28 = vpop.xlane.xlu0 %2554 }
0x1775   :  { %v2556_v58 = vmul.f32 0.25, %v2555_v28 }
0x1777   :  { %v2573_v8 = vmul.f32 %v2556_v58, %v2556_v58  ;;  %v2576_v0 = vsub.f32 %v2541_v22, %v2556_v58  ;;  %v2577_v16 = vsub.f32 %v2542_v43, %v2556_v58 }
0x1778   :  { %v2571_v48 = vpop.xlane.xlu1 %2570 }
0x1779   :  { %v2572_v59 = vmul.f32 0.25, %v2571_v48 }
0x177b   :  { %v2574_v20 = vsub.f32 %v2572_v59, %v2573_v8 }
0x177d   :  { %v2575_v17 = vmax.f32 %v2574_v20, 0.0 }
0x177f   :  { %v2578_v4 = vadd.f32 1e-05, %v2575_v17 }
0x1781   :  { %4205 = vrsqrt.f32 %v2578_v4 }
0x178e   :  { %v4206_v40 = vpop.eup %4205 }
0x178f   :  { %v2580_v5 = vmul.f32 %v4206_v40, %v2576_v0  ;;  %v2581_v45 = vmul.f32 %v4206_v40, %v2577_v16 }
0x1791   :  { %v2583_v30 = vsel %vm2582_vm6, %v2580_v5, -inf  ;;  %v2586_v50 = vsel %vm2582_vm6, %v2581_v45, -inf }
0x1792   :  { %2584 = vmax.xlane.f32.xlu0 %v2583_v30 }
0x1796   :  { %2587 = vmax.xlane.f32.xlu0 %v2586_v50 }
0x181b   :  { %v2585_v47 = vpop.xlane.xlu0 %2584 }
0x181c   :  { %v2589_v15 = vsub.f32 %v2580_v5, %v2585_v47 }
0x181e   :  { %v2591_v26 = vmul.f32 1.442695, %v2589_v15 }
0x181f   :  { %v2588_v19 = vpop.xlane.xlu0 %2587 }
0x1820   :  { %4207 = vpow2.f32 %v2591_v26  ;;  %v2590_v60 = vsub.f32 %v2581_v45, %v2588_v19  ;;  %v2749_v19 = vsel %vm228_vm1, %v5010_v62, 0 }
0x1822   :  { %v2593_v61 = vmul.f32 1.442695, %v2590_v60 }
0x1824   :  { %4209 = vpow2.f32 %v2593_v61  ;;  %v2791_v61 = vsel %vm228_vm1, %v5016_v33, 0 }
0x182d   :  { %v4208_v56 = vpop.eup %4207 }
0x182e   :  { %2597 = vrot.lane.b32.xlu0 %v4208_v56, %s4267_s11 }
0x1831   :  { %v4210_v23 = vpop.eup %4209 }
0x1832   :  { %2599 = vrot.lane.b32.xlu1 %v4210_v23, %s4267_s11 }
0x184d   :  { %2487 = vadd.xlane.f32.xlu0 %v2486_v18 }
0x1856   :  { %2484 = vadd.xlane.f32.xlu1 %v2483_v41 }
0x18a0   :  { %v2598_v46 = vpop.permute.xlu0 %2597 }
0x18a1   :  { %v2603_v52 = vsel %vm2528_vm5, %v2598_v46, 0.0 }
0x18a2   :  { %2604 = vadd.xlane.f32.xlu0 %v2603_v52 }
0x18a4   :  { %v2600_v12 = vpop.permute.xlu1 %2599 }
0x18a5   :  { %v2606_v21 = vsel %vm2528_vm5, %v2600_v12, 0.0 }
0x18a6   :  { %2607 = vadd.xlane.f32.xlu1 %v2606_v21 }
0x18d6   :  { %v2488_v39 = vpop.xlane.xlu0 %2487 }
0x18d7   :  { %v2490_v35 = vmax.f32 %v2488_v39, 1e-24 }
0x18d9   :  { %4211 = vrsqrt.f32 %v2490_v35 }
0x18df   :  { %v2485_v42 = vpop.xlane.xlu1 %2484 }
0x18e0   :  { %v2489_v27 = vmax.f32 %v2485_v42, 1e-24 }
0x18e2   :  { %4213 = vrsqrt.f32 %v2489_v27 }
0x18e6   :  { %v4212_v2 = vpop.eup %4211 }
0x18e7   :  { %v2494_v13 = vmul.f32 %v4212_v2, %v5108_v14 }
0x18e9   :  { %v2496_v10 = vmax.f32 %v2494_v13, 0.0 }
0x18eb   :  { %v2504_v22 = vmul.f32 %v2496_v10, %v2496_v10  ;;  %v2498_v37 = vsel %vm90_vm0, %v2496_v10, 0.0 }
0x18ed   :  { %v2506_v53 = vsel %vm90_vm0, %v2504_v22, 0.0 }
0x18ef   :  { %v4214_v25 = vpop.eup %4213 }
0x18f0   :  { %v2493_v55 = vmul.f32 %v4214_v25, %v5102_v44 }
0x18f2   :  { %v2495_v11 = vmax.f32 %v2493_v55, 0.0 }
0x18f4   :  { %v2497_v54 = vsel %vm90_vm0, %v2495_v11, 0.0  ;;  %v2503_v6 = vmul.f32 %v2495_v11, %v2495_v11 }
0x18f5   :  { %v2499_v43 = vadd.f32 %v2498_v37, %v2497_v54 }
0x18f6   :  { %v2505_v38 = vsel %vm90_vm0, %v2503_v6, 0.0 }
0x18f7   :  { %2500 = vadd.xlane.f32.xlu0 %v2499_v43  ;;  %v2507_v51 = vadd.f32 %v2506_v53, %v2505_v38 }
0x18f9   :  { %2508 = vadd.xlane.f32.xlu1 %v2507_v51 }
0x192b   :  { %v2605_v14 = vpop.xlane.xlu0 %2604 }
0x192c   :  { %4215 = vrcp.f32 %v2605_v14 }
0x192f   :  { %v2608_v63 = vpop.xlane.xlu1 %2607 }
0x1930   :  { %4217 = vrcp.f32 %v2608_v63 }
0x1939   :  { %v4216_v44 = vpop.eup %4215 }
0x193a   :  { %v2610_v24 = vmul.f32 %v4216_v44, %v4208_v56 }
0x193c   :  { %v2613_v36 = vpack.c.bf16 %v2610_v24, %v2610_v24 }
0x193d   :  { %v4218_v29 = vpop.eup %4217 }
0x193e   :  { %2618 = vrot.lane.b32.xlu0 %v2613_v36, %s4267_s11  ;;  %v2612_v57 = vmul.f32 %v4218_v29, %v4210_v23 }
0x1940   :  { %v2614_v9 = vpack.c.bf16 %v2612_v57, %v2612_v57  ;;  %v4054_v57 = vld [vmem:[%s5288_s3 + $0x5c] sm:$0xff]  }
0x1942   :  { %2684 = vrot.lane.b32.xlu1 %v2614_v9, %s4267_s11  ;;  %v4055_v9 = vld [vmem:[%s5288_s3 + $0x54] sm:$0xff]  }
0x1980   :  { %v2501_v49 = vpop.xlane.xlu0 %2500 }
0x1981   :  { %v2502_v3 = vmul.f32 0.015625, %v2501_v49  ;;  %v4270_v49 = vmov 1966171168  }
0x1982   :  { %v2509_v28 = vpop.xlane.xlu1 %2508 }
0x1983   :  { %v2510_v58 = vmul.f32 0.015625, %v2509_v28  ;;  %v2511_v48 = vmul.f32 %v2502_v3, %v2502_v3  ;;  %v2514_v17 = vsub.f32 %v2495_v11, %v2502_v3  ;;  %v2515_v4 = vsub.f32 %v2496_v10, %v2502_v3 }
0x1984   :  { %v3034_v3 = vunpack.c.l.s4 %v4270_v49 }
0x1985   :  { %v2512_v8 = vsub.f32 %v2510_v58, %v2511_v48 }
0x1986   :  { %v3035_v28 = vunpack.c.0.s8 %v3034_v3 }
0x1987   :  { %v2513_v59 = vmax.f32 %v2512_v8, 0.0 }
0x1988   :  { %v5203_v8 = vsub.s32 %v3035_v28, %v4366_v31 }
0x1989   :  { %v2516_v20 = vadd.f32 1e-05, %v2513_v59 }
0x198b   :  { %4219 = vrsqrt.f32 %v2516_v20 }
0x1998   :  { %v4220_v0 = vpop.eup %4219 }
0x1999   :  { %v2518_v40 = vmul.f32 %v4220_v0, %v2514_v17  ;;  %v2519_v16 = vmul.f32 %v4220_v0, %v2515_v4 }
0x199b   :  { %v2615_v5 = vpack.c.bf16 %v2518_v40, %v2518_v40  ;;  %v2616_v30 = vpack.c.bf16 %v2519_v16, %v2519_v16 }
0x199d   :  { %v2641_v45 = vsel %vm228_vm1, %v2615_v5, 0  ;;  %v2707_v50 = vsel %vm228_vm1, %v2616_v30, 0 }
0x199e   :  { %3943 = vmatpush3.bf16.msra.mxu1 %v2641_v45  ;;  %3949 = vmatpush3.bf16.msra.mxu0 %v2707_v50  ;;  %v3028_v45 = vsub.s32 6, %v4366_v31  ;;  %v4271_v50 = vmov 1983009808  }
0x199f   :  { %3954 = vmatprep.subr.bf16.mxu1 %v4268_v7  ;;  %3960 = vmatprep.subr.bf16.mxu0 %v4268_v7 }
0x19b0   :  { %v2619_v47 = vpop.permute.xlu0 %2618 }
0x19b1   :  { %2621 = vxpose.xlu1.c.b16.start.end [1/1] (short) (narrow) %v2619_v47, 16  ;;  %v2839_v62 = vsel %vm228_vm1, %v2619_v47, 0  ;;  %v3062_v47 = vunpack.c.l.s4 %v4271_v50 }
0x19b4   :  { %v2685_v15 = vpop.permute.xlu1 %2684 }
0x19b5   :  { %2687 = vxpose.xlu0.c.b16.start.end [1/1] (short) (narrow) %v2685_v15, 16  ;;  %v2885_v56 = vsel %vm228_vm1, %v2685_v15, 0  ;;  %v3029_v15 = vrot.slane %v5037_v34, %v3028_v45 }
0x1a13   :  { %v2629_v26 = vpop.trf.xlu1 }
0x1a14   :  { %3945 = vmatmul.mubr.msk.bf16.vlgmr.msra.gmra.mxu1 %vm215_vm2, %v2629_v26 }
0x1a15   :  { %3955 = vmatpush3.bf16.msra.mxu1 %v2749_v19  ;;  %3956 = vmatprep.mubr.msk.bf16.mxu1 %vm4269_vm4, %v4268_v7  ;;  %v3060_v19 = vcombine.low %v3029_v15, %v3029_v15 }
0x1a16   :  { %3966 = vmatprep.subr.bf16.mxu1 %v4268_v7 }
0x1a17   :  { %v2695_v60 = vpop.trf.xlu0 }
0x1a18   :  { %3951 = vmatmul.mubr.msk.bf16.vlgmr.msra.gmra.mxu0 %vm215_vm2, %v2695_v60 }
0x1a19   :  { %3961 = vmatpush3.bf16.msra.mxu0 %v2791_v61  ;;  %3962 = vmatprep.mubr.msk.bf16.mxu0 %vm4269_vm4, %v4268_v7 }
0x1a1a   :  { %3972 = vmatprep.subr.bf16.mxu0 %v4268_v7 }
0x1a1c   :  { %3957 = vmatmul.mubr.msk.bf16.vlgmr.msra.gmra.mxu1 %vm215_vm2, %v2629_v26  ;;  %v3063_v26 = vunpack.c.0.s8 %v3062_v47 }
0x1a1d   :  { %3967 = vmatpush3.bf16.msra.mxu1 %v2839_v62  ;;  %3968 = vmatprep.mubr.msk.bf16.mxu1 %vm4269_vm4, %v4268_v7 }
0x1a1e   :  { %3978 = vmatprep.subr.bf16.mxu1 %v4268_v7 }
0x1a20   :  { %3963 = vmatmul.mubr.msk.bf16.vlgmr.msra.gmra.mxu0 %vm215_vm2, %v2695_v60  ;;  %v5213_v60 = vsub.s32 %v3063_v26, %v4366_v31 }
0x1a21   :  { %3973 = vmatpush3.bf16.msra.mxu0 %v2885_v56  ;;  %3974 = vmatprep.mubr.msk.bf16.mxu0 %vm4269_vm4, %v4268_v7 }
0x1a22   :  { %3984 = vmatprep.subr.bf16.mxu0 %v4268_v7  ;;  %v3067_v61 = vrot.slane %v3060_v19, %v5213_v60 }
0x1ad4   :  { %v2677_v33 = vpop.f32.mrf.mxu1 }
0x1ad5   :  { %v2929_v12 = vpack.c.bf16 %v2677_v33, %v2677_v33 }
0x1ad6   :  { %v3946_v23 = vpop.f32.mrf.mxu1 }
0x1ad7   :  { %v2936_v2 = vsel %vm2934_vm7, %v2929_v12, 0 }
0x1ad8   :  { %v2680_v18 = vpop.f32.mrf.mxu1  ;;  %v2743_v41 = vpop.f32.mrf.mxu0 }
0x1ad9   :  { %v2930_v13 = vpack.c.bf16 %v2743_v41, %v2743_v41 }
0x1ada   :  { %v3947_v46 = vpop.f32.mrf.mxu1  ;;  %v3952_v52 = vpop.f32.mrf.mxu0 }
0x1adb   :  { %v2982_v54 = vsel %vm2934_vm7, %v2930_v13, 0 }
0x1adc   :  { %v2746_v21 = vpop.f32.mrf.mxu0  ;;  %v2785_v39 = vpop.f32.mrf.mxu1 }
0x1add   :  { %v2833_v35 = vpack.c.bf16 %v2785_v39, %v2785_v39 }
0x1ade   :  { %v3953_v42 = vpop.f32.mrf.mxu0  ;;  %v3958_v27 = vpop.f32.mrf.mxu1 }
0x1adf   :  { %3969 = vmatmul.mubr.msk.bf16.vlgmr.msra.gmra.mxu1 %vm215_vm2, %v2833_v35 }
0x1ae0   :  { %3979 = vmatpush3.bf16.msra.mxu1 %v2936_v2  ;;  %v2788_v10 = vpop.f32.mrf.mxu1  ;;  %v2827_v25 = vpop.f32.mrf.mxu0  ;;  %3980 = vmatprep.mubr.msk.bf16.mxu1 %vm4269_vm4, %v4268_v7 }
0x1ae1   :  { %v2834_v55 = vpack.c.bf16 %v2827_v25, %v2827_v25  ;;  %3990 = vmatprep.subr.bf16.mxu1 %v4268_v7 }
0x1ae2   :  { %v3959_v11 = vpop.f32.mrf.mxu1  ;;  %v3964_v22 = vpop.f32.mrf.mxu0 }
0x1ae3   :  { %3975 = vmatmul.mubr.msk.bf16.vlgmr.msra.gmra.mxu0 %vm215_vm2, %v2834_v55 }
0x1ae4   :  { %3985 = vmatpush3.bf16.msra.mxu0 %v2982_v54  ;;  %v2830_v37 = vpop.f32.mrf.mxu0  ;;  %3986 = vmatprep.mubr.msk.bf16.mxu0 %vm4269_vm4, %v4268_v7 }
0x1ae5   :  { %3998 = vmatprep.subr.bf16.mxu0 %v4268_v7 }
0x1ae6   :  { %v3965_v6 = vpop.f32.mrf.mxu0 }
0x1b9f   :  { %v2875_v43 = vpop.f32.mrf.mxu1 }
0x1ba0   :  { %v5182_v38 = vpack.c.bf16 %v2875_v43, %v2875_v43 }
0x1ba1   :  { %v3970_v53 = vpop.f32.mrf.mxu1 }
0x1ba2   :  { %3981 = vmatmul.mubr.msk.bf16.vlgmr.msra.gmra.mxu1 %vm2528_vm5, %v5182_v38 }
0x1ba3   :  { %v2878_v51 = vpop.f32.mrf.mxu1  ;;  %v2921_v14 = vpop.f32.mrf.mxu0  ;;  %3994 = vmatprep.mubr.msk.bf16.mxu1 %vm4269_vm4, %v4268_v7  ;;  %3991 = vmatpush3.bf16.msra.mxu1 %v4054_v57 }
0x1ba4   :  { %v5188_v63 = vpack.c.bf16 %v2921_v14, %v2921_v14  ;;  %3992 = vmatprep.subr.bf16.mxu1 %v4268_v7 }
0x1ba5   :  { %v3971_v44 = vpop.f32.mrf.mxu1  ;;  %v3976_v24 = vpop.f32.mrf.mxu0 }
0x1ba6   :  { %3987 = vmatmul.mubr.msk.bf16.vlgmr.msra.gmra.mxu0 %vm2528_vm5, %v5188_v63 }
0x1ba7   :  { %v2924_v36 = vpop.f32.mrf.mxu0  ;;  %4000 = vmatprep.mubr.msk.bf16.mxu0 %vm4269_vm4, %v4268_v7  ;;  %3993 = vmatpush3.bf16.msra.mxu1 %v4055_v9 }
0x1ba8   :  { %4004 = vmatprep.subr.bf16.mxu1 %v4268_v7 }
0x1ba9   :  { %v3977_v29 = vpop.f32.mrf.mxu0 }
0x1c62   :  { %v2972_v58 = vpop.f32.mrf.mxu1 }
0x1c64   :  { %v3982_v48 = vpop.f32.mrf.mxu1 }
0x1c66   :  { %v2975_v59 = vpop.f32.mrf.mxu1  ;;  %v3018_v20 = vpop.f32.mrf.mxu0 }
0x1c67   :  { %v3623_v17 = vpack.c.bf16 %v3018_v20, %v2972_v58 }
0x1c68   :  { %v3983_v4 = vpop.f32.mrf.mxu1  ;;  %v3988_v0 = vpop.f32.mrf.mxu0 }
0x1c69   :  { %v3039_v40 = vrot.slane %v3623_v17, %v5203_v8 }
0x1c6a   :  { %v3021_v16 = vpop.f32.mrf.mxu0 }
0x1c6b   :  { %v3046_v5 = vrot.slane %v3039_v40, %v5203_v8 }
0x1c6c   :  { %v3989_v30 = vpop.f32.mrf.mxu0 }
0x1c6d   :  { %3995 = vmatmul.mubr.msk.bf16.vlgmr.msra.gmra.mxu1 %vm90_vm0, %v3046_v5  ;;  %v4056_v5 = vld [vmem:[%s5288_s3 + $0x6c] sm:$0xff]  }
0x1c6e   :  { %4006 = vmatprep.mubr.msk.bf16.mxu1 %vm4269_vm4, %v4268_v7 }
0x1d2d   :  { %v3106_v62 = vpop.f32.mrf.mxu1 }
0x1d2e   :  { %v3107_v56 = vadd.f32 %v3106_v62, %v3067_v61 }
0x1d2f   :  { %v3996_v33 = vpop.f32.mrf.mxu1 }
0x1d30   :  { %v3119_v23 = vrot.slane %v3107_v56, %v5213_v60  ;;  %v3255_v33 = vsub.s32 7, %v4366_v31 }
0x1d31   :  { %v3109_v18 = vpop.f32.mrf.mxu1 }
0x1d32   :  { %v3123_v41 = vmul.f32 %v3119_v23, %v3119_v23  ;;  %v3120_v46 = vcombine.high %v3119_v23, %v3119_v23 }
0x1d33   :  { %v3997_v52 = vpop.f32.mrf.mxu1 }
0x1d34   :  { %v3126_v12 = vsel %vm3125_vm8, %v3123_v41, 0.0  ;;  %v3124_v21 = vmul.f32 %v3120_v46, %v3120_v46 }
0x1d35   :  { %3127 = vadd.xlane.f32.xlu0 %v3126_v12 }
0x1d36   :  { %v3129_v39 = vsel %vm3125_vm8, %v3124_v21, 0.0 }
0x1d37   :  { %3130 = vadd.xlane.f32.xlu1 %v3129_v39 }
0x1dbe   :  { %v3128_v35 = vpop.xlane.xlu0 %3127 }
0x1dbf   :  { %v3132_v42 = vmax.f32 %v3128_v35, 1e-24 }
0x1dc0   :  { %v3131_v27 = vpop.xlane.xlu1 %3130 }
0x1dc1   :  { %4221 = vrsqrt.f32 %v3132_v42  ;;  %v3133_v2 = vmax.f32 %v3131_v27, 1e-24 }
0x1dc3   :  { %4223 = vrsqrt.f32 %v3133_v2 }
0x1dce   :  { %v4222_v13 = vpop.eup %4221 }
0x1dcf   :  { %v3136_v10 = vmul.f32 %v4222_v13, %v3119_v23  ;;  %v3256_v23 = vrot.slane %v5037_v34, %v3255_v33 }
0x1dd0   :  { %v4224_v25 = vpop.eup %4223 }
0x1dd1   :  { %v3137_v55 = vmul.f32 %v4224_v25, %v3120_v46  ;;  %v3138_v11 = vmax.f32 %v3136_v10, 0.0  ;;  %v3287_v18 = vcombine.low %v3256_v23, %v3256_v23 }
0x1dd3   :  { %v3139_v22 = vmax.f32 %v3137_v55, 0.0  ;;  %v3146_v54 = vmul.f32 %v3138_v11, %v3138_v11  ;;  %v3140_v37 = vsel %vm3125_vm8, %v3138_v11, 0.0  ;;  %v3294_v41 = vrot.slane %v3287_v18, %v5213_v60 }
0x1dd5   :  { %v3141_v6 = vsel %vm3125_vm8, %v3139_v22, 0.0  ;;  %v3147_v43 = vmul.f32 %v3139_v22, %v3139_v22  ;;  %v3148_v51 = vsel %vm3125_vm8, %v3146_v54, 0.0 }
0x1dd6   :  { %v3142_v53 = vadd.f32 %v3141_v6, %v3140_v37 }
0x1dd7   :  { %v3149_v14 = vsel %vm3125_vm8, %v3147_v43, 0.0 }
0x1dd8   :  { %3143 = vadd.xlane.f32.xlu0 %v3142_v53  ;;  %v3150_v44 = vadd.f32 %v3149_v14, %v3148_v51 }
0x1dda   :  { %3151 = vadd.xlane.f32.xlu1 %v3150_v44 }
0x1e61   :  { %v3144_v24 = vpop.xlane.xlu0 %3143 }
0x1e62   :  { %v3145_v36 = vmul.f32 0.015625, %v3144_v24 }
0x1e63   :  { %v3152_v29 = vpop.xlane.xlu1 %3151 }
0x1e64   :  { %v3153_v57 = vmul.f32 0.015625, %v3152_v29  ;;  %v3154_v9 = vmul.f32 %v3145_v36, %v3145_v36  ;;  %v3157_v58 = vsub.f32 %v3138_v11, %v3145_v36  ;;  %v3158_v48 = vsub.f32 %v3139_v22, %v3145_v36  ;;  %v4058_v29 = vld [vmem:[%s5288_s3 + $0x7c] sm:$0xff]  }
0x1e66   :  { %v3155_v49 = vsub.f32 %v3153_v57, %v3154_v9  ;;  %v4059_v57 = vld [vmem:[%s5288_s3 + $0x74] sm:$0xff]  }
0x1e68   :  { %v3156_v3 = vmax.f32 %v3155_v49, 0.0 }
0x1e6a   :  { %v3159_v28 = vadd.f32 1e-05, %v3156_v3 }
0x1e6c   :  { %4225 = vrsqrt.f32 %v3159_v28 }
0x1e79   :  { %v4226_v59 = vpop.eup %4225 }
0x1e7a   :  { %v3161_v20 = vmul.f32 %v4226_v59, %v3157_v58  ;;  %v3162_v17 = vmul.f32 %v4226_v59, %v3158_v48 }
0x1e7c   :  { %v3163_v4 = vpack.c.bf16 %v3161_v20, %v3161_v20  ;;  %v3164_v0 = vpack.c.bf16 %v3162_v17, %v3162_v17 }
0x1e7e   :  { %v3166_v40 = vsel %vm2934_vm7, %v3163_v4, 0  ;;  %v3209_v16 = vsel %vm2934_vm7, %v3164_v0, 0 }
0x1e7f   :  { %3999 = vmatpush3.bf16.msra.mxu0 %v3166_v40  ;;  %4005 = vmatpush3.bf16.msra.mxu1 %v3209_v16 }
0x1e80   :  { %4010 = vmatprep.subr.bf16.mxu0 %v4268_v7  ;;  %4018 = vmatprep.subr.bf16.mxu1 %v4268_v7 }
0x1e82   :  { %4001 = vmatmul.mubr.msk.bf16.vlgmr.msra.gmra.mxu0 %vm2528_vm5, %v5182_v38  ;;  %4007 = vmatmul.mubr.msk.bf16.vlgmr.msra.gmra.mxu1 %vm2528_vm5, %v5188_v63  ;;  %v4057_v38 = vld [vmem:[%s5288_s3 + $0x64] sm:$0xff]  }
0x1e83   :  { %4014 = vmatprep.mubr.msk.bf16.mxu0 %vm4269_vm4, %v4268_v7  ;;  %4022 = vmatprep.mubr.msk.bf16.mxu1 %vm4269_vm4, %v4268_v7 }
0x1e84   :  { %4011 = vmatpush3.bf16.msra.mxu0 %v4056_v5  ;;  %4019 = vmatpush3.bf16.msra.mxu1 %v4058_v29  ;;  %v4244_v5 = vld [vmem:[%s5287_s2] sm:$0x3] }
0x1e85   :  { %4012 = vmatprep.subr.bf16.mxu0 %v4268_v7  ;;  %4020 = vmatprep.subr.bf16.mxu1 %v4268_v7 }
0x1e88   :  { %4013 = vmatpush3.bf16.msra.mxu0 %v4057_v38  ;;  %4021 = vmatpush3.bf16.msra.mxu1 %v4059_v57 }
0x1e89   :  { %4026 = vmatprep.subr.bf16.mxu0 %v4268_v7 }
0x1f42   :  { %v3202_v63 = vpop.f32.mrf.mxu0  ;;  %v3245_v30 = vpop.f32.mrf.mxu1 }
0x1f43   :  { %v3629_v45 = vpack.c.bf16 %v3245_v30, %v3202_v63 }
0x1f44   :  { %v4002_v50 = vpop.f32.mrf.mxu0  ;;  %v4008_v47 = vpop.f32.mrf.mxu1 }
0x1f45   :  { %v3266_v15 = vrot.slane %v3629_v45, %v5203_v8 }
0x1f46   :  { %v3205_v26 = vpop.f32.mrf.mxu0  ;;  %v3248_v19 = vpop.f32.mrf.mxu1 }
0x1f47   :  { %v3273_v61 = vrot.slane %v3266_v15, %v5203_v8 }
0x1f48   :  { %v4003_v62 = vpop.f32.mrf.mxu0  ;;  %v4009_v56 = vpop.f32.mrf.mxu1 }
0x1f49   :  { %4015 = vmatmul.mubr.msk.bf16.vlgmr.msra.gmra.mxu0 %vm90_vm0, %v3273_v61 }
0x1f4a   :  { %4028 = vmatprep.mubr.msk.bf16.mxu0 %vm4269_vm4, %v4268_v7 }
0x2009   :  { %v3333_v46 = vpop.f32.mrf.mxu0 }
0x200a   :  { %v3334_v52 = vadd.f32 %v3333_v46, %v3294_v41 }
0x200b   :  { %v4016_v12 = vpop.f32.mrf.mxu0 }
0x200c   :  { %v3346_v21 = vrot.slane %v3334_v52, %v5213_v60 }
0x200d   :  { %v3336_v8 = vpop.f32.mrf.mxu0 }
0x200e   :  { %v3350_v39 = vmul.f32 %v3346_v21, %v3346_v21  ;;  %v3347_v35 = vcombine.high %v3346_v21, %v3346_v21 }
0x200f   :  { %v4017_v42 = vpop.f32.mrf.mxu0 }
0x2010   :  { %v3352_v27 = vsel %vm3125_vm8, %v3350_v39, 0.0  ;;  %v3351_v2 = vmul.f32 %v3347_v35, %v3347_v35  ;;  %v4060_v42 = vld [vmem:[%s5288_s3 + $0x84] sm:$0xff]   ;;  %s4272_s3 = smov [#allocation2]  }
0x2011   :  { %3353 = vadd.xlane.f32.xlu0 %v3352_v27  ;;  %4027 = vmatpush3.bf16.msra.mxu0 %v4060_v42  ;;  %v75_v27 = vld [vmem:[%s5289_s4 + $0x8] sm:$0x3]  ;;  %s3551_s4 = sshll.u32 %s4272_s3, 4  ;;  %s3552_s4 = int_to_ptr.vmem [resolvable:$true] %s3551_s4 }
0x2012   :  { %v3355_v31 = vsel %vm3125_vm8, %v3351_v2, 0.0  ;;  %v3413_v2 = vrot.slane %v75_v27, %v4369_v32  ;;  %s4245_s20 = scalar_lea.vmem %s3552_s4, 32  ;;  %p4250_p1 = scmp.lt.s32.totalorder %s3552_s4, %s3552_s4 }
0x2013   :  { %3356 = vadd.xlane.f32.xlu1 %v3355_v31  ;;  %p4246_p0 = scmp.ne.s32.totalorder %s3552_s4, %s4245_s20  ;;  %p4251_p2 = scmp.lt.s32.totalorder %s4245_s20, %s4245_s20 }
0x2015   :  { %p4252_p3 = por %p4251_p2, %p4250_p1 }
0x2017   :  { %p4253_p4 = pnand %p4252_p3, %p4246_p0 }
0x209a   :  { %v3354_v34 = vpop.xlane.xlu0 %3353 }
0x209b   :  { %v3358_v13 = vmax.f32 %v3354_v34, 1e-24 }
0x209c   :  { %v3357_v10 = vpop.xlane.xlu1 %3356 }
0x209d   :  { %4227 = vrsqrt.f32 %v3358_v13  ;;  %v3359_v25 = vmax.f32 %v3357_v10, 1e-24 }
0x209f   :  { %4229 = vrsqrt.f32 %v3359_v25 }
0x20aa   :  { %v4228_v55 = vpop.eup %4227 }
0x20ab   :  { %v3362_v11 = vmul.f32 %v4228_v55, %v3346_v21 }
0x20ac   :  { %v4230_v60 = vpop.eup %4229 }
0x20ad   :  { %v3363_v22 = vmul.f32 %v4230_v60, %v3347_v35  ;;  %v3364_v54 = vmax.f32 %v3362_v11, 0.0  ;;  %v3481_v60 = vrot.slane %v75_v27, %v4442_v1 }
0x20af   :  { %v3365_v37 = vmax.f32 %v3363_v22, 0.0  ;;  %v3372_v6 = vmul.f32 %v3364_v54, %v3364_v54  ;;  %v3366_v43 = vsel %vm3125_vm8, %v3364_v54, 0.0 }
0x20b1   :  { %v3367_v53 = vsel %vm3125_vm8, %v3365_v37, 0.0  ;;  %v3373_v51 = vmul.f32 %v3365_v37, %v3365_v37  ;;  %v3374_v44 = vsel %vm3125_vm8, %v3372_v6, 0.0 }
0x20b2   :  { %v3368_v14 = vadd.f32 %v3367_v53, %v3366_v43 }
0x20b3   :  { %v3375_v24 = vsel %vm3125_vm8, %v3373_v51, 0.0 }
0x20b4   :  { %3369 = vadd.xlane.f32.xlu0 %v3368_v14  ;;  %v3376_v36 = vadd.f32 %v3375_v24, %v3374_v44 }
0x20b6   :  { %3377 = vadd.xlane.f32.xlu1 %v3376_v36 }
0x213d   :  { %v3370_v9 = vpop.xlane.xlu0 %3369 }
0x213e   :  { %v3371_v49 = vmul.f32 0.015625, %v3370_v9 }
0x213f   :  { %v3378_v3 = vpop.xlane.xlu1 %3377 }
0x2140   :  { %v3379_v28 = vmul.f32 0.015625, %v3378_v3  ;;  %v3380_v58 = vmul.f32 %v3371_v49, %v3371_v49  ;;  %v3383_v17 = vsub.f32 %v3364_v54, %v3371_v49  ;;  %v3384_v4 = vsub.f32 %v3365_v37, %v3371_v49 }
0x2142   :  { %v3381_v48 = vsub.f32 %v3379_v28, %v3380_v58 }
0x2144   :  { %v3382_v59 = vmax.f32 %v3381_v48, 0.0 }
0x2146   :  { %v3385_v20 = vadd.f32 1e-05, %v3382_v59 }
0x2148   :  { %4231 = vrsqrt.f32 %v3385_v20 }
0x2155   :  { %v4232_v0 = vpop.eup %4231 }
0x2156   :  { %v3387_v40 = vmul.f32 %v4232_v0, %v3383_v17  ;;  %v3388_v16 = vmul.f32 %v4232_v0, %v3384_v4 }
0x2158   :  { %v3389_v7 = vmul.f32 %v4244_v5, %v3387_v40  ;;  %v3390_v38 = vmul.f32 %v4244_v5, %v3388_v16 }
0x215a   :  { %v3391_v63 = vsel %vm3125_vm8, %v3389_v7, 0.0  ;;  %v3398_v30 = vsel %vm3125_vm8, %v3390_v38, 0.0 }
0x215b   :  { %v3392_v45 = vrot.slane %v3391_v63, 4  ;;  %v3399_v50 = vrot.slane %v3398_v30, 4 }
0x215d   :  { %v3393_v47 = vadd.f32 %v3392_v45, %v3391_v63  ;;  %v3400_v15 = vadd.f32 %v3399_v50, %v3398_v30 }
0x215f   :  { %v3394_v26 = vrot.slane %v3393_v47, 2  ;;  %v3401_v19 = vrot.slane %v3400_v15, 2 }
0x2161   :  { %v3395_v61 = vadd.f32 %v3394_v26, %v3393_v47  ;;  %v3402_v62 = vadd.f32 %v3401_v19, %v3400_v15 }
0x2163   :  { %v3396_v56 = vrot.slane %v3395_v61, 1  ;;  %v3403_v33 = vrot.slane %v3402_v62, 1 }
0x2165   :  { %v3397_v23 = vadd.f32 %v3396_v56, %v3395_v61  ;;  %v3404_v18 = vadd.f32 %v3403_v33, %v3402_v62 }
0x2167   :  { %v3406_v41 = vmul.f32 0.5, %v3397_v23  ;;  %v3407_v46 = vmul.f32 0.5, %v3404_v18 }
0x2169   :  { %v3408_v52 = vpack.c.bf16 %v3406_v41, %v3406_v41  ;;  %v3409_v12 = vpack.c.bf16 %v3407_v46, %v3407_v46 }
0x216b   :  { %v3416_v21 = vunpack.c.l.b16 %v3408_v52  ;;  %v3417_v8 = vunpack.c.l.b16 %v3409_v12 }
0x216d   :  { %v3419_v39 = vsel %vm3418_vm9, %v3417_v8, %v3416_v21 }
0x216e   :  { %v3420_v35 = vpack.c.b16 %v3419_v39, %v3419_v39 }
0x2170   :  { %4023 = vmatmul.mubr.msk.bf16.vlgmr.msra.gmra.mxu1 %vm90_vm0, %v3420_v35 }
0x2230   :  { %v3470_v31 = vpop.f32.mrf.mxu1 }
0x2231   :  { %v3471_v34 = vadd.f32 %v3470_v31, %v3413_v2 }
0x2232   :  { %v4024_v13 = vpop.f32.mrf.mxu1 }
0x2233   :  { %v3476_v10 = vmax.f32 %v3471_v34, 0.0 }
0x2234   :  { %v3473_v25 = vpop.f32.mrf.mxu1 }
0x2235   :  { %v3477_v55 = vpack.c.bf16 %v3476_v10, %v3476_v10 }
0x2236   :  { %v4025_v11 = vpop.f32.mrf.mxu1 }
0x2237   :  { %4029 = vmatmul.mubr.msk.bf16.vlgmr.msra.gmra.mxu0 %vm3488_vm10, %v3477_v55 }
0x22f7   :  { %v3526_v22 = vpop.f32.mrf.mxu0 }
0x22f8   :  { %v3527_v54 = vadd.f32 %v3526_v22, %v3481_v60 }
0x22f9   :  { %v4030_v37 = vpop.f32.mrf.mxu0 }
0x22fa   :  { %v3533_v6 = vsel %vm3532_vm11, %v3527_v54, -inf }
0x22fb   :  { %3534 = vmax.xlane.f32.xlu0 %v3533_v6  ;;  %v3529_v43 = vpop.f32.mrf.mxu0 }
0x22fd   :  { %v4031_v32 = vpop.f32.mrf.mxu0 }
0x2384   :  { %v3535_v53 = vpop.xlane.xlu0 %3534 }
0x2385   :  { %v3536_v51 = vsub.f32 %v3527_v54, %v3535_v53 }
0x2387   :  { %v3537_v14 = vmul.f32 1.442695, %v3536_v51 }
0x2389   :  { %4233 = vpow2.f32 %v3537_v14 }
0x2396   :  { %v4234_v44 = vpop.eup %4233 }
0x2397   :  { %v3539_v24 = vsel %vm3532_vm11, %v4234_v44, 0.0 }
0x2398   :  { %3540 = vadd.xlane.f32.xlu1 %v3539_v24 }
0x2421   :  { %v3541_v36 = vpop.xlane.xlu1 %3540 }
0x2422   :  { %4235 = vrcp.f32 %v3541_v36 }
0x242f   :  { %v4236_v1 = vpop.eup %4235 }
0x2430   :  { %v3543_v29 = vmul.f32 %v4236_v1, %v4234_v44 }
0x2432   :  { %3544 = vst.msk [vmem:[#allocation2] sm:$0x3] %vm3532_vm11, %v3543_v29 }
0x2433   :  { %4256 = shalt.err (!%p4253_p4)
}
0x2434   :  { %3554 = dma.vmem_to_hbm [thread:$0]  %s3552_s4, 32, %s5290_s5, [#allocation3]  }
0x2435   :  { %4265 = dma.done.wait [#allocation3], 32  }
0x2436   :  { %4266 = vsyncadd [#allocation3], 4294967264 }
0x2437   :  { %3558 = vsyncpa [#allocation3], 1 }

</bundles_post_ra>
